<compile_context>
chip_gen: v7x
topology: tpu7x:2x2x1
jax: 0.10.0
libtpu: 0.0.40
codegen_flags: <defaults>
</compile_context>

<pallas_src>
import jax
import jax.numpy as jnp
import numpy as np
from jax.experimental import pallas as pl
from jax.experimental.pallas import tpu as pltpu


# ---------------------------------------------------------------------------
# Fused MLP kernel (transposed layout: arrays are (features, tile_m))
# ---------------------------------------------------------------------------
def _make_kernel(num_act_layers, in_features, out_features, num_weights, vmin, vmax):
    K = num_weights
    dx = (vmax - vmin) / (K - 1)
    inv_dx = 1.0 / dx

    def apply_act(y, a_ref):
        """y: (H, tm) f32.  a_ref: SMEM (K,) f32 control points on linspace(vmin,vmax,K).

        Telescoping-ReLU form with the -d_k*t_k constants folded on the scalar
        unit:  f(y) = c0 + sum_k d_k * max(min(y, vmax), t_k).
        Below vmin every max() saturates at t_k and f collapses to a_0,
        above vmax the clamp fixes f at a_{K-1}  ->  matches the hat basis.
        """
        y_c = jnp.minimum(y, vmax)              # 1 VPU op per layer

        # --- scalar-unit prep (SMEM reads, scalar mul/sub) -------------------
        knots = []
        prev_slope = 0.0
        c0 = a_ref[0]
        for k in range(K - 1):
            slope = (a_ref[k + 1] - a_ref[k]) * inv_dx
            d_k = slope - prev_slope
            t_k = vmin + k * dx                 # compile-time constant
            c0 = c0 - d_k * t_k
            knots.append((d_k, t_k))
            prev_slope = slope

        # --- vector part: 3 VPU ops per knot (max, mul, add) -----------------
        d0, t0 = knots[0]
        acc = d0 * jnp.maximum(y_c, t0) + c0    # c0 fused into the first knot
        for d_k, t_k in knots[1:]:
            acc = acc + d_k * jnp.maximum(y_c, t_k)
        return acc

    def kernel(x_ref, *refs):
        out_ref = refs[-1]
        params = refs[:-1]
        x = x_ref[...].astype(jnp.float32)      # (in_features, tm)

        idx = 0
        for layer in range(num_act_layers):
            W_ref, b_ref, a_ref = params[idx], params[idx + 1], params[idx + 2]
            idx += 3
            W = W_ref[...]                      # (fan_out, fan_in), torch layout
            if layer == 0 and in_features <= 8:
                # Tiny-K first layer on the VPU: broadcast multiply-adds.
                y = W[:, 0:1] * x[0:1, :]
                for j in range(1, in_features):
                    y = y + W[:, j:j + 1] * x[j:j + 1, :]
                y = y + b_ref[...]
            else:
                # 32x32 x tile_m matmul; not the bottleneck, keep f32 accuracy.
                y = jnp.dot(W, x, preferred_element_type=jnp.float32) + b_ref[...]
            x = apply_act(y, a_ref)

        Wf_ref, bf_ref = params[idx], params[idx + 1]   # Wf: (hidden, out), bf: (out, 1)
        if out_features == 1:
            # N=1 matmul would waste the MXU: elementwise multiply + sublane reduce.
            out = jnp.sum(x * Wf_ref[...], axis=0, keepdims=True) + bf_ref[...]
        else:
            out = jax.lax.dot_general(
                Wf_ref[...], x, (((0,), (0,)), ((), ())),
                preferred_element_type=jnp.float32) + bf_ref[...]
        out_ref[...] = out.astype(out_ref.dtype)        # (out_features, tm), lane-dense

    return kernel


# ---------------------------------------------------------------------------
# Tile-size selection
# ---------------------------------------------------------------------------
def _round_up(x, m):
    return ((x + m - 1) // m) * m


def _auto_tile_m(batch, max_tile=8192):
    """Large tiles to amortize per-step overhead, but keep >= 2 grid steps
    (v7x megacore) whenever the batch allows it, and never exceed the padded
    batch (avoids wasted compute on padding)."""
    b = _round_up(max(batch, 1), 256)
    if b <= 256:
        return 256
    tile = min(max_tile, _round_up((b + 1) // 2, 256))
    return max(256, tile)


# ---------------------------------------------------------------------------
# Wrapper
# ---------------------------------------------------------------------------
def trainable_forward(coords, params, *, vmin, vmax, tile_m=None):
    """Pallas implementation of Trainable.forward.  Returns (output, coords)."""
    B, in_features = coords.shape
    num_act_layers = (len(params) - 2) // 3
    num_weights = params[2].shape[0]
    out_features = params[-1].shape[0]

    if tile_m is None:
        tile_m = _auto_tile_m(B)

    # Pad the batch to a multiple of tile_m and put the batch on the lane axis.
    B_pad = _round_up(B, tile_m)
    coords_t = jnp.pad(coords.astype(jnp.float32).T, ((0, 0), (0, B_pad - B)))

    kernel = _make_kernel(num_act_layers, in_features, out_features,
                          num_weights, vmin, vmax)

    def _full_vmem_spec(shape):
        nd = len(shape)
        return pl.BlockSpec(shape, lambda i, _nd=nd: (0,) * _nd)

    in_specs = [pl.BlockSpec((in_features, tile_m), lambda i: (0, i))]
    for p in params:
        if p.ndim == 1:
            # Activation control points: scalars, read from SMEM inside the kernel.
            in_specs.append(pl.BlockSpec(memory_space=pltpu.MemorySpace.SMEM))
        else:
            in_specs.append(_full_vmem_spec(p.shape))

    out_spec = pl.BlockSpec((out_features, tile_m), lambda i: (0, i))

    out_t = pl.pallas_call(
        kernel,
        out_shape=jax.ShapeDtypeStruct((out_features, B_pad), jnp.float32),
        grid_spec=pltpu.PrefetchScalarGridSpec(
            num_scalar_prefetch=0,
            grid=(B_pad // tile_m,),
            in_specs=in_specs,
            out_specs=out_spec,
        ),
        compiler_params=pltpu.CompilerParams(dimension_semantics=("parallel",)),
    )(coords_t, *params)

    out = out_t[:, :B].T                                    # (B, out_features)
    # forward() returns (output, coords).
    # TODO(synk): torch's coords.requires_grad_(True) (grad tracking on the input)
    # has no in-kernel analogue; gradients would be obtained via jax.grad outside.
    return out, coords


# ---------------------------------------------------------------------------
# Deterministic parameter construction (matches the module __init__ shapes)
# ---------------------------------------------------------------------------
def init_params(key, in_features, hidden_features, hidden_layers, out_features,
                vmin, vmax, num_weights, init_scale=1.0):
    params = []
    knots = jnp.linspace(vmin, vmax, num_weights)
    act_init = (init_scale * jnp.sin(knots)).astype(jnp.float32)       # init='sine'

    dims = [(in_features, hidden_features)] + \
           [(hidden_features, hidden_features)] * hidden_layers
    for fan_in, fan_out in dims:
        key, kw, kb = jax.random.split(key, 3)
        bound = 1.0 / np.sqrt(fan_in)
        W = jax.random.uniform(kw, (fan_out, fan_in), jnp.float32, -bound, bound)  # torch layout
        b = jax.random.uniform(kb, (fan_out, 1), jnp.float32, -bound, bound)
        params.extend([W, b, act_init])

    # Final nn.Linear with the prescribed uniform weight init (kept as (in, out)).
    key, kw, kb = jax.random.split(key, 3)
    fbound = np.sqrt(6.0 / hidden_features) / 30.0
    Wf = jax.random.uniform(kw, (hidden_features, out_features), jnp.float32, -fbound, fbound)
    bbound = 1.0 / np.sqrt(hidden_features)
    bf = jax.random.uniform(kb, (out_features, 1), jnp.float32, -bbound, bbound)
    params.extend([Wf, bf])
    return params


# ---------------------------------------------------------------------------
# Pure-JAX reference (batch-major, hat-basis activation) for the self-check
# ---------------------------------------------------------------------------
def _ref_act(y, a, vmin, vmax):
    K = a.shape[0]
    u = jnp.clip((y - vmin) / (vmax - vmin) * (K - 1), 0.0, float(K - 1))
    acc = jnp.zeros_like(y)
    for k in range(K):
        acc = acc + a[k] * jnp.maximum(0.0, 1.0 - jnp.abs(u - float(k)))
    return acc


def reference_forward(coords, params, *, vmin, vmax):
    hi = jax.lax.Precision.HIGHEST
    num_act = (len(params) - 2) // 3
    x = coords
    idx = 0
    for _ in range(num_act):
        W, b, a = params[idx], params[idx + 1], params[idx + 2]
        idx += 3
        y = jnp.dot(x, W.T, precision=hi) + b[:, 0]
        x = _ref_act(y, a, vmin, vmax)
    Wf, bf = params[idx], params[idx + 1]
    return jnp.dot(x, Wf, precision=hi) + bf[:, 0]


if __name__ == "__main__":
    # Small SIREN-style configuration: 2-D coords -> 1 output channel.
    in_features = 2
    hidden_features = 32
    hidden_layers = 2
    out_features = 1
    vmin, vmax = -1.0, 1.0
    num_weights = 16
    batch = 1000            # not a multiple of the tile -> exercises padding;
                            # auto tile_m=512 -> 2 parallel grid steps.

    key = jax.random.PRNGKey(0)
    key, kc = jax.random.split(key)
    coords = jax.random.uniform(kc, (batch, in_features), jnp.float32, -1.0, 1.0)

    params = init_params(key, in_features, hidden_features, hidden_layers,
                         out_features, vmin, vmax, num_weights, init_scale=1.0)

    out, coords_out = trainable_forward(coords, params, vmin=vmin, vmax=vmax)
    out = jax.block_until_ready(out)

    ref = reference_forward(coords, params, vmin=vmin, vmax=vmax)
    err = float(jnp.max(jnp.abs(out - ref)))
    assert out.shape == (batch, out_features), out.shape
    assert coords_out.shape == (batch, in_features), coords_out.shape
    assert err < 1e-3, f"mismatch vs reference: {err}"

    print("KERNEL_OK")
</pallas_src>

<mosaic_0001>
module attributes {stable_mosaic.version = 11 : i64} {
  func.func @kernel(%arg0: i32, %arg1: memref<2x512xf32, #tpu.memory_space<vmem>>, %arg2: memref<32x2xf32, #tpu.memory_space<vmem>>, %arg3: memref<32x1xf32, #tpu.memory_space<vmem>>, %arg4: memref<16xf32, #tpu.memory_space<smem>>, %arg5: memref<32x32xf32, #tpu.memory_space<vmem>>, %arg6: memref<32x1xf32, #tpu.memory_space<vmem>>, %arg7: memref<16xf32, #tpu.memory_space<smem>>, %arg8: memref<32x32xf32, #tpu.memory_space<vmem>>, %arg9: memref<32x1xf32, #tpu.memory_space<vmem>>, %arg10: memref<16xf32, #tpu.memory_space<smem>>, %arg11: memref<32x1xf32, #tpu.memory_space<vmem>>, %arg12: memref<1x1xf32, #tpu.memory_space<vmem>>, %arg13: memref<1x512xf32, #tpu.memory_space<vmem>>) attributes {dimension_semantics = [#tpu.dimension_semantics<parallel>], iteration_bounds = array<i64: 2>, scalar_prefetch = 0 : i64, scratch_operands = 0 : i64, tpu.core_type = #tpu.core_type<tc>, window_params = [{transform_indices = @transform_0, window_bounds = array<i64: 2, 512>}, {pipeline_mode = #tpu.pipeline_mode<synchronous>, transform_indices = @transform_1, window_bounds = array<i64: 32, 2>}, {pipeline_mode = #tpu.pipeline_mode<synchronous>, transform_indices = @transform_2, window_bounds = array<i64: 32, 1>}, {transform_indices = @transform_3, window_bounds = array<i64: 16>}, {pipeline_mode = #tpu.pipeline_mode<synchronous>, transform_indices = @transform_4, window_bounds = array<i64: 32, 32>}, {pipeline_mode = #tpu.pipeline_mode<synchronous>, transform_indices = @transform_5, window_bounds = array<i64: 32, 1>}, {transform_indices = @transform_6, window_bounds = array<i64: 16>}, {pipeline_mode = #tpu.pipeline_mode<synchronous>, transform_indices = @transform_7, window_bounds = array<i64: 32, 32>}, {pipeline_mode = #tpu.pipeline_mode<synchronous>, transform_indices = @transform_8, window_bounds = array<i64: 32, 1>}, {transform_indices = @transform_9, window_bounds = array<i64: 16>}, {pipeline_mode = #tpu.pipeline_mode<synchronous>, transform_indices = @transform_10, window_bounds = array<i64: 32, 1>}, {pipeline_mode = #tpu.pipeline_mode<synchronous>, transform_indices = @transform_11, window_bounds = array<i64: 1, 1>}, {transform_indices = @transform_12, window_bounds = array<i64: 1, 512>}]} {
    %c0 = arith.constant 0 : index
    %c0_0 = arith.constant 0 : index
    %0 = vector.load %arg1[%c0, %c0_0] : memref<2x512xf32, #tpu.memory_space<vmem>>, vector<2x512xf32>
    %c0_1 = arith.constant 0 : index
    %c0_2 = arith.constant 0 : index
    %1 = vector.load %arg2[%c0_1, %c0_2] : memref<32x2xf32, #tpu.memory_space<vmem>>, vector<32x2xf32>
    %2 = vector.extract_strided_slice %1 {offsets = [0, 0], sizes = [32, 1], strides = [1, 1]} : vector<32x2xf32> to vector<32x1xf32>
    %3 = vector.extract_strided_slice %0 {offsets = [0, 0], sizes = [1, 512], strides = [1, 1]} : vector<2x512xf32> to vector<1x512xf32>
    %4 = vector.broadcast %2 : vector<32x1xf32> to vector<32x512xf32>
    %5 = vector.broadcast %3 : vector<1x512xf32> to vector<32x512xf32>
    %6 = arith.mulf %4, %5 : vector<32x512xf32>
    %7 = vector.extract_strided_slice %1 {offsets = [0, 1], sizes = [32, 1], strides = [1, 1]} : vector<32x2xf32> to vector<32x1xf32>
    %8 = vector.extract_strided_slice %0 {offsets = [1, 0], sizes = [1, 512], strides = [1, 1]} : vector<2x512xf32> to vector<1x512xf32>
    %9 = vector.broadcast %7 : vector<32x1xf32> to vector<32x512xf32>
    %10 = vector.broadcast %8 : vector<1x512xf32> to vector<32x512xf32>
    %11 = arith.mulf %9, %10 : vector<32x512xf32>
    %12 = arith.addf %6, %11 : vector<32x512xf32>
    %c0_3 = arith.constant 0 : index
    %c0_4 = arith.constant 0 : index
    %13 = vector.load %arg3[%c0_3, %c0_4] : memref<32x1xf32, #tpu.memory_space<vmem>>, vector<32x1xf32>
    %14 = vector.broadcast %13 : vector<32x1xf32> to vector<32x512xf32>
    %15 = arith.addf %12, %14 : vector<32x512xf32>
    %cst = arith.constant 1.000000e+00 : f32
    %16 = vector.broadcast %cst : f32 to vector<32x512xf32>
    %17 = arith.minimumf %15, %16 : vector<32x512xf32>
    %c0_5 = arith.constant 0 : index
    %18 = memref.load %arg4[%c0_5] : memref<16xf32, #tpu.memory_space<smem>>
    %c1 = arith.constant 1 : index
    %19 = memref.load %arg4[%c1] : memref<16xf32, #tpu.memory_space<smem>>
    %c0_6 = arith.constant 0 : index
    %20 = memref.load %arg4[%c0_6] : memref<16xf32, #tpu.memory_space<smem>>
    %21 = arith.subf %19, %20 : f32
    %cst_7 = arith.constant 7.500000e+00 : f32
    %22 = arith.mulf %21, %cst_7 : f32
    %cst_8 = arith.constant 0.000000e+00 : f32
    %23 = arith.subf %22, %cst_8 : f32
    %cst_9 = arith.constant -1.000000e+00 : f32
    %24 = arith.mulf %23, %cst_9 : f32
    %25 = arith.subf %18, %24 : f32
    %c2 = arith.constant 2 : index
    %26 = memref.load %arg4[%c2] : memref<16xf32, #tpu.memory_space<smem>>
    %c1_10 = arith.constant 1 : index
    %27 = memref.load %arg4[%c1_10] : memref<16xf32, #tpu.memory_space<smem>>
    %28 = arith.subf %26, %27 : f32
    %cst_11 = arith.constant 7.500000e+00 : f32
    %29 = arith.mulf %28, %cst_11 : f32
    %30 = arith.subf %29, %22 : f32
    %cst_12 = arith.constant -0.866666674 : f32
    %31 = arith.mulf %30, %cst_12 : f32
    %32 = arith.subf %25, %31 : f32
    %c3 = arith.constant 3 : index
    %33 = memref.load %arg4[%c3] : memref<16xf32, #tpu.memory_space<smem>>
    %c2_13 = arith.constant 2 : index
    %34 = memref.load %arg4[%c2_13] : memref<16xf32, #tpu.memory_space<smem>>
    %35 = arith.subf %33, %34 : f32
    %cst_14 = arith.constant 7.500000e+00 : f32
    %36 = arith.mulf %35, %cst_14 : f32
    %37 = arith.subf %36, %29 : f32
    %cst_15 = arith.constant -0.733333349 : f32
    %38 = arith.mulf %37, %cst_15 : f32
    %39 = arith.subf %32, %38 : f32
    %c4 = arith.constant 4 : index
    %40 = memref.load %arg4[%c4] : memref<16xf32, #tpu.memory_space<smem>>
    %c3_16 = arith.constant 3 : index
    %41 = memref.load %arg4[%c3_16] : memref<16xf32, #tpu.memory_space<smem>>
    %42 = arith.subf %40, %41 : f32
    %cst_17 = arith.constant 7.500000e+00 : f32
    %43 = arith.mulf %42, %cst_17 : f32
    %44 = arith.subf %43, %36 : f32
    %cst_18 = arith.constant -6.000000e-01 : f32
    %45 = arith.mulf %44, %cst_18 : f32
    %46 = arith.subf %39, %45 : f32
    %c5 = arith.constant 5 : index
    %47 = memref.load %arg4[%c5] : memref<16xf32, #tpu.memory_space<smem>>
    %c4_19 = arith.constant 4 : index
    %48 = memref.load %arg4[%c4_19] : memref<16xf32, #tpu.memory_space<smem>>
    %49 = arith.subf %47, %48 : f32
    %cst_20 = arith.constant 7.500000e+00 : f32
    %50 = arith.mulf %49, %cst_20 : f32
    %51 = arith.subf %50, %43 : f32
    %cst_21 = arith.constant -0.466666669 : f32
    %52 = arith.mulf %51, %cst_21 : f32
    %53 = arith.subf %46, %52 : f32
    %c6 = arith.constant 6 : index
    %54 = memref.load %arg4[%c6] : memref<16xf32, #tpu.memory_space<smem>>
    %c5_22 = arith.constant 5 : index
    %55 = memref.load %arg4[%c5_22] : memref<16xf32, #tpu.memory_space<smem>>
    %56 = arith.subf %54, %55 : f32
    %cst_23 = arith.constant 7.500000e+00 : f32
    %57 = arith.mulf %56, %cst_23 : f32
    %58 = arith.subf %57, %50 : f32
    %cst_24 = arith.constant -0.333333343 : f32
    %59 = arith.mulf %58, %cst_24 : f32
    %60 = arith.subf %53, %59 : f32
    %c7 = arith.constant 7 : index
    %61 = memref.load %arg4[%c7] : memref<16xf32, #tpu.memory_space<smem>>
    %c6_25 = arith.constant 6 : index
    %62 = memref.load %arg4[%c6_25] : memref<16xf32, #tpu.memory_space<smem>>
    %63 = arith.subf %61, %62 : f32
    %cst_26 = arith.constant 7.500000e+00 : f32
    %64 = arith.mulf %63, %cst_26 : f32
    %65 = arith.subf %64, %57 : f32
    %cst_27 = arith.constant -2.000000e-01 : f32
    %66 = arith.mulf %65, %cst_27 : f32
    %67 = arith.subf %60, %66 : f32
    %c8 = arith.constant 8 : index
    %68 = memref.load %arg4[%c8] : memref<16xf32, #tpu.memory_space<smem>>
    %c7_28 = arith.constant 7 : index
    %69 = memref.load %arg4[%c7_28] : memref<16xf32, #tpu.memory_space<smem>>
    %70 = arith.subf %68, %69 : f32
    %cst_29 = arith.constant 7.500000e+00 : f32
    %71 = arith.mulf %70, %cst_29 : f32
    %72 = arith.subf %71, %64 : f32
    %cst_30 = arith.constant -0.0666666701 : f32
    %73 = arith.mulf %72, %cst_30 : f32
    %74 = arith.subf %67, %73 : f32
    %c9 = arith.constant 9 : index
    %75 = memref.load %arg4[%c9] : memref<16xf32, #tpu.memory_space<smem>>
    %c8_31 = arith.constant 8 : index
    %76 = memref.load %arg4[%c8_31] : memref<16xf32, #tpu.memory_space<smem>>
    %77 = arith.subf %75, %76 : f32
    %cst_32 = arith.constant 7.500000e+00 : f32
    %78 = arith.mulf %77, %cst_32 : f32
    %79 = arith.subf %78, %71 : f32
    %cst_33 = arith.constant 0.0666666701 : f32
    %80 = arith.mulf %79, %cst_33 : f32
    %81 = arith.subf %74, %80 : f32
    %c10 = arith.constant 10 : index
    %82 = memref.load %arg4[%c10] : memref<16xf32, #tpu.memory_space<smem>>
    %c9_34 = arith.constant 9 : index
    %83 = memref.load %arg4[%c9_34] : memref<16xf32, #tpu.memory_space<smem>>
    %84 = arith.subf %82, %83 : f32
    %cst_35 = arith.constant 7.500000e+00 : f32
    %85 = arith.mulf %84, %cst_35 : f32
    %86 = arith.subf %85, %78 : f32
    %cst_36 = arith.constant 2.000000e-01 : f32
    %87 = arith.mulf %86, %cst_36 : f32
    %88 = arith.subf %81, %87 : f32
    %c11 = arith.constant 11 : index
    %89 = memref.load %arg4[%c11] : memref<16xf32, #tpu.memory_space<smem>>
    %c10_37 = arith.constant 10 : index
    %90 = memref.load %arg4[%c10_37] : memref<16xf32, #tpu.memory_space<smem>>
    %91 = arith.subf %89, %90 : f32
    %cst_38 = arith.constant 7.500000e+00 : f32
    %92 = arith.mulf %91, %cst_38 : f32
    %93 = arith.subf %92, %85 : f32
    %cst_39 = arith.constant 0.333333343 : f32
    %94 = arith.mulf %93, %cst_39 : f32
    %95 = arith.subf %88, %94 : f32
    %c12 = arith.constant 12 : index
    %96 = memref.load %arg4[%c12] : memref<16xf32, #tpu.memory_space<smem>>
    %c11_40 = arith.constant 11 : index
    %97 = memref.load %arg4[%c11_40] : memref<16xf32, #tpu.memory_space<smem>>
    %98 = arith.subf %96, %97 : f32
    %cst_41 = arith.constant 7.500000e+00 : f32
    %99 = arith.mulf %98, %cst_41 : f32
    %100 = arith.subf %99, %92 : f32
    %cst_42 = arith.constant 0.466666669 : f32
    %101 = arith.mulf %100, %cst_42 : f32
    %102 = arith.subf %95, %101 : f32
    %c13 = arith.constant 13 : index
    %103 = memref.load %arg4[%c13] : memref<16xf32, #tpu.memory_space<smem>>
    %c12_43 = arith.constant 12 : index
    %104 = memref.load %arg4[%c12_43] : memref<16xf32, #tpu.memory_space<smem>>
    %105 = arith.subf %103, %104 : f32
    %cst_44 = arith.constant 7.500000e+00 : f32
    %106 = arith.mulf %105, %cst_44 : f32
    %107 = arith.subf %106, %99 : f32
    %cst_45 = arith.constant 6.000000e-01 : f32
    %108 = arith.mulf %107, %cst_45 : f32
    %109 = arith.subf %102, %108 : f32
    %c14 = arith.constant 14 : index
    %110 = memref.load %arg4[%c14] : memref<16xf32, #tpu.memory_space<smem>>
    %c13_46 = arith.constant 13 : index
    %111 = memref.load %arg4[%c13_46] : memref<16xf32, #tpu.memory_space<smem>>
    %112 = arith.subf %110, %111 : f32
    %cst_47 = arith.constant 7.500000e+00 : f32
    %113 = arith.mulf %112, %cst_47 : f32
    %114 = arith.subf %113, %106 : f32
    %cst_48 = arith.constant 0.733333349 : f32
    %115 = arith.mulf %114, %cst_48 : f32
    %116 = arith.subf %109, %115 : f32
    %c15 = arith.constant 15 : index
    %117 = memref.load %arg4[%c15] : memref<16xf32, #tpu.memory_space<smem>>
    %c14_49 = arith.constant 14 : index
    %118 = memref.load %arg4[%c14_49] : memref<16xf32, #tpu.memory_space<smem>>
    %119 = arith.subf %117, %118 : f32
    %cst_50 = arith.constant 7.500000e+00 : f32
    %120 = arith.mulf %119, %cst_50 : f32
    %121 = arith.subf %120, %113 : f32
    %cst_51 = arith.constant 0.866666674 : f32
    %122 = arith.mulf %121, %cst_51 : f32
    %123 = arith.subf %116, %122 : f32
    %cst_52 = arith.constant -1.000000e+00 : f32
    %124 = vector.broadcast %cst_52 : f32 to vector<32x512xf32>
    %125 = arith.maximumf %17, %124 : vector<32x512xf32>
    %126 = vector.broadcast %23 : f32 to vector<32x512xf32>
    %127 = arith.mulf %126, %125 : vector<32x512xf32>
    %128 = vector.broadcast %123 : f32 to vector<32x512xf32>
    %129 = arith.addf %127, %128 : vector<32x512xf32>
    %cst_53 = arith.constant -0.866666674 : f32
    %130 = vector.broadcast %cst_53 : f32 to vector<32x512xf32>
    %131 = arith.maximumf %17, %130 : vector<32x512xf32>
    %132 = vector.broadcast %30 : f32 to vector<32x512xf32>
    %133 = arith.mulf %132, %131 : vector<32x512xf32>
    %134 = arith.addf %129, %133 : vector<32x512xf32>
    %cst_54 = arith.constant -0.733333349 : f32
    %135 = vector.broadcast %cst_54 : f32 to vector<32x512xf32>
    %136 = arith.maximumf %17, %135 : vector<32x512xf32>
    %137 = vector.broadcast %37 : f32 to vector<32x512xf32>
    %138 = arith.mulf %137, %136 : vector<32x512xf32>
    %139 = arith.addf %134, %138 : vector<32x512xf32>
    %cst_55 = arith.constant -6.000000e-01 : f32
    %140 = vector.broadcast %cst_55 : f32 to vector<32x512xf32>
    %141 = arith.maximumf %17, %140 : vector<32x512xf32>
    %142 = vector.broadcast %44 : f32 to vector<32x512xf32>
    %143 = arith.mulf %142, %141 : vector<32x512xf32>
    %144 = arith.addf %139, %143 : vector<32x512xf32>
    %cst_56 = arith.constant -0.466666669 : f32
    %145 = vector.broadcast %cst_56 : f32 to vector<32x512xf32>
    %146 = arith.maximumf %17, %145 : vector<32x512xf32>
    %147 = vector.broadcast %51 : f32 to vector<32x512xf32>
    %148 = arith.mulf %147, %146 : vector<32x512xf32>
    %149 = arith.addf %144, %148 : vector<32x512xf32>
    %cst_57 = arith.constant -0.333333343 : f32
    %150 = vector.broadcast %cst_57 : f32 to vector<32x512xf32>
    %151 = arith.maximumf %17, %150 : vector<32x512xf32>
    %152 = vector.broadcast %58 : f32 to vector<32x512xf32>
    %153 = arith.mulf %152, %151 : vector<32x512xf32>
    %154 = arith.addf %149, %153 : vector<32x512xf32>
    %cst_58 = arith.constant -2.000000e-01 : f32
    %155 = vector.broadcast %cst_58 : f32 to vector<32x512xf32>
    %156 = arith.maximumf %17, %155 : vector<32x512xf32>
    %157 = vector.broadcast %65 : f32 to vector<32x512xf32>
    %158 = arith.mulf %157, %156 : vector<32x512xf32>
    %159 = arith.addf %154, %158 : vector<32x512xf32>
    %cst_59 = arith.constant -0.0666666701 : f32
    %160 = vector.broadcast %cst_59 : f32 to vector<32x512xf32>
    %161 = arith.maximumf %17, %160 : vector<32x512xf32>
    %162 = vector.broadcast %72 : f32 to vector<32x512xf32>
    %163 = arith.mulf %162, %161 : vector<32x512xf32>
    %164 = arith.addf %159, %163 : vector<32x512xf32>
    %cst_60 = arith.constant 0.0666666701 : f32
    %165 = vector.broadcast %cst_60 : f32 to vector<32x512xf32>
    %166 = arith.maximumf %17, %165 : vector<32x512xf32>
    %167 = vector.broadcast %79 : f32 to vector<32x512xf32>
    %168 = arith.mulf %167, %166 : vector<32x512xf32>
    %169 = arith.addf %164, %168 : vector<32x512xf32>
    %cst_61 = arith.constant 2.000000e-01 : f32
    %170 = vector.broadcast %cst_61 : f32 to vector<32x512xf32>
    %171 = arith.maximumf %17, %170 : vector<32x512xf32>
    %172 = vector.broadcast %86 : f32 to vector<32x512xf32>
    %173 = arith.mulf %172, %171 : vector<32x512xf32>
    %174 = arith.addf %169, %173 : vector<32x512xf32>
    %cst_62 = arith.constant 0.333333343 : f32
    %175 = vector.broadcast %cst_62 : f32 to vector<32x512xf32>
    %176 = arith.maximumf %17, %175 : vector<32x512xf32>
    %177 = vector.broadcast %93 : f32 to vector<32x512xf32>
    %178 = arith.mulf %177, %176 : vector<32x512xf32>
    %179 = arith.addf %174, %178 : vector<32x512xf32>
    %cst_63 = arith.constant 0.466666669 : f32
    %180 = vector.broadcast %cst_63 : f32 to vector<32x512xf32>
    %181 = arith.maximumf %17, %180 : vector<32x512xf32>
    %182 = vector.broadcast %100 : f32 to vector<32x512xf32>
    %183 = arith.mulf %182, %181 : vector<32x512xf32>
    %184 = arith.addf %179, %183 : vector<32x512xf32>
    %cst_64 = arith.constant 6.000000e-01 : f32
    %185 = vector.broadcast %cst_64 : f32 to vector<32x512xf32>
    %186 = arith.maximumf %17, %185 : vector<32x512xf32>
    %187 = vector.broadcast %107 : f32 to vector<32x512xf32>
    %188 = arith.mulf %187, %186 : vector<32x512xf32>
    %189 = arith.addf %184, %188 : vector<32x512xf32>
    %cst_65 = arith.constant 0.733333349 : f32
    %190 = vector.broadcast %cst_65 : f32 to vector<32x512xf32>
    %191 = arith.maximumf %17, %190 : vector<32x512xf32>
    %192 = vector.broadcast %114 : f32 to vector<32x512xf32>
    %193 = arith.mulf %192, %191 : vector<32x512xf32>
    %194 = arith.addf %189, %193 : vector<32x512xf32>
    %cst_66 = arith.constant 0.866666674 : f32
    %195 = vector.broadcast %cst_66 : f32 to vector<32x512xf32>
    %196 = arith.maximumf %17, %195 : vector<32x512xf32>
    %197 = vector.broadcast %121 : f32 to vector<32x512xf32>
    %198 = arith.mulf %197, %196 : vector<32x512xf32>
    %199 = arith.addf %194, %198 : vector<32x512xf32>
    %c0_67 = arith.constant 0 : index
    %c0_68 = arith.constant 0 : index
    %200 = vector.load %arg5[%c0_67, %c0_68] : memref<32x32xf32, #tpu.memory_space<vmem>>, vector<32x32xf32>
    %cst_69 = arith.constant dense<0.000000e+00> : vector<32x512xf32>
    %201 = tpu.matmul %200, %199, %cst_69 {dimension_numbers = #tpu.dot_dimension_numbers<[1], [0], [0], [1], [0, 0, 1, 1], [], []>} : vector<32x32xf32>, vector<32x512xf32>, vector<32x512xf32> -> vector<32x512xf32>
    %c0_70 = arith.constant 0 : index
    %c0_71 = arith.constant 0 : index
    %202 = vector.load %arg6[%c0_70, %c0_71] : memref<32x1xf32, #tpu.memory_space<vmem>>, vector<32x1xf32>
    %203 = vector.broadcast %202 : vector<32x1xf32> to vector<32x512xf32>
    %204 = arith.addf %201, %203 : vector<32x512xf32>
    %cst_72 = arith.constant 1.000000e+00 : f32
    %205 = vector.broadcast %cst_72 : f32 to vector<32x512xf32>
    %206 = arith.minimumf %204, %205 : vector<32x512xf32>
    %c0_73 = arith.constant 0 : index
    %207 = memref.load %arg7[%c0_73] : memref<16xf32, #tpu.memory_space<smem>>
    %c1_74 = arith.constant 1 : index
    %208 = memref.load %arg7[%c1_74] : memref<16xf32, #tpu.memory_space<smem>>
    %c0_75 = arith.constant 0 : index
    %209 = memref.load %arg7[%c0_75] : memref<16xf32, #tpu.memory_space<smem>>
    %210 = arith.subf %208, %209 : f32
    %cst_76 = arith.constant 7.500000e+00 : f32
    %211 = arith.mulf %210, %cst_76 : f32
    %cst_77 = arith.constant 0.000000e+00 : f32
    %212 = arith.subf %211, %cst_77 : f32
    %cst_78 = arith.constant -1.000000e+00 : f32
    %213 = arith.mulf %212, %cst_78 : f32
    %214 = arith.subf %207, %213 : f32
    %c2_79 = arith.constant 2 : index
    %215 = memref.load %arg7[%c2_79] : memref<16xf32, #tpu.memory_space<smem>>
    %c1_80 = arith.constant 1 : index
    %216 = memref.load %arg7[%c1_80] : memref<16xf32, #tpu.memory_space<smem>>
    %217 = arith.subf %215, %216 : f32
    %cst_81 = arith.constant 7.500000e+00 : f32
    %218 = arith.mulf %217, %cst_81 : f32
    %219 = arith.subf %218, %211 : f32
    %cst_82 = arith.constant -0.866666674 : f32
    %220 = arith.mulf %219, %cst_82 : f32
    %221 = arith.subf %214, %220 : f32
    %c3_83 = arith.constant 3 : index
    %222 = memref.load %arg7[%c3_83] : memref<16xf32, #tpu.memory_space<smem>>
    %c2_84 = arith.constant 2 : index
    %223 = memref.load %arg7[%c2_84] : memref<16xf32, #tpu.memory_space<smem>>
    %224 = arith.subf %222, %223 : f32
    %cst_85 = arith.constant 7.500000e+00 : f32
    %225 = arith.mulf %224, %cst_85 : f32
    %226 = arith.subf %225, %218 : f32
    %cst_86 = arith.constant -0.733333349 : f32
    %227 = arith.mulf %226, %cst_86 : f32
    %228 = arith.subf %221, %227 : f32
    %c4_87 = arith.constant 4 : index
    %229 = memref.load %arg7[%c4_87] : memref<16xf32, #tpu.memory_space<smem>>
    %c3_88 = arith.constant 3 : index
    %230 = memref.load %arg7[%c3_88] : memref<16xf32, #tpu.memory_space<smem>>
    %231 = arith.subf %229, %230 : f32
    %cst_89 = arith.constant 7.500000e+00 : f32
    %232 = arith.mulf %231, %cst_89 : f32
    %233 = arith.subf %232, %225 : f32
    %cst_90 = arith.constant -6.000000e-01 : f32
    %234 = arith.mulf %233, %cst_90 : f32
    %235 = arith.subf %228, %234 : f32
    %c5_91 = arith.constant 5 : index
    %236 = memref.load %arg7[%c5_91] : memref<16xf32, #tpu.memory_space<smem>>
    %c4_92 = arith.constant 4 : index
    %237 = memref.load %arg7[%c4_92] : memref<16xf32, #tpu.memory_space<smem>>
    %238 = arith.subf %236, %237 : f32
    %cst_93 = arith.constant 7.500000e+00 : f32
    %239 = arith.mulf %238, %cst_93 : f32
    %240 = arith.subf %239, %232 : f32
    %cst_94 = arith.constant -0.466666669 : f32
    %241 = arith.mulf %240, %cst_94 : f32
    %242 = arith.subf %235, %241 : f32
    %c6_95 = arith.constant 6 : index
    %243 = memref.load %arg7[%c6_95] : memref<16xf32, #tpu.memory_space<smem>>
    %c5_96 = arith.constant 5 : index
    %244 = memref.load %arg7[%c5_96] : memref<16xf32, #tpu.memory_space<smem>>
    %245 = arith.subf %243, %244 : f32
    %cst_97 = arith.constant 7.500000e+00 : f32
    %246 = arith.mulf %245, %cst_97 : f32
    %247 = arith.subf %246, %239 : f32
    %cst_98 = arith.constant -0.333333343 : f32
    %248 = arith.mulf %247, %cst_98 : f32
    %249 = arith.subf %242, %248 : f32
    %c7_99 = arith.constant 7 : index
    %250 = memref.load %arg7[%c7_99] : memref<16xf32, #tpu.memory_space<smem>>
    %c6_100 = arith.constant 6 : index
    %251 = memref.load %arg7[%c6_100] : memref<16xf32, #tpu.memory_space<smem>>
    %252 = arith.subf %250, %251 : f32
    %cst_101 = arith.constant 7.500000e+00 : f32
    %253 = arith.mulf %252, %cst_101 : f32
    %254 = arith.subf %253, %246 : f32
    %cst_102 = arith.constant -2.000000e-01 : f32
    %255 = arith.mulf %254, %cst_102 : f32
    %256 = arith.subf %249, %255 : f32
    %c8_103 = arith.constant 8 : index
    %257 = memref.load %arg7[%c8_103] : memref<16xf32, #tpu.memory_space<smem>>
    %c7_104 = arith.constant 7 : index
    %258 = memref.load %arg7[%c7_104] : memref<16xf32, #tpu.memory_space<smem>>
    %259 = arith.subf %257, %258 : f32
    %cst_105 = arith.constant 7.500000e+00 : f32
    %260 = arith.mulf %259, %cst_105 : f32
    %261 = arith.subf %260, %253 : f32
    %cst_106 = arith.constant -0.0666666701 : f32
    %262 = arith.mulf %261, %cst_106 : f32
    %263 = arith.subf %256, %262 : f32
    %c9_107 = arith.constant 9 : index
    %264 = memref.load %arg7[%c9_107] : memref<16xf32, #tpu.memory_space<smem>>
    %c8_108 = arith.constant 8 : index
    %265 = memref.load %arg7[%c8_108] : memref<16xf32, #tpu.memory_space<smem>>
    %266 = arith.subf %264, %265 : f32
    %cst_109 = arith.constant 7.500000e+00 : f32
    %267 = arith.mulf %266, %cst_109 : f32
    %268 = arith.subf %267, %260 : f32
    %cst_110 = arith.constant 0.0666666701 : f32
    %269 = arith.mulf %268, %cst_110 : f32
    %270 = arith.subf %263, %269 : f32
    %c10_111 = arith.constant 10 : index
    %271 = memref.load %arg7[%c10_111] : memref<16xf32, #tpu.memory_space<smem>>
    %c9_112 = arith.constant 9 : index
    %272 = memref.load %arg7[%c9_112] : memref<16xf32, #tpu.memory_space<smem>>
    %273 = arith.subf %271, %272 : f32
    %cst_113 = arith.constant 7.500000e+00 : f32
    %274 = arith.mulf %273, %cst_113 : f32
    %275 = arith.subf %274, %267 : f32
    %cst_114 = arith.constant 2.000000e-01 : f32
    %276 = arith.mulf %275, %cst_114 : f32
    %277 = arith.subf %270, %276 : f32
    %c11_115 = arith.constant 11 : index
    %278 = memref.load %arg7[%c11_115] : memref<16xf32, #tpu.memory_space<smem>>
    %c10_116 = arith.constant 10 : index
    %279 = memref.load %arg7[%c10_116] : memref<16xf32, #tpu.memory_space<smem>>
    %280 = arith.subf %278, %279 : f32
    %cst_117 = arith.constant 7.500000e+00 : f32
    %281 = arith.mulf %280, %cst_117 : f32
    %282 = arith.subf %281, %274 : f32
    %cst_118 = arith.constant 0.333333343 : f32
    %283 = arith.mulf %282, %cst_118 : f32
    %284 = arith.subf %277, %283 : f32
    %c12_119 = arith.constant 12 : index
    %285 = memref.load %arg7[%c12_119] : memref<16xf32, #tpu.memory_space<smem>>
    %c11_120 = arith.constant 11 : index
    %286 = memref.load %arg7[%c11_120] : memref<16xf32, #tpu.memory_space<smem>>
    %287 = arith.subf %285, %286 : f32
    %cst_121 = arith.constant 7.500000e+00 : f32
    %288 = arith.mulf %287, %cst_121 : f32
    %289 = arith.subf %288, %281 : f32
    %cst_122 = arith.constant 0.466666669 : f32
    %290 = arith.mulf %289, %cst_122 : f32
    %291 = arith.subf %284, %290 : f32
    %c13_123 = arith.constant 13 : index
    %292 = memref.load %arg7[%c13_123] : memref<16xf32, #tpu.memory_space<smem>>
    %c12_124 = arith.constant 12 : index
    %293 = memref.load %arg7[%c12_124] : memref<16xf32, #tpu.memory_space<smem>>
    %294 = arith.subf %292, %293 : f32
    %cst_125 = arith.constant 7.500000e+00 : f32
    %295 = arith.mulf %294, %cst_125 : f32
    %296 = arith.subf %295, %288 : f32
    %cst_126 = arith.constant 6.000000e-01 : f32
    %297 = arith.mulf %296, %cst_126 : f32
    %298 = arith.subf %291, %297 : f32
    %c14_127 = arith.constant 14 : index
    %299 = memref.load %arg7[%c14_127] : memref<16xf32, #tpu.memory_space<smem>>
    %c13_128 = arith.constant 13 : index
    %300 = memref.load %arg7[%c13_128] : memref<16xf32, #tpu.memory_space<smem>>
    %301 = arith.subf %299, %300 : f32
    %cst_129 = arith.constant 7.500000e+00 : f32
    %302 = arith.mulf %301, %cst_129 : f32
    %303 = arith.subf %302, %295 : f32
    %cst_130 = arith.constant 0.733333349 : f32
    %304 = arith.mulf %303, %cst_130 : f32
    %305 = arith.subf %298, %304 : f32
    %c15_131 = arith.constant 15 : index
    %306 = memref.load %arg7[%c15_131] : memref<16xf32, #tpu.memory_space<smem>>
    %c14_132 = arith.constant 14 : index
    %307 = memref.load %arg7[%c14_132] : memref<16xf32, #tpu.memory_space<smem>>
    %308 = arith.subf %306, %307 : f32
    %cst_133 = arith.constant 7.500000e+00 : f32
    %309 = arith.mulf %308, %cst_133 : f32
    %310 = arith.subf %309, %302 : f32
    %cst_134 = arith.constant 0.866666674 : f32
    %311 = arith.mulf %310, %cst_134 : f32
    %312 = arith.subf %305, %311 : f32
    %cst_135 = arith.constant -1.000000e+00 : f32
    %313 = vector.broadcast %cst_135 : f32 to vector<32x512xf32>
    %314 = arith.maximumf %206, %313 : vector<32x512xf32>
    %315 = vector.broadcast %212 : f32 to vector<32x512xf32>
    %316 = arith.mulf %315, %314 : vector<32x512xf32>
    %317 = vector.broadcast %312 : f32 to vector<32x512xf32>
    %318 = arith.addf %316, %317 : vector<32x512xf32>
    %cst_136 = arith.constant -0.866666674 : f32
    %319 = vector.broadcast %cst_136 : f32 to vector<32x512xf32>
    %320 = arith.maximumf %206, %319 : vector<32x512xf32>
    %321 = vector.broadcast %219 : f32 to vector<32x512xf32>
    %322 = arith.mulf %321, %320 : vector<32x512xf32>
    %323 = arith.addf %318, %322 : vector<32x512xf32>
    %cst_137 = arith.constant -0.733333349 : f32
    %324 = vector.broadcast %cst_137 : f32 to vector<32x512xf32>
    %325 = arith.maximumf %206, %324 : vector<32x512xf32>
    %326 = vector.broadcast %226 : f32 to vector<32x512xf32>
    %327 = arith.mulf %326, %325 : vector<32x512xf32>
    %328 = arith.addf %323, %327 : vector<32x512xf32>
    %cst_138 = arith.constant -6.000000e-01 : f32
    %329 = vector.broadcast %cst_138 : f32 to vector<32x512xf32>
    %330 = arith.maximumf %206, %329 : vector<32x512xf32>
    %331 = vector.broadcast %233 : f32 to vector<32x512xf32>
    %332 = arith.mulf %331, %330 : vector<32x512xf32>
    %333 = arith.addf %328, %332 : vector<32x512xf32>
    %cst_139 = arith.constant -0.466666669 : f32
    %334 = vector.broadcast %cst_139 : f32 to vector<32x512xf32>
    %335 = arith.maximumf %206, %334 : vector<32x512xf32>
    %336 = vector.broadcast %240 : f32 to vector<32x512xf32>
    %337 = arith.mulf %336, %335 : vector<32x512xf32>
    %338 = arith.addf %333, %337 : vector<32x512xf32>
    %cst_140 = arith.constant -0.333333343 : f32
    %339 = vector.broadcast %cst_140 : f32 to vector<32x512xf32>
    %340 = arith.maximumf %206, %339 : vector<32x512xf32>
    %341 = vector.broadcast %247 : f32 to vector<32x512xf32>
    %342 = arith.mulf %341, %340 : vector<32x512xf32>
    %343 = arith.addf %338, %342 : vector<32x512xf32>
    %cst_141 = arith.constant -2.000000e-01 : f32
    %344 = vector.broadcast %cst_141 : f32 to vector<32x512xf32>
    %345 = arith.maximumf %206, %344 : vector<32x512xf32>
    %346 = vector.broadcast %254 : f32 to vector<32x512xf32>
    %347 = arith.mulf %346, %345 : vector<32x512xf32>
    %348 = arith.addf %343, %347 : vector<32x512xf32>
    %cst_142 = arith.constant -0.0666666701 : f32
    %349 = vector.broadcast %cst_142 : f32 to vector<32x512xf32>
    %350 = arith.maximumf %206, %349 : vector<32x512xf32>
    %351 = vector.broadcast %261 : f32 to vector<32x512xf32>
    %352 = arith.mulf %351, %350 : vector<32x512xf32>
    %353 = arith.addf %348, %352 : vector<32x512xf32>
    %cst_143 = arith.constant 0.0666666701 : f32
    %354 = vector.broadcast %cst_143 : f32 to vector<32x512xf32>
    %355 = arith.maximumf %206, %354 : vector<32x512xf32>
    %356 = vector.broadcast %268 : f32 to vector<32x512xf32>
    %357 = arith.mulf %356, %355 : vector<32x512xf32>
    %358 = arith.addf %353, %357 : vector<32x512xf32>
    %cst_144 = arith.constant 2.000000e-01 : f32
    %359 = vector.broadcast %cst_144 : f32 to vector<32x512xf32>
    %360 = arith.maximumf %206, %359 : vector<32x512xf32>
    %361 = vector.broadcast %275 : f32 to vector<32x512xf32>
    %362 = arith.mulf %361, %360 : vector<32x512xf32>
    %363 = arith.addf %358, %362 : vector<32x512xf32>
    %cst_145 = arith.constant 0.333333343 : f32
    %364 = vector.broadcast %cst_145 : f32 to vector<32x512xf32>
    %365 = arith.maximumf %206, %364 : vector<32x512xf32>
    %366 = vector.broadcast %282 : f32 to vector<32x512xf32>
    %367 = arith.mulf %366, %365 : vector<32x512xf32>
    %368 = arith.addf %363, %367 : vector<32x512xf32>
    %cst_146 = arith.constant 0.466666669 : f32
    %369 = vector.broadcast %cst_146 : f32 to vector<32x512xf32>
    %370 = arith.maximumf %206, %369 : vector<32x512xf32>
    %371 = vector.broadcast %289 : f32 to vector<32x512xf32>
    %372 = arith.mulf %371, %370 : vector<32x512xf32>
    %373 = arith.addf %368, %372 : vector<32x512xf32>
    %cst_147 = arith.constant 6.000000e-01 : f32
    %374 = vector.broadcast %cst_147 : f32 to vector<32x512xf32>
    %375 = arith.maximumf %206, %374 : vector<32x512xf32>
    %376 = vector.broadcast %296 : f32 to vector<32x512xf32>
    %377 = arith.mulf %376, %375 : vector<32x512xf32>
    %378 = arith.addf %373, %377 : vector<32x512xf32>
    %cst_148 = arith.constant 0.733333349 : f32
    %379 = vector.broadcast %cst_148 : f32 to vector<32x512xf32>
    %380 = arith.maximumf %206, %379 : vector<32x512xf32>
    %381 = vector.broadcast %303 : f32 to vector<32x512xf32>
    %382 = arith.mulf %381, %380 : vector<32x512xf32>
    %383 = arith.addf %378, %382 : vector<32x512xf32>
    %cst_149 = arith.constant 0.866666674 : f32
    %384 = vector.broadcast %cst_149 : f32 to vector<32x512xf32>
    %385 = arith.maximumf %206, %384 : vector<32x512xf32>
    %386 = vector.broadcast %310 : f32 to vector<32x512xf32>
    %387 = arith.mulf %386, %385 : vector<32x512xf32>
    %388 = arith.addf %383, %387 : vector<32x512xf32>
    %c0_150 = arith.constant 0 : index
    %c0_151 = arith.constant 0 : index
    %389 = vector.load %arg8[%c0_150, %c0_151] : memref<32x32xf32, #tpu.memory_space<vmem>>, vector<32x32xf32>
    %cst_152 = arith.constant dense<0.000000e+00> : vector<32x512xf32>
    %390 = tpu.matmul %389, %388, %cst_152 {dimension_numbers = #tpu.dot_dimension_numbers<[1], [0], [0], [1], [0, 0, 1, 1], [], []>} : vector<32x32xf32>, vector<32x512xf32>, vector<32x512xf32> -> vector<32x512xf32>
    %c0_153 = arith.constant 0 : index
    %c0_154 = arith.constant 0 : index
    %391 = vector.load %arg9[%c0_153, %c0_154] : memref<32x1xf32, #tpu.memory_space<vmem>>, vector<32x1xf32>
    %392 = vector.broadcast %391 : vector<32x1xf32> to vector<32x512xf32>
    %393 = arith.addf %390, %392 : vector<32x512xf32>
    %cst_155 = arith.constant 1.000000e+00 : f32
    %394 = vector.broadcast %cst_155 : f32 to vector<32x512xf32>
    %395 = arith.minimumf %393, %394 : vector<32x512xf32>
    %c0_156 = arith.constant 0 : index
    %396 = memref.load %arg10[%c0_156] : memref<16xf32, #tpu.memory_space<smem>>
    %c1_157 = arith.constant 1 : index
    %397 = memref.load %arg10[%c1_157] : memref<16xf32, #tpu.memory_space<smem>>
    %c0_158 = arith.constant 0 : index
    %398 = memref.load %arg10[%c0_158] : memref<16xf32, #tpu.memory_space<smem>>
    %399 = arith.subf %397, %398 : f32
    %cst_159 = arith.constant 7.500000e+00 : f32
    %400 = arith.mulf %399, %cst_159 : f32
    %cst_160 = arith.constant 0.000000e+00 : f32
    %401 = arith.subf %400, %cst_160 : f32
    %cst_161 = arith.constant -1.000000e+00 : f32
    %402 = arith.mulf %401, %cst_161 : f32
    %403 = arith.subf %396, %402 : f32
    %c2_162 = arith.constant 2 : index
    %404 = memref.load %arg10[%c2_162] : memref<16xf32, #tpu.memory_space<smem>>
    %c1_163 = arith.constant 1 : index
    %405 = memref.load %arg10[%c1_163] : memref<16xf32, #tpu.memory_space<smem>>
    %406 = arith.subf %404, %405 : f32
    %cst_164 = arith.constant 7.500000e+00 : f32
    %407 = arith.mulf %406, %cst_164 : f32
    %408 = arith.subf %407, %400 : f32
    %cst_165 = arith.constant -0.866666674 : f32
    %409 = arith.mulf %408, %cst_165 : f32
    %410 = arith.subf %403, %409 : f32
    %c3_166 = arith.constant 3 : index
    %411 = memref.load %arg10[%c3_166] : memref<16xf32, #tpu.memory_space<smem>>
    %c2_167 = arith.constant 2 : index
    %412 = memref.load %arg10[%c2_167] : memref<16xf32, #tpu.memory_space<smem>>
    %413 = arith.subf %411, %412 : f32
    %cst_168 = arith.constant 7.500000e+00 : f32
    %414 = arith.mulf %413, %cst_168 : f32
    %415 = arith.subf %414, %407 : f32
    %cst_169 = arith.constant -0.733333349 : f32
    %416 = arith.mulf %415, %cst_169 : f32
    %417 = arith.subf %410, %416 : f32
    %c4_170 = arith.constant 4 : index
    %418 = memref.load %arg10[%c4_170] : memref<16xf32, #tpu.memory_space<smem>>
    %c3_171 = arith.constant 3 : index
    %419 = memref.load %arg10[%c3_171] : memref<16xf32, #tpu.memory_space<smem>>
    %420 = arith.subf %418, %419 : f32
    %cst_172 = arith.constant 7.500000e+00 : f32
    %421 = arith.mulf %420, %cst_172 : f32
    %422 = arith.subf %421, %414 : f32
    %cst_173 = arith.constant -6.000000e-01 : f32
    %423 = arith.mulf %422, %cst_173 : f32
    %424 = arith.subf %417, %423 : f32
    %c5_174 = arith.constant 5 : index
    %425 = memref.load %arg10[%c5_174] : memref<16xf32, #tpu.memory_space<smem>>
    %c4_175 = arith.constant 4 : index
    %426 = memref.load %arg10[%c4_175] : memref<16xf32, #tpu.memory_space<smem>>
    %427 = arith.subf %425, %426 : f32
    %cst_176 = arith.constant 7.500000e+00 : f32
    %428 = arith.mulf %427, %cst_176 : f32
    %429 = arith.subf %428, %421 : f32
    %cst_177 = arith.constant -0.466666669 : f32
    %430 = arith.mulf %429, %cst_177 : f32
    %431 = arith.subf %424, %430 : f32
    %c6_178 = arith.constant 6 : index
    %432 = memref.load %arg10[%c6_178] : memref<16xf32, #tpu.memory_space<smem>>
    %c5_179 = arith.constant 5 : index
    %433 = memref.load %arg10[%c5_179] : memref<16xf32, #tpu.memory_space<smem>>
    %434 = arith.subf %432, %433 : f32
    %cst_180 = arith.constant 7.500000e+00 : f32
    %435 = arith.mulf %434, %cst_180 : f32
    %436 = arith.subf %435, %428 : f32
    %cst_181 = arith.constant -0.333333343 : f32
    %437 = arith.mulf %436, %cst_181 : f32
    %438 = arith.subf %431, %437 : f32
    %c7_182 = arith.constant 7 : index
    %439 = memref.load %arg10[%c7_182] : memref<16xf32, #tpu.memory_space<smem>>
    %c6_183 = arith.constant 6 : index
    %440 = memref.load %arg10[%c6_183] : memref<16xf32, #tpu.memory_space<smem>>
    %441 = arith.subf %439, %440 : f32
    %cst_184 = arith.constant 7.500000e+00 : f32
    %442 = arith.mulf %441, %cst_184 : f32
    %443 = arith.subf %442, %435 : f32
    %cst_185 = arith.constant -2.000000e-01 : f32
    %444 = arith.mulf %443, %cst_185 : f32
    %445 = arith.subf %438, %444 : f32
    %c8_186 = arith.constant 8 : index
    %446 = memref.load %arg10[%c8_186] : memref<16xf32, #tpu.memory_space<smem>>
    %c7_187 = arith.constant 7 : index
    %447 = memref.load %arg10[%c7_187] : memref<16xf32, #tpu.memory_space<smem>>
    %448 = arith.subf %446, %447 : f32
    %cst_188 = arith.constant 7.500000e+00 : f32
    %449 = arith.mulf %448, %cst_188 : f32
    %450 = arith.subf %449, %442 : f32
    %cst_189 = arith.constant -0.0666666701 : f32
    %451 = arith.mulf %450, %cst_189 : f32
    %452 = arith.subf %445, %451 : f32
    %c9_190 = arith.constant 9 : index
    %453 = memref.load %arg10[%c9_190] : memref<16xf32, #tpu.memory_space<smem>>
    %c8_191 = arith.constant 8 : index
    %454 = memref.load %arg10[%c8_191] : memref<16xf32, #tpu.memory_space<smem>>
    %455 = arith.subf %453, %454 : f32
    %cst_192 = arith.constant 7.500000e+00 : f32
    %456 = arith.mulf %455, %cst_192 : f32
    %457 = arith.subf %456, %449 : f32
    %cst_193 = arith.constant 0.0666666701 : f32
    %458 = arith.mulf %457, %cst_193 : f32
    %459 = arith.subf %452, %458 : f32
    %c10_194 = arith.constant 10 : index
    %460 = memref.load %arg10[%c10_194] : memref<16xf32, #tpu.memory_space<smem>>
    %c9_195 = arith.constant 9 : index
    %461 = memref.load %arg10[%c9_195] : memref<16xf32, #tpu.memory_space<smem>>
    %462 = arith.subf %460, %461 : f32
    %cst_196 = arith.constant 7.500000e+00 : f32
    %463 = arith.mulf %462, %cst_196 : f32
    %464 = arith.subf %463, %456 : f32
    %cst_197 = arith.constant 2.000000e-01 : f32
    %465 = arith.mulf %464, %cst_197 : f32
    %466 = arith.subf %459, %465 : f32
    %c11_198 = arith.constant 11 : index
    %467 = memref.load %arg10[%c11_198] : memref<16xf32, #tpu.memory_space<smem>>
    %c10_199 = arith.constant 10 : index
    %468 = memref.load %arg10[%c10_199] : memref<16xf32, #tpu.memory_space<smem>>
    %469 = arith.subf %467, %468 : f32
    %cst_200 = arith.constant 7.500000e+00 : f32
    %470 = arith.mulf %469, %cst_200 : f32
    %471 = arith.subf %470, %463 : f32
    %cst_201 = arith.constant 0.333333343 : f32
    %472 = arith.mulf %471, %cst_201 : f32
    %473 = arith.subf %466, %472 : f32
    %c12_202 = arith.constant 12 : index
    %474 = memref.load %arg10[%c12_202] : memref<16xf32, #tpu.memory_space<smem>>
    %c11_203 = arith.constant 11 : index
    %475 = memref.load %arg10[%c11_203] : memref<16xf32, #tpu.memory_space<smem>>
    %476 = arith.subf %474, %475 : f32
    %cst_204 = arith.constant 7.500000e+00 : f32
    %477 = arith.mulf %476, %cst_204 : f32
    %478 = arith.subf %477, %470 : f32
    %cst_205 = arith.constant 0.466666669 : f32
    %479 = arith.mulf %478, %cst_205 : f32
    %480 = arith.subf %473, %479 : f32
    %c13_206 = arith.constant 13 : index
    %481 = memref.load %arg10[%c13_206] : memref<16xf32, #tpu.memory_space<smem>>
    %c12_207 = arith.constant 12 : index
    %482 = memref.load %arg10[%c12_207] : memref<16xf32, #tpu.memory_space<smem>>
    %483 = arith.subf %481, %482 : f32
    %cst_208 = arith.constant 7.500000e+00 : f32
    %484 = arith.mulf %483, %cst_208 : f32
    %485 = arith.subf %484, %477 : f32
    %cst_209 = arith.constant 6.000000e-01 : f32
    %486 = arith.mulf %485, %cst_209 : f32
    %487 = arith.subf %480, %486 : f32
    %c14_210 = arith.constant 14 : index
    %488 = memref.load %arg10[%c14_210] : memref<16xf32, #tpu.memory_space<smem>>
    %c13_211 = arith.constant 13 : index
    %489 = memref.load %arg10[%c13_211] : memref<16xf32, #tpu.memory_space<smem>>
    %490 = arith.subf %488, %489 : f32
    %cst_212 = arith.constant 7.500000e+00 : f32
    %491 = arith.mulf %490, %cst_212 : f32
    %492 = arith.subf %491, %484 : f32
    %cst_213 = arith.constant 0.733333349 : f32
    %493 = arith.mulf %492, %cst_213 : f32
    %494 = arith.subf %487, %493 : f32
    %c15_214 = arith.constant 15 : index
    %495 = memref.load %arg10[%c15_214] : memref<16xf32, #tpu.memory_space<smem>>
    %c14_215 = arith.constant 14 : index
    %496 = memref.load %arg10[%c14_215] : memref<16xf32, #tpu.memory_space<smem>>
    %497 = arith.subf %495, %496 : f32
    %cst_216 = arith.constant 7.500000e+00 : f32
    %498 = arith.mulf %497, %cst_216 : f32
    %499 = arith.subf %498, %491 : f32
    %cst_217 = arith.constant 0.866666674 : f32
    %500 = arith.mulf %499, %cst_217 : f32
    %501 = arith.subf %494, %500 : f32
    %cst_218 = arith.constant -1.000000e+00 : f32
    %502 = vector.broadcast %cst_218 : f32 to vector<32x512xf32>
    %503 = arith.maximumf %395, %502 : vector<32x512xf32>
    %504 = vector.broadcast %401 : f32 to vector<32x512xf32>
    %505 = arith.mulf %504, %503 : vector<32x512xf32>
    %506 = vector.broadcast %501 : f32 to vector<32x512xf32>
    %507 = arith.addf %505, %506 : vector<32x512xf32>
    %cst_219 = arith.constant -0.866666674 : f32
    %508 = vector.broadcast %cst_219 : f32 to vector<32x512xf32>
    %509 = arith.maximumf %395, %508 : vector<32x512xf32>
    %510 = vector.broadcast %408 : f32 to vector<32x512xf32>
    %511 = arith.mulf %510, %509 : vector<32x512xf32>
    %512 = arith.addf %507, %511 : vector<32x512xf32>
    %cst_220 = arith.constant -0.733333349 : f32
    %513 = vector.broadcast %cst_220 : f32 to vector<32x512xf32>
    %514 = arith.maximumf %395, %513 : vector<32x512xf32>
    %515 = vector.broadcast %415 : f32 to vector<32x512xf32>
    %516 = arith.mulf %515, %514 : vector<32x512xf32>
    %517 = arith.addf %512, %516 : vector<32x512xf32>
    %cst_221 = arith.constant -6.000000e-01 : f32
    %518 = vector.broadcast %cst_221 : f32 to vector<32x512xf32>
    %519 = arith.maximumf %395, %518 : vector<32x512xf32>
    %520 = vector.broadcast %422 : f32 to vector<32x512xf32>
    %521 = arith.mulf %520, %519 : vector<32x512xf32>
    %522 = arith.addf %517, %521 : vector<32x512xf32>
    %cst_222 = arith.constant -0.466666669 : f32
    %523 = vector.broadcast %cst_222 : f32 to vector<32x512xf32>
    %524 = arith.maximumf %395, %523 : vector<32x512xf32>
    %525 = vector.broadcast %429 : f32 to vector<32x512xf32>
    %526 = arith.mulf %525, %524 : vector<32x512xf32>
    %527 = arith.addf %522, %526 : vector<32x512xf32>
    %cst_223 = arith.constant -0.333333343 : f32
    %528 = vector.broadcast %cst_223 : f32 to vector<32x512xf32>
    %529 = arith.maximumf %395, %528 : vector<32x512xf32>
    %530 = vector.broadcast %436 : f32 to vector<32x512xf32>
    %531 = arith.mulf %530, %529 : vector<32x512xf32>
    %532 = arith.addf %527, %531 : vector<32x512xf32>
    %cst_224 = arith.constant -2.000000e-01 : f32
    %533 = vector.broadcast %cst_224 : f32 to vector<32x512xf32>
    %534 = arith.maximumf %395, %533 : vector<32x512xf32>
    %535 = vector.broadcast %443 : f32 to vector<32x512xf32>
    %536 = arith.mulf %535, %534 : vector<32x512xf32>
    %537 = arith.addf %532, %536 : vector<32x512xf32>
    %cst_225 = arith.constant -0.0666666701 : f32
    %538 = vector.broadcast %cst_225 : f32 to vector<32x512xf32>
    %539 = arith.maximumf %395, %538 : vector<32x512xf32>
    %540 = vector.broadcast %450 : f32 to vector<32x512xf32>
    %541 = arith.mulf %540, %539 : vector<32x512xf32>
    %542 = arith.addf %537, %541 : vector<32x512xf32>
    %cst_226 = arith.constant 0.0666666701 : f32
    %543 = vector.broadcast %cst_226 : f32 to vector<32x512xf32>
    %544 = arith.maximumf %395, %543 : vector<32x512xf32>
    %545 = vector.broadcast %457 : f32 to vector<32x512xf32>
    %546 = arith.mulf %545, %544 : vector<32x512xf32>
    %547 = arith.addf %542, %546 : vector<32x512xf32>
    %cst_227 = arith.constant 2.000000e-01 : f32
    %548 = vector.broadcast %cst_227 : f32 to vector<32x512xf32>
    %549 = arith.maximumf %395, %548 : vector<32x512xf32>
    %550 = vector.broadcast %464 : f32 to vector<32x512xf32>
    %551 = arith.mulf %550, %549 : vector<32x512xf32>
    %552 = arith.addf %547, %551 : vector<32x512xf32>
    %cst_228 = arith.constant 0.333333343 : f32
    %553 = vector.broadcast %cst_228 : f32 to vector<32x512xf32>
    %554 = arith.maximumf %395, %553 : vector<32x512xf32>
    %555 = vector.broadcast %471 : f32 to vector<32x512xf32>
    %556 = arith.mulf %555, %554 : vector<32x512xf32>
    %557 = arith.addf %552, %556 : vector<32x512xf32>
    %cst_229 = arith.constant 0.466666669 : f32
    %558 = vector.broadcast %cst_229 : f32 to vector<32x512xf32>
    %559 = arith.maximumf %395, %558 : vector<32x512xf32>
    %560 = vector.broadcast %478 : f32 to vector<32x512xf32>
    %561 = arith.mulf %560, %559 : vector<32x512xf32>
    %562 = arith.addf %557, %561 : vector<32x512xf32>
    %cst_230 = arith.constant 6.000000e-01 : f32
    %563 = vector.broadcast %cst_230 : f32 to vector<32x512xf32>
    %564 = arith.maximumf %395, %563 : vector<32x512xf32>
    %565 = vector.broadcast %485 : f32 to vector<32x512xf32>
    %566 = arith.mulf %565, %564 : vector<32x512xf32>
    %567 = arith.addf %562, %566 : vector<32x512xf32>
    %cst_231 = arith.constant 0.733333349 : f32
    %568 = vector.broadcast %cst_231 : f32 to vector<32x512xf32>
    %569 = arith.maximumf %395, %568 : vector<32x512xf32>
    %570 = vector.broadcast %492 : f32 to vector<32x512xf32>
    %571 = arith.mulf %570, %569 : vector<32x512xf32>
    %572 = arith.addf %567, %571 : vector<32x512xf32>
    %cst_232 = arith.constant 0.866666674 : f32
    %573 = vector.broadcast %cst_232 : f32 to vector<32x512xf32>
    %574 = arith.maximumf %395, %573 : vector<32x512xf32>
    %575 = vector.broadcast %499 : f32 to vector<32x512xf32>
    %576 = arith.mulf %575, %574 : vector<32x512xf32>
    %577 = arith.addf %572, %576 : vector<32x512xf32>
    %c0_233 = arith.constant 0 : index
    %c0_234 = arith.constant 0 : index
    %578 = vector.load %arg11[%c0_233, %c0_234] : memref<32x1xf32, #tpu.memory_space<vmem>>, vector<32x1xf32>
    %579 = vector.broadcast %578 : vector<32x1xf32> to vector<32x512xf32>
    %580 = arith.mulf %577, %579 : vector<32x512xf32>
    %cst_235 = arith.constant dense<0.000000e+00> : vector<512xf32>
    %581 = vector.multi_reduction <add>, %580, %cst_235 [0] : vector<32x512xf32> to vector<512xf32>
    %582 = vector.shape_cast %581 : vector<512xf32> to vector<1x512xf32>
    %c0_236 = arith.constant 0 : index
    %c0_237 = arith.constant 0 : index
    %583 = vector.load %arg12[%c0_236, %c0_237] : memref<1x1xf32, #tpu.memory_space<vmem>>, vector<1x1xf32>
    %584 = vector.broadcast %583 : vector<1x1xf32> to vector<1x512xf32>
    %585 = arith.addf %582, %584 : vector<1x512xf32>
    %c0_238 = arith.constant 0 : index
    %c0_239 = arith.constant 0 : index
    %586 = vector.load %arg13[%c0_238, %c0_239] : memref<1x512xf32, #tpu.memory_space<vmem>>, vector<1x512xf32>
    tpu.vector_store %arg13[%c0_238, %c0_239], %585 {strides = array<i32>} : memref<1x512xf32, #tpu.memory_space<vmem>>, vector<1x512xf32>,
    return
  }
  func.func @transform_0(%arg0: i32) -> (i32, i32) {
    %c0_i32 = arith.constant 0 : i32
    %c0_i32_0 = arith.constant 0 : i32
    return %c0_i32, %arg0 : i32, i32
  }
  func.func @transform_1(%arg0: i32) -> (i32, i32) {
    %c0_i32 = arith.constant 0 : i32
    %c0_i32_0 = arith.constant 0 : i32
    %c0_i32_1 = arith.constant 0 : i32
    return %c0_i32, %c0_i32_0 : i32, i32
  }
  func.func @transform_2(%arg0: i32) -> (i32, i32) {
    %c0_i32 = arith.constant 0 : i32
    %c0_i32_0 = arith.constant 0 : i32
    %c0_i32_1 = arith.constant 0 : i32
    return %c0_i32, %c0_i32_0 : i32, i32
  }
  func.func @transform_3(%arg0: i32) -> i32 {
    %c0_i32 = arith.constant 0 : i32
    %c0_i32_0 = arith.constant 0 : i32
    return %c0_i32 : i32
  }
  func.func @transform_4(%arg0: i32) -> (i32, i32) {
    %c0_i32 = arith.constant 0 : i32
    %c0_i32_0 = arith.constant 0 : i32
    %c0_i32_1 = arith.constant 0 : i32
    return %c0_i32, %c0_i32_0 : i32, i32
  }
  func.func @transform_5(%arg0: i32) -> (i32, i32) {
    %c0_i32 = arith.constant 0 : i32
    %c0_i32_0 = arith.constant 0 : i32
    %c0_i32_1 = arith.constant 0 : i32
    return %c0_i32, %c0_i32_0 : i32, i32
  }
  func.func @transform_6(%arg0: i32) -> i32 {
    %c0_i32 = arith.constant 0 : i32
    %c0_i32_0 = arith.constant 0 : i32
    return %c0_i32 : i32
  }
  func.func @transform_7(%arg0: i32) -> (i32, i32) {
    %c0_i32 = arith.constant 0 : i32
    %c0_i32_0 = arith.constant 0 : i32
    %c0_i32_1 = arith.constant 0 : i32
    return %c0_i32, %c0_i32_0 : i32, i32
  }
  func.func @transform_8(%arg0: i32) -> (i32, i32) {
    %c0_i32 = arith.constant 0 : i32
    %c0_i32_0 = arith.constant 0 : i32
    %c0_i32_1 = arith.constant 0 : i32
    return %c0_i32, %c0_i32_0 : i32, i32
  }
  func.func @transform_9(%arg0: i32) -> i32 {
    %c0_i32 = arith.constant 0 : i32
    %c0_i32_0 = arith.constant 0 : i32
    return %c0_i32 : i32
  }
  func.func @transform_10(%arg0: i32) -> (i32, i32) {
    %c0_i32 = arith.constant 0 : i32
    %c0_i32_0 = arith.constant 0 : i32
    %c0_i32_1 = arith.constant 0 : i32
    return %c0_i32, %c0_i32_0 : i32, i32
  }
  func.func @transform_11(%arg0: i32) -> (i32, i32) {
    %c0_i32 = arith.constant 0 : i32
    %c0_i32_0 = arith.constant 0 : i32
    %c0_i32_1 = arith.constant 0 : i32
    return %c0_i32, %c0_i32_0 : i32, i32
  }
  func.func @transform_12(%arg0: i32) -> (i32, i32) {
    %c0_i32 = arith.constant 0 : i32
    %c0_i32_0 = arith.constant 0 : i32
    return %c0_i32, %arg0 : i32, i32
  }
}

</mosaic_0001>

<bundles_post_ra>
// kernel: tpu_custom_call.1
= control target key start
LH: loop header
LB: loop body
LE: loop exit
PB: predicated region body
PF: predicated region fallthrough
CT: control target
= control target key end

     0   :  { %s6785_s0 = inlined_call_operand.vmem [shape: f32[2,1024], index: 0, kind: input, shape index: {}]   ;;  %s6786_s1 = inlined_call_operand.vmem [shape: f32[32,2], index: 1, kind: input, shape index: {}]   ;;  %s6787_s2 = inlined_call_operand.vmem [shape: f32[32,1], index: 2, kind: input, shape index: {}]   ;;  %s6788_s3 = inlined_call_operand.vmem [shape: f32[16], index: 3, kind: input, shape index: {}]   ;;  %s6789_s4 = inlined_call_operand.vmem [shape: f32[32,32], index: 4, kind: input, shape index: {}]   ;;  %s6790_s5 = inlined_call_operand.vmem [shape: f32[32,1], index: 5, kind: input, shape index: {}]   ;;  %s6791_s6 = inlined_call_operand.vmem [shape: f32[16], index: 6, kind: input, shape index: {}]   ;;  %s6792_s7 = inlined_call_operand.vmem [shape: f32[32,32], index: 7, kind: input, shape index: {}]   ;;  %s6793_s8 = inlined_call_operand.vmem [shape: f32[32,1], index: 8, kind: input, shape index: {}]   ;;  %s6794_s9 = inlined_call_operand.vmem [shape: f32[16], index: 9, kind: input, shape index: {}]   ;;  %s6795_s10 = inlined_call_operand.vmem [shape: f32[32,1], index: 10, kind: input, shape index: {}]   ;;  %s6796_s11 = inlined_call_operand.<no memory space> [shape: f32[1,1], index: 11, kind: input, shape index: {}]   ;;  %s6797_s12 = inlined_call_operand.hbm [shape: f32[1,1024], index: 12, kind: output, shape index: {}]  }
   0x1   :  { %6839 = sst [smem:[#allocation39_spill]] %s6785_s0  ;;  %v17_v0 = vstv %s6796_s11 }
   0x2   :  { %6840 = sst [smem:[#allocation40_spill]] %s6786_s1  ;;  %18 = vst [vmem:[#allocation2] sm:$0x1] %v17_v0 }
   0x3   :  { %6841 = sst [smem:[#allocation41_spill]] %s6787_s2 }
   0x4   :  { %6842 = sst [smem:[#allocation42_spill]] %s6788_s3 }
   0x5   :  { %6843 = sst [smem:[#allocation43_spill]] %s6789_s4 }
   0x6   :  { %6844 = sst [smem:[#allocation44_spill]] %s6790_s5 }
   0x7   :  { %6845 = sst [smem:[#allocation45_spill]] %s6791_s6 }
   0x8   :  { %6846 = sst [smem:[#allocation46_spill]] %s6792_s7 }
   0x9   :  { %6847 = sst [smem:[#allocation47_spill]] %s6793_s8 }
   0xa   :  { %6848 = sst [smem:[#allocation48_spill]] %s6794_s9 }
   0xb   :  { %6849 = sst [smem:[#allocation49_spill]] %s6795_s10 }
   0xc   :  { %6850 = sst [smem:[#allocation50_spill]] %s6797_s12 }
   0xd   :  { %19 = vsyncpa [#allocation5], 0 }
   0xe   :  { %20 = vsyncpa [#allocation7], 0 }
   0xf   :  { %21 = vsyncpa [#allocation4], 0 }
  0x10   :  { %23 = vsyncpa [#allocation4 + $0x1], 0  ;;  %s4283_s23 = smov 0   ;;  %s4285_s24 = smov 0  }
  0x11   :  { %s4287_s25 = smov 0   ;;  %s4289_s26 = smov 0  }
  0x12 LB: > { %6851 = sst [smem:[#allocation13_spill]] %s4193_s23  ;;  %s4304_s11 = sadd.s32 4294967295, %s4205_s26   ;;  %s4205_s26 = sphi %s4289_s26, %s6947_s26   ;;  %s4201_s25 = sphi %s4287_s25, %s6950_s25   ;;  %s4197_s24 = sphi %s4285_s24, %s6949_s24   ;;  %s4193_s23 = sphi %s4283_s23, %s6948_s23  }
  0x13   : > { %6852 = sst [smem:[#allocation14_spill]] %s4197_s24  ;;  %s3850_s27 = sadd.s32 4294967294, %s4205_s26  }
  0x14   : > { %6853 = sst [smem:[#allocation15_spill]] %s4201_s25  ;;  %s4308_s28 = sadd.s32 1, %s4205_s26  }
  0x15   : > { %6854 = sst [smem:[#allocation16_spill]] %s4205_s26  ;;  %s293_s29 = sadd.s32 1, %s4201_s25 }
  0x16   : > { %6855 = sst [smem:[#allocation17_spill]] %s4304_s11  ;;  %s290_s30 = ssub.s32 %s4205_s26, %s4308_s28 }
  0x17   : > { %6856 = sst [smem:[#allocation18_spill]] %s4308_s28  ;;  %p303_p0 = scmp.ne.s32.totalorder %s4201_s25, %s4197_s24 }
  0x18   : > { %p291_p1 = scmp.eq.s32.totalorder %s290_s30, 0  ;;  %p304_p2 = scmp.eq.s32.totalorder %s4304_s11, 1 }
  0x19   : > { %p309_p3 = scmp.ne.s32.totalorder %s4197_s24, %s4193_s23  ;;  %p310_p4 = scmp.eq.s32.totalorder %s3850_s27, 1 }
  0x1a   : > { %s4319_s13 = scalar_select %p291_p1, %s4201_s25, %s293_s29  }
  0x1b   : > { %p4321_p5 = por %p304_p2, %p303_p0  ;;  %p4325_p6 = por %p310_p4, %p309_p3 }
  0x1c   : > { %6857 = sst [smem:[#allocation19_spill]] %s4319_s13  ;;  %p3851_p7 = scmp.ge.s32.totalorder %s4205_s26, 1 }
  0x1d   : > { %s6858_s14 = scalar_select %p4321_p5, 1, 0 }
  0x1e   : > { %s6860_s15 = scalar_select %p4325_p6, 1, 0 }
  0x1f   : > { %6859 = sst [smem:[#allocation20_spill]] %s6858_s14  ;;  %p317_p8 = scmp.lt.s32.totalorder %s4205_s26, 3 }
  0x20   : > { %6861 = sst [smem:[#allocation21_spill]] %s6860_s15  ;;  %p6798_p9 = scmp.eq.s32.totalorder %s4304_s11, 0 }
  0x21   : > { %p4332_p10 = pnand %p3851_p7, %p317_p8  ;;  %s6863_s6 = sld [smem:[#allocation45_spill]] }
  0x22   : > { %s6864_s3 = sld [smem:[#allocation42_spill]]  ;;  %s6866_s9 = sld [smem:[#allocation48_spill]] }
  0x23   : > { %s6862_s16 = scalar_select %p4332_p10, 1, 0 }
  0x24   : > { %p4024_p11 = pneg %p4332_p10 }
  0x26   : > { %p4346_p12 = pnand %p6798_p9, %p4024_p11 }
  0x27   : > { %s353_s19 = sshll.u32 %s6863_s6, 4  ;;  %s354_s19 = int_to_ptr.vmem [resolvable:$true] %s353_s19 }
  0x28   : > { %s336_s22 = sshll.u32 %s6864_s3, 4  ;;  %s370_s17 = sshll.u32 %s6866_s9, 4  ;;  %s337_s22 = int_to_ptr.vmem [resolvable:$true] %s336_s22  ;;  %s4353_s17 = int_to_ptr.vmem [resolvable:$true] %s370_s17 }
  0x29   : > { %s4090_s18 = scalar_lea.vmem %s354_s19, 16  ;;  %p4092_p0 = pneg %p4346_p12 }
  0x2a   : > { %p4091_p13 = scmp.ne.s32.totalorder %s354_s19, %s4090_s18  ;;  %p4098_p3 = scmp.lt.s32.totalorder %s354_s19, %s354_s19 }
  0x2b   : > { %p4099_p4 = scmp.lt.s32.totalorder %s4090_s18, %s4090_s18 }
  0x2c   : > { %p4093_p1 = pnand %p4092_p0, %p4091_p13 }
  0x2d   : > { %p4100_p7 = por %p4099_p4, %p4098_p3 }
  0x2e   : > { %p4094_p2 = pneg %p4093_p1 }
  0x30   : > { %p4101_p8 = pnand %p4100_p7, %p4094_p2 }
  0x32   : > { %4104 = shalt.err (!%p4101_p8)
}
  0x33   : > { %s4207_s20 = smov [#allocation6]   ;;  %s4105_s21 = scalar_lea.vmem %s337_s22, 16 }
  0x34   : > { %4030 = dma.vmem_to_smem (!%p4346_p12), %s354_s19, 16, %s4207_s20, [#allocation7]  }
  0x35   : > { %p4106_p11 = scmp.ne.s32.totalorder %s337_s22, %s4105_s21  ;;  %p4113_p5 = scmp.lt.s32.totalorder %s337_s22, %s337_s22 }
  0x36   : > { %p4114_p10 = scmp.lt.s32.totalorder %s4105_s21, %s4105_s21 }
  0x37   : > { %p4108_p9 = pnand %p4106_p11, %p4092_p0 }
  0x38   : > { %p4115_p13 = por %p4114_p10, %p4113_p5 }
  0x39   : > { %p4109_p6 = pneg %p4108_p9 }
  0x3b   : > { %p4116_p1 = pnand %p4115_p13, %p4109_p6 }
  0x3d   : > { %4119 = shalt.err (!%p4116_p1)
}
  0x3e   : > { %s4208_s29 = smov [#allocation3]   ;;  %s4120_s19 = scalar_lea.vmem %s4353_s17, 16 }
  0x3f   : > { %4027 = dma.vmem_to_smem (!%p4346_p12), %s337_s22, 16, %s4208_s29, [#allocation5]  }
  0x40   : > { %p4121_p2 = scmp.ne.s32.totalorder %s4353_s17, %s4120_s19  ;;  %p4128_p9 = scmp.lt.s32.totalorder %s4353_s17, %s4353_s17 }
  0x41   : > { %p4129_p7 = scmp.lt.s32.totalorder %s4120_s19, %s4120_s19 }
  0x42   : > { %p4123_p3 = pnand %p4121_p2, %p4092_p0 }
  0x43   : > { %p4130_p5 = por %p4129_p7, %p4128_p9 }
  0x44   : > { %p4124_p4 = pneg %p4123_p3 }
  0x46   : > { %p4131_p6 = pnand %p4130_p5, %p4124_p4 }
  0x48   : > { %4134 = shalt.err (!%p4131_p6)
}
  0x49   : > { %s4209_s30 = smov [#allocation8]   ;;  %p6867_p10 = scmp.ne.s32.totalorder %s6862_s16, 0 }
  0x4a   : > { %4033 = dma.vmem_to_smem (!%p4346_p12), %s4353_s17, 16, %s4209_s30, [#allocation7]  }
  0x4b   : > { %398 = sbr.rel (%p6867_p10) target bundleno = 1288 (0x508), region = 68 }
  0x52   : > { %p6868_p8 = scmp.eq.s32.totalorder %s4304_s11, 0 }
  0x54   : > { %4180 = dma.done.wait (%p6868_p8), [#allocation5], 16   ;;  %p6869_p0 = pmov %p6868_p8 }
  0x56   : > { %4182 = vsyncadd (%p6869_p0), [#allocation5], 4294967280  ;;  %p6870_p11 = pmov %p6869_p0 }
  0x57   : > { %p6871_p13 = pmov %p6869_p0 }
  0x58   : > { %4184 = dma.done.wait (%p6870_p11), [#allocation7], 32  }
  0x59   : > { %4186 = vsyncadd (%p6871_p13), [#allocation7], 4294967264 }
  0x5a   : > { %412 = sfence }
  0x5b   : > { %s6872_s1 = sld [smem:[#allocation40_spill]]  ;;  %v4210_v3 = vmov 1   ;;  %v4211_v5 = vmov 0   ;;  %s6873_s2 = sld [smem:[#allocation41_spill]]  ;;  %v3697_v21 = vld [vmem:[#allocation2] sm:$0x1]  ;;  %v6818_v24 = vlaneseq }
  0x5c   : > { %4086 = vset.pattern.permute.xlu0 %v4210_v3  ;;  %4084 = vset.pattern.permute.xlu1 %v4210_v3  ;;  %s6874_s5 = sld [smem:[#allocation44_spill]]  ;;  %s6875_s8 = sld [smem:[#allocation47_spill]]  ;;  %vm1528_vm0 = vcmask 261120  }
  0x5d   : > { %s6876_s10 = sld [smem:[#allocation49_spill]]  ;;  %s674_s19 = sld [smem:[#allocation3]]  ;;  %v4491_v25 = vshrl.u32 %v6818_v24, 7 }
  0x5e   : > { %s3863_s30 = sld [smem:[#allocation3 + $0x1]]  ;;  %s3864_s22 = sld [smem:[#allocation3 + $0x2]] }
  0x5f   : > { %s3865_s16 = sld [smem:[#allocation3 + $0x3]]  ;;  %s3866_s20 = sld [smem:[#allocation3 + $0x4]]  ;;  %6881 = vst [vmem:[#allocation26_spill] sm:$0xff] %v4491_v25  ;;  %v552_v26 = vsub.s32 1, %v4491_v25  ;;  %v556_v27 = vsub.s32 3, %v4491_v25  ;;  %v560_v28 = vsub.s32 5, %v4491_v25 }
  0x60   : > { %s3867_s21 = sld [smem:[#allocation3 + $0x5]]  ;;  %s3868_s27 = sld [smem:[#allocation3 + $0x6]]  ;;  %v564_v29 = vsub.s32 7, %v4491_v25  ;;  %v4504_v31 = vsub.s32 0, %v4491_v25  ;;  %v488_v32 = vsub.s32 2, %v4491_v25  ;;  %v492_v33 = vsub.s32 4, %v4491_v25 }
  0x61   : > { %v459_v1 = vld [vmem:[%s6872_s1 + $0x10] sm:$0xff]  ;;  %v457_v2 = vld [vmem:[%s6872_s1] sm:$0xff]  ;;  %v458_v4 = vld [vmem:[%s6872_s1 + $0x8] sm:$0xff]  ;;  %s3870_s23 = sld [smem:[#allocation3 + $0x8]]  ;;  %s6882_s0 = sld [smem:[#allocation39_spill]]  ;;  %v496_v34 = vsub.s32 6, %v4491_v25 }
  0x62   : > { %543 = vperm.xlu0 %4086, %v459_v1   ;;  %535 = vperm.xlu1 %4084, %v457_v2   ;;  %v460_v6 = vld [vmem:[%s6872_s1 + $0x18] sm:$0xff]  ;;  %v619_v7 = vld [vmem:[%s6873_s2 + $0x8] sm:$0xff]  ;;  %v618_v8 = vld [vmem:[%s6873_s2] sm:$0xff]  ;;  %6883 = vst [vmem:[#allocation27_spill] sm:$0xff] %v4504_v31 }
  0x63   : > { %v1504_v9 = vld [vmem:[%s6874_s5] sm:$0xff]  ;;  %v620_v10 = vld [vmem:[%s6873_s2 + $0x10] sm:$0xff]  ;;  %v621_v12 = vld [vmem:[%s6873_s2 + $0x18] sm:$0xff] }
  0x64   : > { %v1506_v11 = vld [vmem:[%s6874_s5 + $0x10] sm:$0xff]  ;;  %v2565_v13 = vld [vmem:[%s6875_s8] sm:$0xff]  ;;  %v1505_v14 = vld [vmem:[%s6874_s5 + $0x8] sm:$0xff]  ;;  %s676_s18 = ssub.f32 %s3863_s30, %s674_s19 }
  0x65   : > { %v2567_v15 = vld [vmem:[%s6875_s8 + $0x10] sm:$0xff]  ;;  %v1507_v16 = vld [vmem:[%s6874_s5 + $0x18] sm:$0xff]  ;;  %v3621_v17 = vld [vmem:[%s6876_s10] sm:$0xff]  ;;  %s681_s1 = ssub.f32 %s3864_s22, %s3863_s30  ;;  %s3869_s30 = sld [smem:[#allocation3 + $0x7]] }
  0x66   : > { %4087 = vset.pattern.permute.xlu0 %v4211_v5  ;;  %539 = vperm.xlu1 %4084, %v458_v4   ;;  %v2566_v18 = vld [vmem:[%s6875_s8 + $0x8] sm:$0xff]  ;;  %v3623_v19 = vld [vmem:[%s6876_s10 + $0x10] sm:$0xff]  ;;  %v2568_v20 = vld [vmem:[%s6875_s8 + $0x18] sm:$0xff]  ;;  %s4447_s2 = smul.f32 7.5, %s676_s18  ;;  %s687_s3 = ssub.f32 %s3865_s16, %s3864_s22 }
  0x67   : > { %463 = vperm.xlu0 %4087, %v457_v2   ;;  %v3622_v22 = vld [vmem:[%s6876_s10 + $0x8] sm:$0xff]  ;;  %v3624_v23 = vld [vmem:[%s6876_s10 + $0x18] sm:$0xff]  ;;  %s682_s29 = smul.f32 7.5, %s681_s1  ;;  %s693_s6 = ssub.f32 %s3866_s20, %s3865_s16 }
  0x68   : > { %s678_s5 = smul.f32 -1.0, %s4447_s2  ;;  %s699_s13 = ssub.f32 %s3867_s21, %s3866_s20  ;;  %v4520_v53 = vstv %s4447_s2 }
  0x69   : > { %s4451_s8 = ssub.f32 %s682_s29, %s4447_s2  ;;  %s688_s9 = smul.f32 7.5, %s687_s3 }
  0x6a   : > { %4085 = vset.pattern.permute.xlu1 %v4211_v5  ;;  %s679_s17 = ssub.f32 %s674_s19, %s678_s5  ;;  %s694_s10 = smul.f32 7.5, %s693_s6 }
  0x6b   : > { %468 = vperm.xlu0 %4087, %v458_v4   ;;  %478 = vperm.xlu1 %4085, %v460_v6   ;;  %s684_s25 = smul.f32 -0.8666667, %s4451_s8  ;;  %s4454_s28 = ssub.f32 %s688_s9, %s682_s29  ;;  %v4523_v54 = vstv %s4451_s8 }
  0x6c   : > { %s4456_s18 = ssub.f32 %s694_s10, %s688_s9  ;;  %s700_s1 = smul.f32 7.5, %s699_s13 }
  0x6d   : > { %s685_s22 = ssub.f32 %s679_s17, %s684_s25  ;;  %s690_s15 = smul.f32 -0.73333335, %s4454_s28  ;;  %v4526_v55 = vstv %s4454_s28 }
  0x6e   : > { %s705_s16 = ssub.f32 %s3868_s27, %s3867_s21  ;;  %s696_s5 = smul.f32 -0.6, %s4456_s18  ;;  %v4531_v58 = vstv %s4456_s18 }
  0x6f   : > { %473 = vperm.xlu0 %4087, %v459_v1   ;;  %4088 = vset.pattern.permute.xlu1 %v4210_v3  ;;  %s4459_s26 = ssub.f32 %s700_s1, %s694_s10  ;;  %s3871_s20 = sld [smem:[#allocation3 + $0x9]] }
  0x70   : > { %547 = vperm.xlu1 %4088, %v460_v6   ;;  %s691_s3 = ssub.f32 %s685_s22, %s690_s15  ;;  %s706_s6 = smul.f32 7.5, %s705_s16 }
  0x71   : > { %6877 = sst [smem:[#allocation22_spill]] %s4459_s26  ;;  %s702_s12 = smul.f32 -0.46666667, %s4459_s26 }
  0x72   : > { %s711_s19 = ssub.f32 %s3869_s30, %s3868_s27  ;;  %s3872_s13 = sld [smem:[#allocation3 + $0xa]] }
  0x73   : > { %629 = vperm.xlu0 %4087, %v619_v7   ;;  %s697_s29 = ssub.f32 %s691_s3, %s696_s5  ;;  %s3873_s15 = sld [smem:[#allocation3 + $0xb]] }
  0x74   : > { %4089 = vset.pattern.permute.xlu1 %v4211_v5  ;;  %s4463_s14 = ssub.f32 %s706_s6, %s700_s1  ;;  %s712_s9 = smul.f32 7.5, %s711_s19 }
  0x75   : > { %624 = vperm.xlu1 %4089, %v618_v8   ;;  %s717_s24 = ssub.f32 %s3870_s23, %s3869_s30  ;;  %s3874_s5 = sld [smem:[#allocation3 + $0xc]] }
  0x76   : > { %6878 = sst [smem:[#allocation23_spill]] %s4463_s14  ;;  %s708_s17 = smul.f32 -0.33333334, %s4463_s14 }
  0x77   : > { %1510 = vperm.xlu0 %4087, %v1504_v9   ;;  %s703_s25 = ssub.f32 %s697_s29, %s702_s12  ;;  %s718_s10 = smul.f32 7.5, %s717_s24 }
  0x78   : > { %s4466_s21 = ssub.f32 %s712_s9, %s706_s6  ;;  %s3875_s29 = sld [smem:[#allocation3 + $0xd]] }
  0x79   : > { %634 = vperm.xlu1 %4089, %v620_v10   ;;  %s723_s7 = ssub.f32 %s3871_s20, %s3870_s23  ;;  %s6890_s8 = sld [smem:[#allocation43_spill]] }
  0x7a   : > { %6879 = sst [smem:[#allocation24_spill]] %s4466_s21  ;;  %s714_s16 = smul.f32 -0.2, %s4466_s21 }
  0x7b   : > { %1520 = vperm.xlu0 %4087, %v1506_v11   ;;  %s709_s22 = ssub.f32 %s703_s25, %s708_s17  ;;  %s724_s1 = smul.f32 7.5, %s723_s7 }
  0x7c   : > { %s4469_s27 = ssub.f32 %s718_s10, %s712_s9  ;;  %s3876_s17 = sld [smem:[#allocation3 + $0xe]] }
  0x7d   : > { %639 = vperm.xlu1 %4089, %v621_v12   ;;  %s729_s3 = ssub.f32 %s3872_s13, %s3871_s20  ;;  %s3861_s21 = sshll.u32 %s4304_s11, 2 }
  0x7e   : > { %s715_s19 = ssub.f32 %s709_s22, %s714_s16  ;;  %s720_s30 = smul.f32 -0.06666667, %s4469_s27  ;;  %v4543_v63 = vstv %s4469_s27 }
  0x7f   : > { %2571 = vperm.xlu0 %4087, %v2565_v13   ;;  %s4472_s4 = ssub.f32 %s724_s1, %s718_s10  ;;  %s730_s12 = smul.f32 7.5, %s729_s3 }
  0x80   : > { %s735_s6 = ssub.f32 %s3873_s15, %s3872_s13  ;;  %s3877_s16 = sld [smem:[#allocation3 + $0xf]] }
  0x81   : > { %1515 = vperm.xlu1 %4089, %v1505_v14   ;;  %s721_s24 = ssub.f32 %s715_s19, %s720_s30  ;;  %s726_s23 = smul.f32 0.06666667, %s4472_s4  ;;  %v4546_v0 = vstv %s4472_s4 }
  0x82   : > { %s4475_s14 = ssub.f32 %s730_s12, %s724_s1  ;;  %s736_s9 = smul.f32 7.5, %s735_s6 }
  0x83   : > { %2581 = vperm.xlu0 %4087, %v2567_v15   ;;  %s741_s25 = ssub.f32 %s3874_s5, %s3873_s15  ;;  %p450_p12 = scmp.lt.s32.totalorder %s3861_s21, 7 }
  0x84   : > { %6880 = sst [smem:[#allocation25_spill]] %s4475_s14  ;;  %s732_s20 = smul.f32 0.2, %s4475_s14 }
  0x85   : > { %1525 = vperm.xlu1 %4089, %v1507_v16   ;;  %s727_s7 = ssub.f32 %s721_s24, %s726_s23  ;;  %s742_s10 = smul.f32 7.5, %s741_s25 }
  0x86   : > { %s4479_s26 = ssub.f32 %s736_s9, %s730_s12  ;;  %s6952_s21 = smov (!%p450_p12, %s3861_s21), 7 }
  0x87   : > { %3627 = vperm.xlu0 %4087, %v3621_v17   ;;  %s747_s22 = ssub.f32 %s3875_s29, %s3874_s5  ;;  %s3862_s23 = sshll.u32 %s6952_s21, 1 }
  0x88   : > { %s733_s13 = ssub.f32 %s727_s7, %s732_s20  ;;  %s738_s3 = smul.f32 0.33333334, %s4479_s26  ;;  %v4552_v2 = vstv %s4479_s26 }
  0x89   : > { %2576 = vperm.xlu1 %4089, %v2566_v18   ;;  %s4482_s19 = ssub.f32 %s742_s10, %s736_s9  ;;  %s748_s1 = smul.f32 7.5, %s747_s22 }
  0x8a   : > { %s753_s30 = ssub.f32 %s3876_s17, %s3875_s29  ;;  %s453_s20 = scalar_lea.vmem %s6882_s0, %s3862_s23 }
  0x8b   : > { %3637 = vperm.xlu0 %4087, %v3623_v19   ;;  %s739_s15 = ssub.f32 %s733_s13, %s738_s3  ;;  %s744_s6 = smul.f32 0.46666667, %s4482_s19  ;;  %v456_v30 = vld [vmem:[%s453_s20] sm:$0xff]  ;;  %v4555_v3 = vstv %s4482_s19 }
  0x8c   : > { %s4485_s11 = ssub.f32 %s748_s1, %s742_s10  ;;  %s754_s12 = smul.f32 7.5, %s753_s30  ;;  %v553_v35 = vrot.slane %v456_v30, %v552_v26  ;;  %v557_v36 = vrot.slane %v456_v30, %v556_v27  ;;  %v561_v37 = vrot.slane %v456_v30, %v560_v28  ;;  %v565_v38 = vrot.slane %v456_v30, %v564_v29 }
  0x8d   : > { %2586 = vperm.xlu1 %4089, %v2568_v20   ;;  %s759_s24 = ssub.f32 %s3877_s16, %s3876_s17  ;;  %v485_v39 = vrot.slane %v456_v30, %v4504_v31  ;;  %v489_v40 = vrot.slane %v456_v30, %v488_v32  ;;  %v493_v41 = vrot.slane %v456_v30, %v492_v33  ;;  %v497_v42 = vrot.slane %v456_v30, %v496_v34  ;;  %s6884_s16 = sld [smem:[#allocation22_spill]] }
  0x8e   : > { %s745_s5 = ssub.f32 %s739_s15, %s744_s6  ;;  %s750_s25 = smul.f32 0.6, %s4485_s11  ;;  %v573_v45 = vrot.slane %v553_v35, %v552_v26  ;;  %v4511_v46 = vrot.slane %v557_v36, %v552_v26  ;;  %v581_v47 = vrot.slane %v561_v37, %v552_v26  ;;  %v585_v48 = vrot.slane %v565_v38, %v552_v26 }
  0x8f   : > { %3700 = vperm.xlu0 %4087, %v3697_v21   ;;  %s4488_s14 = ssub.f32 %s754_s12, %s748_s1  ;;  %s760_s9 = smul.f32 7.5, %s759_s24  ;;  %v505_v49 = vrot.slane %v485_v39, %v4504_v31  ;;  %v4515_v50 = vrot.slane %v489_v40, %v4504_v31  ;;  %v513_v51 = vrot.slane %v493_v41, %v4504_v31  ;;  %v517_v52 = vrot.slane %v497_v42, %v4504_v31 }
  0x90   : > { %s751_s10 = ssub.f32 %s745_s5, %s750_s25  ;;  %s6885_s1 = sld [smem:[#allocation23_spill]]  ;;  %v4558_v4 = vstv %s4485_s11 }
  0x91   : > { %3632 = vperm.xlu1 %4089, %v3622_v22   ;;  %s756_s22 = smul.f32 0.73333335, %s4488_s14  ;;  %s4497_s13 = ssub.f32 %s760_s9, %s754_s12  ;;  %v4561_v5 = vstv %s4488_s14 }
  0x92   : > { %s6886_s30 = sld [smem:[#allocation24_spill]]  ;;  %s6887_s15 = sld [smem:[#allocation25_spill]] }
  0x93   : > { %s757_s21 = ssub.f32 %s751_s10, %s756_s22  ;;  %s762_s17 = smul.f32 0.8666667, %s4497_s13  ;;  %v4534_v59 = vstv %s6884_s16  ;;  %v4565_v9 = vstv %s4497_s13 }
  0x94   : > { %s1735_s19 = sld [smem:[#allocation6]]  ;;  %s3902_s6 = sld [smem:[#allocation6 + $0x1]] }
  0x95   : > { %3642 = vperm.xlu1 %4089, %v3624_v23   ;;  %s763_s3 = ssub.f32 %s757_s21, %s762_s17  ;;  %s3903_s12 = sld [smem:[#allocation6 + $0x2]] }
  0x96   : > { %v4537_v60 = vstv %s6885_s1  ;;  %s3904_s24 = sld [smem:[#allocation6 + $0x3]]  ;;  %s3905_s5 = sld [smem:[#allocation6 + $0x4]] }
  0x97   : > { %v4528_v57 = vstv %s763_s3  ;;  %s3906_s9 = sld [smem:[#allocation6 + $0x5]]  ;;  %s3907_s17 = sld [smem:[#allocation6 + $0x6]] }
  0x98   : > { %v4540_v62 = vstv %s6886_s30  ;;  %v4549_v1 = vstv %s6887_s15  ;;  %s3908_s2 = sld [smem:[#allocation6 + $0x7]]  ;;  %s3909_s18 = sld [smem:[#allocation6 + $0x8]] }
  0x9a   : > { %s1737_s23 = ssub.f32 %s3902_s6, %s1735_s19 }
  0x9b   : > { %s1742_s25 = ssub.f32 %s3903_s12, %s3902_s6 }
  0x9c   : > { %s5242_s29 = smul.f32 7.5, %s1737_s23  ;;  %s1748_s20 = ssub.f32 %s3904_s24, %s3903_s12 }
  0x9d   : > { %s1743_s7 = smul.f32 7.5, %s1742_s25  ;;  %s1754_s22 = ssub.f32 %s3905_s5, %s3904_s24 }
  0x9e   : > { %s1739_s10 = smul.f32 -1.0, %s5242_s29  ;;  %s1760_s16 = ssub.f32 %s3906_s9, %s3905_s5 }
  0x9f   : > { %s5246_s13 = ssub.f32 %s1743_s7, %s5242_s29  ;;  %s1749_s21 = smul.f32 7.5, %s1748_s20 }
  0xa0   : > { %s1740_s3 = ssub.f32 %s1735_s19, %s1739_s10  ;;  %s1755_s1 = smul.f32 7.5, %s1754_s22 }
  0xa1   : > { %s1745_s30 = smul.f32 -0.8666667, %s5246_s13  ;;  %s5249_s15 = ssub.f32 %s1749_s21, %s1743_s7 }
  0xa2   : > { %s5251_s4 = ssub.f32 %s1755_s1, %s1749_s21  ;;  %s1761_s26 = smul.f32 7.5, %s1760_s16 }
  0xa3   : > { %s1746_s11 = ssub.f32 %s1740_s3, %s1745_s30  ;;  %s1751_s28 = smul.f32 -0.73333335, %s5249_s15 }
  0xa4   : > { %s1766_s14 = ssub.f32 %s3907_s17, %s3906_s9  ;;  %s1757_s12 = smul.f32 -0.6, %s5251_s4 }
  0xa5   : > { %s5254_s27 = ssub.f32 %s1761_s26, %s1755_s1  ;;  %s3910_s23 = sld [smem:[#allocation6 + $0x9]] }
  0xa6   : > { %s1752_s6 = ssub.f32 %s1746_s11, %s1751_s28  ;;  %s1767_s19 = smul.f32 7.5, %s1766_s14 }
  0xa7   : > { %s1772_s24 = ssub.f32 %s3908_s2, %s3907_s17  ;;  %s1763_s25 = smul.f32 -0.46666667, %s5254_s27 }
  0xa8   : > { %s1758_s5 = ssub.f32 %s1752_s6, %s1757_s12  ;;  %s3911_s22 = sld [smem:[#allocation6 + $0xa]] }
  0xa9   : > { %s5258_s7 = ssub.f32 %s1767_s19, %s1761_s26  ;;  %s1773_s20 = smul.f32 7.5, %s1772_s24 }
  0xaa   : > { %s1778_s10 = ssub.f32 %s3909_s18, %s3908_s2  ;;  %s3912_s30 = sld [smem:[#allocation6 + $0xb]] }
  0xab   : > { %s1764_s21 = ssub.f32 %s1758_s5, %s1763_s25  ;;  %s1769_s16 = smul.f32 -0.33333334, %s5258_s7 }
  0xac   : > { %s5261_s9 = ssub.f32 %s1773_s20, %s1767_s19  ;;  %s1779_s3 = smul.f32 7.5, %s1778_s10 }
  0xad   : > { %s1784_s1 = ssub.f32 %s3910_s23, %s3909_s18  ;;  %s3913_s6 = sld [smem:[#allocation6 + $0xc]] }
  0xae   : > { %s1770_s11 = ssub.f32 %s1764_s21, %s1769_s16  ;;  %s1775_s28 = smul.f32 -0.2, %s5261_s9 }
  0xaf   : > { %s5264_s17 = ssub.f32 %s1779_s3, %s1773_s20  ;;  %s1785_s14 = smul.f32 7.5, %s1784_s1 }
  0xb0   : > { %s1790_s26 = ssub.f32 %s3911_s22, %s3910_s23  ;;  %s3914_s25 = sld [smem:[#allocation6 + $0xd]] }
  0xb1   : > { %6891 = sst [smem:[#allocation22_spill]] %s5264_s17  ;;  %s1781_s24 = smul.f32 -0.06666667, %s5264_s17 }
  0xb2   : > { %s1776_s12 = ssub.f32 %s1770_s11, %s1775_s28  ;;  %s1791_s5 = smul.f32 7.5, %s1790_s26 }
  0xb3   : > { %s5267_s2 = ssub.f32 %s1785_s14, %s1779_s3  ;;  %s3915_s16 = sld [smem:[#allocation6 + $0xe]] }
  0xb4   : > { %s1796_s19 = ssub.f32 %s3912_s30, %s3911_s22  ;;  %s3916_s28 = sld [smem:[#allocation6 + $0xf]] }
  0xb5   : > { %s1782_s0 = ssub.f32 %s1776_s12, %s1781_s24  ;;  %s1787_s10 = smul.f32 0.06666667, %s5267_s2 }
  0xb6   : > { %s5270_s18 = ssub.f32 %s1791_s5, %s1785_s14  ;;  %s1797_s21 = smul.f32 7.5, %s1796_s19 }
  0xb7   : > { %s1802_s20 = ssub.f32 %s3913_s6, %s3912_s30 }
  0xb8   : > { %s1793_s1 = smul.f32 0.2, %s5270_s18  ;;  %s5273_s23 = ssub.f32 %s1797_s21, %s1791_s5 }
  0xb9   : > { %s1803_s11 = smul.f32 7.5, %s1802_s20  ;;  %s1808_s3 = ssub.f32 %s3914_s25, %s3913_s6 }
  0xba   : > { %s1799_s26 = smul.f32 0.33333334, %s5273_s23  ;;  %s1814_s14 = ssub.f32 %s3915_s16, %s3914_s25 }
  0xbb   : > { %s5276_s22 = ssub.f32 %s1803_s11, %s1797_s21  ;;  %s1809_s12 = smul.f32 7.5, %s1808_s3 }
  0xbc   : > { %s1820_s5 = ssub.f32 %s3916_s28, %s3915_s16  ;;  %s6892_s20 = sld [smem:[#allocation22_spill]] }
  0xbd   : > { %s1805_s30 = smul.f32 0.46666667, %s5276_s22  ;;  %s5279_s19 = ssub.f32 %s1809_s12, %s1803_s11 }
  0xbe   : > { %s1821_s21 = smul.f32 7.5, %s1820_s5  ;;  %s2795_s16 = sld [smem:[#allocation8]] }
  0xbf   : > { %s3942_s28 = sld [smem:[#allocation8 + $0x2]] }
  0xe1   : > { %v536_v43 = vpop.permute.xlu1 %535  ;;  %v544_v44 = vpop.permute.xlu0 %543 }
  0xe2   : > { %v586_v6 = vmul.f32 %v573_v45, %v536_v43  ;;  %v587_v7 = vmul.f32 %v4511_v46, %v536_v43  ;;  %v588_v8 = vmul.f32 %v581_v47, %v536_v43  ;;  %v589_v10 = vmul.f32 %v585_v48, %v536_v43 }
  0xe3   : > { %v594_v11 = vmul.f32 %v573_v45, %v544_v44  ;;  %v595_v14 = vmul.f32 %v4511_v46, %v544_v44  ;;  %v596_v15 = vmul.f32 %v581_v47, %v544_v44  ;;  %v597_v16 = vmul.f32 %v585_v48, %v544_v44 }
  0xe5   : > { %v540_v56 = vpop.permute.xlu1 %539 }
  0xe6   : > { %v464_v61 = vpop.permute.xlu0 %463  ;;  %v590_v17 = vmul.f32 %v573_v45, %v540_v56  ;;  %v591_v20 = vmul.f32 %v4511_v46, %v540_v56  ;;  %v592_v26 = vmul.f32 %v581_v47, %v540_v56  ;;  %v593_v27 = vmul.f32 %v585_v48, %v540_v56 }
  0xe7   : > { %v518_v12 = vmul.f32 %v505_v49, %v464_v61  ;;  %v519_v13 = vmul.f32 %v4515_v50, %v464_v61  ;;  %v520_v28 = vmul.f32 %v513_v51, %v464_v61  ;;  %v521_v29 = vmul.f32 %v517_v52, %v464_v61 }
  0xe9   : > { %v602_v33 = vadd.f32 %v586_v6, %v518_v12  ;;  %v4571_v34 = vadd.f32 %v587_v7, %v519_v13  ;;  %v4580_v13 = vadd.f32 %v588_v8, %v520_v28  ;;  %v4596_v8 = vadd.f32 %v589_v10, %v521_v29 }
  0xea   : > { %v469_v18 = vpop.permute.xlu0 %468  ;;  %v479_v19 = vpop.permute.xlu1 %478 }
  0xeb   : > { %v522_v21 = vmul.f32 %v505_v49, %v469_v18  ;;  %v523_v22 = vmul.f32 %v4515_v50, %v469_v18  ;;  %v524_v23 = vmul.f32 %v513_v51, %v469_v18  ;;  %v525_v30 = vmul.f32 %v517_v52, %v469_v18 }
  0xec   : > { %v530_v32 = vmul.f32 %v505_v49, %v479_v19  ;;  %v532_v35 = vmul.f32 %v513_v51, %v479_v19  ;;  %v533_v36 = vmul.f32 %v517_v52, %v479_v19 }
  0xed   : > { %v606_v38 = vadd.f32 %v590_v17, %v522_v21  ;;  %v607_v39 = vadd.f32 %v591_v20, %v523_v22  ;;  %v608_v44 = vadd.f32 %v592_v26, %v524_v23  ;;  %v609_v18 = vadd.f32 %v593_v27, %v525_v30 }
  0xee   : > { %v474_v37 = vpop.permute.xlu0 %473 }
  0xef   : > { %v526_v40 = vmul.f32 %v505_v49, %v474_v37  ;;  %v528_v41 = vmul.f32 %v513_v51, %v474_v37  ;;  %v529_v42 = vmul.f32 %v517_v52, %v474_v37  ;;  %v548_v43 = vpop.permute.xlu1 %547  ;;  %v527_v24 = vmul.f32 %v4515_v50, %v474_v37 }
  0xf0   : > { %v598_v56 = vmul.f32 %v573_v45, %v548_v43  ;;  %v600_v25 = vmul.f32 %v581_v47, %v548_v43  ;;  %v601_v61 = vmul.f32 %v585_v48, %v548_v43 }
  0xf1   : > { %v4574_v31 = vadd.f32 %v594_v11, %v526_v40  ;;  %v4576_v6 = vadd.f32 %v596_v15, %v528_v41  ;;  %v4578_v7 = vadd.f32 %v597_v16, %v529_v42  ;;  %v4589_v11 = vmul.f32 %v4515_v50, %v479_v19 }
  0xf2   : > { %v630_v12 = vpop.permute.xlu0 %629  ;;  %v4582_v49 = vadd.f32 %v598_v56, %v530_v32  ;;  %v4584_v51 = vadd.f32 %v600_v25, %v532_v35  ;;  %v4586_v52 = vadd.f32 %v601_v61, %v533_v36  ;;  %v4592_v15 = vmul.f32 %v4511_v46, %v548_v43 }
  0xf3   : > { %v646_v17 = vadd.f32 %v630_v12, %v606_v38  ;;  %v647_v45 = vadd.f32 %v630_v12, %v607_v39  ;;  %v648_v47 = vadd.f32 %v630_v12, %v608_v44  ;;  %v649_v48 = vadd.f32 %v630_v12, %v609_v18 }
  0xf4   : > { %v4594_v16 = vpop.permute.xlu1 %624  ;;  %v4598_v20 = vadd.f32 %v595_v14, %v527_v24 }
  0xf5   : > { %v4600_v25 = vmin.f32 %v646_v17, 1.0  ;;  %v4602_v21 = vmin.f32 %v647_v45, 1.0  ;;  %v4604_v22 = vmin.f32 %v648_v47, 1.0  ;;  %v4606_v23 = vmin.f32 %v649_v48, 1.0 }
  0xf6   : > { %v3882_v26 = vclamps-f32 %v646_v17, 1.0  ;;  %v3883_v50 = vclamps-f32 %v647_v45, 1.0  ;;  %v3884_v19 = vclamps-f32 %v648_v47, 1.0  ;;  %v3885_v27 = vclamps-f32 %v649_v48, 1.0 }
  0xf7   : > { %v818_v46 = vmax.f32 %v4600_v25, -0.8666667  ;;  %v819_v28 = vmax.f32 %v4602_v21, -0.8666667  ;;  %v820_v10 = vmax.f32 %v4604_v22, -0.8666667  ;;  %v4612_v24 = vadd.f32 %v4594_v16, %v602_v33 }
  0xf8   : > { %v785_v14 = vmul.f32 %v3882_v26, %v4520_v53  ;;  %v786_v29 = vmul.f32 %v3883_v50, %v4520_v53  ;;  %v787_v30 = vmul.f32 %v3884_v19, %v4520_v53  ;;  %v788_v32 = vmul.f32 %v3885_v27, %v4520_v53 }
  0xf9   : > { %v821_v35 = vmax.f32 %v4606_v23, -0.8666667  ;;  %v835_v36 = vmul.f32 %v4523_v54, %v818_v46  ;;  %v836_v37 = vmul.f32 %v4523_v54, %v819_v28  ;;  %v837_v38 = vmul.f32 %v4523_v54, %v820_v10 }
  0xfa   : > { %v802_v39 = vadd.f32 %v4528_v57, %v785_v14  ;;  %v803_v33 = vadd.f32 %v4528_v57, %v786_v29  ;;  %v804_v40 = vadd.f32 %v4528_v57, %v787_v30  ;;  %v805_v41 = vadd.f32 %v4528_v57, %v788_v32 }
  0xfb   : > { %v838_v42 = vmul.f32 %v4523_v54, %v821_v35  ;;  %v867_v43 = vmax.f32 %v4600_v25, -0.73333335  ;;  %v868_v44 = vmax.f32 %v4602_v21, -0.73333335  ;;  %v869_v56 = vmax.f32 %v4604_v22, -0.73333335 }
  0xfc   : > { %v851_v61 = vadd.f32 %v835_v36, %v802_v39  ;;  %v852_v18 = vadd.f32 %v836_v37, %v803_v33  ;;  %v853_v12 = vadd.f32 %v837_v38, %v804_v40  ;;  %v870_v17 = vmax.f32 %v4606_v23, -0.73333335 }
  0xfd   : > { %v854_v45 = vadd.f32 %v838_v42, %v805_v41  ;;  %v884_v47 = vmul.f32 %v4526_v55, %v867_v43  ;;  %v885_v48 = vmul.f32 %v4526_v55, %v868_v44  ;;  %v886_v26 = vmul.f32 %v4526_v55, %v869_v56 }
  0xfe   : > { %v887_v50 = vmul.f32 %v4526_v55, %v870_v17  ;;  %v916_v19 = vmax.f32 %v4600_v25, -0.6  ;;  %v917_v27 = vmax.f32 %v4602_v21, -0.6  ;;  %v918_v46 = vmax.f32 %v4604_v22, -0.6 }
  0xff   : > { %v900_v28 = vadd.f32 %v884_v47, %v851_v61  ;;  %v901_v10 = vadd.f32 %v885_v48, %v852_v18  ;;  %v902_v14 = vadd.f32 %v886_v26, %v853_v12  ;;  %v919_v29 = vmax.f32 %v4606_v23, -0.6 }
 0x100   : > { %v903_v30 = vadd.f32 %v887_v50, %v854_v45  ;;  %v933_v32 = vmul.f32 %v4531_v58, %v916_v19  ;;  %v934_v35 = vmul.f32 %v4531_v58, %v917_v27  ;;  %v935_v36 = vmul.f32 %v4531_v58, %v918_v46 }
 0x101   : > { %v936_v37 = vmul.f32 %v4531_v58, %v919_v29  ;;  %v965_v38 = vmax.f32 %v4600_v25, -0.46666667  ;;  %v966_v39 = vmax.f32 %v4602_v21, -0.46666667  ;;  %v967_v33 = vmax.f32 %v4604_v22, -0.46666667 }
 0x102   : > { %v949_v40 = vadd.f32 %v933_v32, %v900_v28  ;;  %v950_v41 = vadd.f32 %v934_v35, %v901_v10  ;;  %v951_v42 = vadd.f32 %v935_v36, %v902_v14  ;;  %v968_v43 = vmax.f32 %v4606_v23, -0.46666667 }
 0x103   : > { %v4647_v44 = vadd.f32 %v936_v37, %v903_v30  ;;  %v982_v56 = vmul.f32 %v4534_v59, %v965_v38  ;;  %v983_v61 = vmul.f32 %v4534_v59, %v966_v39  ;;  %v4653_v18 = vadd.f32 %v4592_v15, %v4589_v11  ;;  %v4670_v15 = vpop.permute.xlu1 %634 }
 0x104   : > { %v984_v12 = vmul.f32 %v4534_v59, %v967_v33  ;;  %v643_v17 = vadd.f32 %v4594_v16, %v4571_v34  ;;  %v644_v45 = vadd.f32 %v4594_v16, %v4580_v13  ;;  %v645_v47 = vadd.f32 %v4594_v16, %v4596_v8 }
 0x105   : > { %v985_v48 = vmul.f32 %v4534_v59, %v968_v43  ;;  %v4663_v26 = vadd.f32 %v982_v56, %v949_v40  ;;  %v4665_v50 = vadd.f32 %v983_v61, %v950_v41  ;;  %v4668_v11 = vmin.f32 %v4612_v24, 1.0 }
 0x106   : > { %v4672_v19 = vadd.f32 %v984_v12, %v951_v42  ;;  %v4674_v34 = vmin.f32 %v643_v17, 1.0  ;;  %v4676_v27 = vmin.f32 %v644_v45, 1.0  ;;  %v4678_v13 = vmin.f32 %v645_v47, 1.0 }
 0x107   : > { %v3878_v16 = vclamps-f32 %v4612_v24, 1.0  ;;  %v3879_v8 = vclamps-f32 %v643_v17, 1.0  ;;  %v3880_v46 = vclamps-f32 %v644_v45, 1.0  ;;  %v3881_v28 = vclamps-f32 %v645_v47, 1.0 }
 0x108   : > { %6888 = vst [vmem:[#allocation28_spill] sm:$0xff] %v4672_v19  ;;  %v814_v10 = vmax.f32 %v4668_v11, -0.8666667  ;;  %v815_v14 = vmax.f32 %v4674_v34, -0.8666667  ;;  %v4686_v30 = vadd.f32 %v4670_v15, %v4574_v31 }
 0x109   : > { %v816_v29 = vmax.f32 %v4676_v27, -0.8666667  ;;  %v781_v32 = vmul.f32 %v3878_v16, %v4520_v53  ;;  %v782_v35 = vmul.f32 %v3879_v8, %v4520_v53  ;;  %v783_v36 = vmul.f32 %v3880_v46, %v4520_v53 }
 0x10a   : > { %v784_v24 = vmul.f32 %v3881_v28, %v4520_v53  ;;  %v817_v37 = vmax.f32 %v4678_v13, -0.8666667  ;;  %v831_v38 = vmul.f32 %v4523_v54, %v814_v10  ;;  %v832_v39 = vmul.f32 %v4523_v54, %v815_v14 }
 0x10b   : > { %v833_v33 = vmul.f32 %v4523_v54, %v816_v29  ;;  %v798_v40 = vadd.f32 %v4528_v57, %v781_v32  ;;  %v799_v31 = vadd.f32 %v4528_v57, %v782_v35  ;;  %v800_v41 = vadd.f32 %v4528_v57, %v783_v36 }
 0x10c   : > { %v801_v42 = vadd.f32 %v4528_v57, %v784_v24  ;;  %v834_v43 = vmul.f32 %v4523_v54, %v817_v37  ;;  %v863_v56 = vmax.f32 %v4668_v11, -0.73333335  ;;  %v864_v61 = vmax.f32 %v4674_v34, -0.73333335 }
 0x10d   : > { %v865_v12 = vmax.f32 %v4676_v27, -0.73333335  ;;  %v847_v17 = vadd.f32 %v831_v38, %v798_v40  ;;  %v848_v45 = vadd.f32 %v832_v39, %v799_v31  ;;  %v849_v47 = vadd.f32 %v833_v33, %v800_v41 }
 0x10e   : > { %v866_v16 = vmax.f32 %v4678_v13, -0.73333335  ;;  %v850_v8 = vadd.f32 %v834_v43, %v801_v42  ;;  %v880_v46 = vmul.f32 %v4526_v55, %v863_v56  ;;  %v881_v28 = vmul.f32 %v4526_v55, %v864_v61 }
 0x10f   : > { %v882_v10 = vmul.f32 %v4526_v55, %v865_v12  ;;  %v912_v29 = vmax.f32 %v4668_v11, -0.6  ;;  %v913_v32 = vmax.f32 %v4674_v34, -0.6  ;;  %v914_v35 = vmax.f32 %v4676_v27, -0.6 }
 0x110   : > { %v883_v14 = vmul.f32 %v4526_v55, %v866_v16  ;;  %v896_v36 = vadd.f32 %v880_v46, %v847_v17  ;;  %v897_v24 = vadd.f32 %v881_v28, %v848_v45  ;;  %v915_v38 = vmax.f32 %v4678_v13, -0.6 }
 0x111   : > { %v898_v37 = vadd.f32 %v882_v10, %v849_v47  ;;  %v929_v33 = vmul.f32 %v4531_v58, %v912_v29  ;;  %v930_v40 = vmul.f32 %v4531_v58, %v913_v32  ;;  %v931_v31 = vmul.f32 %v4531_v58, %v914_v35 }
 0x112   : > { %v899_v39 = vadd.f32 %v883_v14, %v850_v8  ;;  %v932_v41 = vmul.f32 %v4531_v58, %v915_v38  ;;  %v961_v42 = vmax.f32 %v4668_v11, -0.46666667  ;;  %v962_v43 = vmax.f32 %v4674_v34, -0.46666667 }
 0x113   : > { %v963_v56 = vmax.f32 %v4676_v27, -0.46666667  ;;  %v945_v61 = vadd.f32 %v929_v33, %v896_v36  ;;  %v946_v12 = vadd.f32 %v930_v40, %v897_v24  ;;  %v947_v17 = vadd.f32 %v931_v31, %v898_v37  ;;  %v4745_v36 = vpop.permute.xlu1 %639 }
 0x114   : > { %v964_v45 = vmax.f32 %v4678_v13, -0.46666667  ;;  %v4722_v47 = vadd.f32 %v985_v48, %v4647_v44  ;;  %v4724_v16 = vadd.f32 %v932_v41, %v899_v39  ;;  %v978_v8 = vmul.f32 %v4534_v59, %v961_v42 }
 0x115   : > { %v979_v46 = vmul.f32 %v4534_v59, %v962_v43  ;;  %v980_v28 = vmul.f32 %v4534_v59, %v963_v56  ;;  %v651_v10 = vadd.f32 %v4670_v15, %v4598_v20  ;;  %v652_v14 = vadd.f32 %v4670_v15, %v4576_v6 }
 0x116   : > { %v653_v29 = vadd.f32 %v4670_v15, %v4578_v7  ;;  %v4736_v44 = vmul.f32 %v4534_v59, %v964_v45  ;;  %v4738_v48 = vadd.f32 %v978_v8, %v945_v61  ;;  %v4743_v35 = vmin.f32 %v4686_v30, 1.0 }
 0x117   : > { %v4740_v32 = vadd.f32 %v979_v46, %v946_v12  ;;  %v4747_v24 = vadd.f32 %v980_v28, %v947_v17  ;;  %v4749_v20 = vmin.f32 %v651_v10, 1.0  ;;  %v4751_v6 = vmin.f32 %v652_v14, 1.0 }
 0x118   : > { %v4753_v37 = vmin.f32 %v653_v29, 1.0  ;;  %v3886_v7 = vclamps-f32 %v4686_v30, 1.0  ;;  %v3887_v15 = vclamps-f32 %v651_v10, 1.0  ;;  %v3888_v38 = vclamps-f32 %v652_v14, 1.0 }
 0x119   : > { %v3889_v39 = vclamps-f32 %v653_v29, 1.0  ;;  %v822_v33 = vmax.f32 %v4743_v35, -0.8666667  ;;  %v823_v40 = vmax.f32 %v4749_v20, -0.8666667  ;;  %v4761_v41 = vadd.f32 %v4745_v36, %v4582_v49 }
 0x11a   : > { %v824_v31 = vmax.f32 %v4751_v6, -0.8666667  ;;  %v789_v42 = vmul.f32 %v3886_v7, %v4520_v53  ;;  %v790_v43 = vmul.f32 %v3887_v15, %v4520_v53  ;;  %v791_v56 = vmul.f32 %v3888_v38, %v4520_v53 }
 0x11b   : > { %v792_v30 = vmul.f32 %v3889_v39, %v4520_v53  ;;  %v825_v61 = vmax.f32 %v4753_v37, -0.8666667  ;;  %v839_v12 = vmul.f32 %v4523_v54, %v822_v33  ;;  %v840_v17 = vmul.f32 %v4523_v54, %v823_v40 }
 0x11c   : > { %v841_v45 = vmul.f32 %v4523_v54, %v824_v31  ;;  %v806_v8 = vadd.f32 %v4528_v57, %v789_v42  ;;  %v807_v49 = vadd.f32 %v4528_v57, %v790_v43  ;;  %v808_v46 = vadd.f32 %v4528_v57, %v791_v56 }
 0x11d   : > { %v809_v28 = vadd.f32 %v4528_v57, %v792_v30  ;;  %v842_v10 = vmul.f32 %v4523_v54, %v825_v61  ;;  %v871_v14 = vmax.f32 %v4743_v35, -0.73333335  ;;  %v872_v29 = vmax.f32 %v4749_v20, -0.73333335 }
 0x11e   : > { %v873_v7 = vmax.f32 %v4751_v6, -0.73333335  ;;  %v855_v15 = vadd.f32 %v839_v12, %v806_v8  ;;  %v856_v38 = vadd.f32 %v840_v17, %v807_v49  ;;  %v857_v39 = vadd.f32 %v841_v45, %v808_v46 }
 0x11f   : > { %v874_v33 = vmax.f32 %v4753_v37, -0.73333335  ;;  %v858_v40 = vadd.f32 %v842_v10, %v809_v28  ;;  %v888_v31 = vmul.f32 %v4526_v55, %v871_v14  ;;  %v889_v42 = vmul.f32 %v4526_v55, %v872_v29 }
 0x120   : > { %v890_v43 = vmul.f32 %v4526_v55, %v873_v7  ;;  %v920_v30 = vmax.f32 %v4743_v35, -0.6  ;;  %v921_v61 = vmax.f32 %v4749_v20, -0.6  ;;  %v922_v19 = vmax.f32 %v4751_v6, -0.6 }
 0x121   : > { %v891_v56 = vmul.f32 %v4526_v55, %v874_v33  ;;  %v904_v12 = vadd.f32 %v888_v31, %v855_v15  ;;  %v905_v17 = vadd.f32 %v889_v42, %v856_v38  ;;  %v923_v8 = vmax.f32 %v4753_v37, -0.6 }
 0x122   : > { %v906_v45 = vadd.f32 %v890_v43, %v857_v39  ;;  %v937_v46 = vmul.f32 %v4531_v58, %v920_v30  ;;  %v938_v28 = vmul.f32 %v4531_v58, %v921_v61  ;;  %v939_v10 = vmul.f32 %v4531_v58, %v922_v19 }
 0x123   : > { %v907_v49 = vadd.f32 %v891_v56, %v858_v40  ;;  %v940_v14 = vmul.f32 %v4531_v58, %v923_v8  ;;  %v969_v29 = vmax.f32 %v4743_v35, -0.46666667  ;;  %v970_v7 = vmax.f32 %v4749_v20, -0.46666667 }
 0x124   : > { %v971_v33 = vmax.f32 %v4751_v6, -0.46666667  ;;  %v953_v15 = vadd.f32 %v937_v46, %v904_v12  ;;  %v954_v38 = vadd.f32 %v938_v28, %v905_v17  ;;  %v955_v39 = vadd.f32 %v939_v10, %v906_v45 }
 0x125   : > { %v972_v31 = vmax.f32 %v4753_v37, -0.46666667  ;;  %v956_v40 = vadd.f32 %v940_v14, %v907_v49  ;;  %v986_v42 = vmul.f32 %v4534_v59, %v969_v29  ;;  %v987_v43 = vmul.f32 %v4534_v59, %v970_v7 }
 0x126   : > { %v988_v19 = vmul.f32 %v4534_v59, %v971_v33  ;;  %v1018_v30 = vmax.f32 %v4743_v35, -0.33333334  ;;  %v1019_v61 = vmax.f32 %v4749_v20, -0.33333334  ;;  %v1020_v8 = vmax.f32 %v4751_v6, -0.33333334 }
 0x127   : > { %v989_v56 = vmul.f32 %v4534_v59, %v972_v31  ;;  %v4805_v12 = vadd.f32 %v4736_v44, %v4724_v16  ;;  %v1002_v17 = vadd.f32 %v986_v42, %v953_v15  ;;  %v1021_v49 = vmax.f32 %v4753_v37, -0.33333334 }
 0x128   : > { %v1004_v45 = vadd.f32 %v988_v19, %v955_v39  ;;  %v1003_v46 = vadd.f32 %v987_v43, %v954_v38  ;;  %v1035_v10 = vmul.f32 %v4537_v60, %v1018_v30  ;;  %v1037_v14 = vmul.f32 %v4537_v60, %v1020_v8 }
 0x129   : > { %v1005_v28 = vadd.f32 %v989_v56, %v956_v40  ;;  %v1038_v29 = vmul.f32 %v4537_v60, %v1021_v49  ;;  %v655_v7 = vadd.f32 %v4745_v36, %v4653_v18  ;;  %v656_v33 = vadd.f32 %v4745_v36, %v4584_v51 }
 0x12a   : > { %v657_v16 = vadd.f32 %v4745_v36, %v4586_v52  ;;  %v1036_v44 = vmul.f32 %v4537_v60, %v1019_v61  ;;  %v4818_v15 = vadd.f32 %v1035_v10, %v1002_v17  ;;  %v4820_v38 = vadd.f32 %v1037_v14, %v1004_v45 }
 0x12b   : > { %v4823_v39 = vmin.f32 %v4761_v41, 1.0  ;;  %v4825_v31 = vadd.f32 %v1038_v29, %v1005_v28  ;;  %v4827_v40 = vmin.f32 %v655_v7, 1.0  ;;  %v4829_v18 = vmin.f32 %v656_v33, 1.0 }
 0x12c   : > { %v4831_v42 = vmin.f32 %v657_v16, 1.0  ;;  %v3890_v51 = vclamps-f32 %v4761_v41, 1.0  ;;  %v3891_v52 = vclamps-f32 %v655_v7, 1.0  ;;  %v3892_v36 = vclamps-f32 %v656_v33, 1.0 }
 0x12d   : > { %v3893_v43 = vclamps-f32 %v657_v16, 1.0  ;;  %v4834_v19 = vadd.f32 %v1036_v44, %v1003_v46  ;;  %v826_v56 = vmax.f32 %v4823_v39, -0.8666667  ;;  %v827_v30 = vmax.f32 %v4827_v40, -0.8666667 }
 0x12e   : > { %v828_v61 = vmax.f32 %v4829_v18, -0.8666667  ;;  %v793_v8 = vmul.f32 %v3890_v51, %v4520_v53  ;;  %v794_v17 = vmul.f32 %v3891_v52, %v4520_v53  ;;  %v795_v45 = vmul.f32 %v3892_v36, %v4520_v53 }
 0x12f   : > { %v796_v49 = vmul.f32 %v3893_v43, %v4520_v53  ;;  %v829_v41 = vmax.f32 %v4831_v42, -0.8666667  ;;  %v843_v28 = vmul.f32 %v4523_v54, %v826_v56  ;;  %v844_v46 = vmul.f32 %v4523_v54, %v827_v30 }
 0x130   : > { %v845_v10 = vmul.f32 %v4523_v54, %v828_v61  ;;  %v810_v14 = vadd.f32 %v4528_v57, %v793_v8  ;;  %v811_v29 = vadd.f32 %v4528_v57, %v794_v17  ;;  %v812_v7 = vadd.f32 %v4528_v57, %v795_v45 }
 0x131   : > { %v813_v33 = vadd.f32 %v4528_v57, %v796_v49  ;;  %v846_v16 = vmul.f32 %v4523_v54, %v829_v41  ;;  %v875_v53 = vmax.f32 %v4823_v39, -0.73333335  ;;  %v876_v44 = vmax.f32 %v4827_v40, -0.73333335 }
 0x132   : > { %v877_v51 = vmax.f32 %v4829_v18, -0.73333335  ;;  %v859_v52 = vadd.f32 %v843_v28, %v810_v14  ;;  %v860_v36 = vadd.f32 %v844_v46, %v811_v29  ;;  %v861_v43 = vadd.f32 %v845_v10, %v812_v7 }
 0x133   : > { %v878_v56 = vmax.f32 %v4831_v42, -0.73333335  ;;  %v862_v30 = vadd.f32 %v846_v16, %v813_v33  ;;  %v892_v61 = vmul.f32 %v4526_v55, %v875_v53  ;;  %v893_v8 = vmul.f32 %v4526_v55, %v876_v44 }
 0x134   : > { %v894_v57 = vmul.f32 %v4526_v55, %v877_v51  ;;  %v924_v17 = vmax.f32 %v4823_v39, -0.6  ;;  %v925_v45 = vmax.f32 %v4827_v40, -0.6  ;;  %v926_v49 = vmax.f32 %v4829_v18, -0.6 }
 0x135   : > { %v895_v54 = vmul.f32 %v4526_v55, %v878_v56  ;;  %v908_v41 = vadd.f32 %v892_v61, %v859_v52  ;;  %v909_v28 = vadd.f32 %v893_v8, %v860_v36  ;;  %v927_v10 = vmax.f32 %v4831_v42, -0.6 }
 0x136   : > { %v910_v46 = vadd.f32 %v894_v57, %v861_v43  ;;  %v941_v29 = vmul.f32 %v4531_v58, %v924_v17  ;;  %v942_v7 = vmul.f32 %v4531_v58, %v925_v45  ;;  %v943_v33 = vmul.f32 %v4531_v58, %v926_v49 }
 0x137   : > { %v911_v14 = vadd.f32 %v895_v54, %v862_v30  ;;  %v944_v55 = vmul.f32 %v4531_v58, %v927_v10  ;;  %v973_v16 = vmax.f32 %v4823_v39, -0.46666667  ;;  %v974_v53 = vmax.f32 %v4827_v40, -0.46666667 }
 0x138   : > { %v975_v44 = vmax.f32 %v4829_v18, -0.46666667  ;;  %v957_v51 = vadd.f32 %v941_v29, %v908_v41  ;;  %v958_v52 = vadd.f32 %v942_v7, %v909_v28  ;;  %v959_v36 = vadd.f32 %v943_v33, %v910_v46 }
 0x139   : > { %v976_v43 = vmax.f32 %v4831_v42, -0.46666667  ;;  %v960_v56 = vadd.f32 %v944_v55, %v911_v14  ;;  %v990_v30 = vmul.f32 %v4534_v59, %v973_v16  ;;  %v991_v61 = vmul.f32 %v4534_v59, %v974_v53 }
 0x13a   : > { %v992_v8 = vmul.f32 %v4534_v59, %v975_v44  ;;  %v1022_v57 = vmax.f32 %v4823_v39, -0.33333334  ;;  %v1023_v54 = vmax.f32 %v4827_v40, -0.33333334  ;;  %v1024_v17 = vmax.f32 %v4829_v18, -0.33333334 }
 0x13b   : > { %v993_v58 = vmul.f32 %v4534_v59, %v976_v43  ;;  %v1006_v45 = vadd.f32 %v990_v30, %v957_v51  ;;  %v1007_v49 = vadd.f32 %v991_v61, %v958_v52  ;;  %v1025_v28 = vmax.f32 %v4831_v42, -0.33333334 }
 0x13c   : > { %v1008_v41 = vadd.f32 %v992_v8, %v959_v36  ;;  %v1039_v10 = vmul.f32 %v4537_v60, %v1022_v57  ;;  %v1040_v14 = vmul.f32 %v4537_v60, %v1023_v54  ;;  %v1041_v29 = vmul.f32 %v4537_v60, %v1024_v17 }
 0x13d   : > { %v1009_v46 = vadd.f32 %v993_v58, %v960_v56  ;;  %v1042_v59 = vmul.f32 %v4537_v60, %v1025_v28  ;;  %v1011_v7 = vmax.f32 %v4674_v34, -0.33333334  ;;  %v1015_v33 = vmax.f32 %v4602_v21, -0.33333334 }
 0x13e   : > { %v1060_v55 = vmax.f32 %v4674_v34, -0.2  ;;  %v4887_v16 = vadd.f32 %v1039_v10, %v1006_v45  ;;  %v4889_v53 = vadd.f32 %v1040_v14, %v1007_v49  ;;  %v4891_v44 = vadd.f32 %v1041_v29, %v1008_v41 }
 0x13f   : > { %v1064_v51 = vmax.f32 %v4602_v21, -0.2  ;;  %v4894_v52 = vadd.f32 %v1042_v59, %v1009_v46  ;;  %v1028_v36 = vmul.f32 %v4537_v60, %v1011_v7  ;;  %v1032_v43 = vmul.f32 %v4537_v60, %v1015_v33 }
 0x140   : > { %v1077_v56 = vmul.f32 %v4540_v62, %v1060_v55  ;;  %v1109_v61 = vmax.f32 %v4674_v34, -0.06666667  ;;  %v1113_v8 = vmax.f32 %v4602_v21, -0.06666667  ;;  %v1158_v58 = vmax.f32 %v4674_v34, 0.06666667 }
 0x141   : > { %v1081_v30 = vmul.f32 %v4540_v62, %v1064_v51  ;;  %v1044_v57 = vadd.f32 %v1028_v36, %v4740_v32  ;;  %v1048_v54 = vadd.f32 %v1032_v43, %v4665_v50  ;;  %v1162_v17 = vmax.f32 %v4602_v21, 0.06666667 }
 0x142   : > { %v1207_v45 = vmax.f32 %v4674_v34, 0.2  ;;  %v1126_v49 = vmul.f32 %v4543_v63, %v1109_v61  ;;  %v1130_v41 = vmul.f32 %v4543_v63, %v1113_v8  ;;  %v1175_v28 = vmul.f32 %v4546_v0, %v1158_v58 }
 0x143   : > { %v1211_v46 = vmax.f32 %v4602_v21, 0.2  ;;  %v1093_v10 = vadd.f32 %v1077_v56, %v1044_v57  ;;  %v1097_v14 = vadd.f32 %v1081_v30, %v1048_v54  ;;  %v1179_v29 = vmul.f32 %v4546_v0, %v1162_v17 }
 0x144   : > { %v1224_v32 = vmul.f32 %v4549_v1, %v1207_v45  ;;  %v1256_v59 = vmax.f32 %v4674_v34, 0.33333334  ;;  %v1260_v7 = vmax.f32 %v4602_v21, 0.33333334  ;;  %v1305_v33 = vmax.f32 %v4674_v34, 0.46666667 }
 0x145   : > { %v1228_v50 = vmul.f32 %v4549_v1, %v1211_v46  ;;  %v1142_v55 = vadd.f32 %v1126_v49, %v1093_v10  ;;  %v1146_v51 = vadd.f32 %v1130_v41, %v1097_v14  ;;  %v1309_v36 = vmax.f32 %v4602_v21, 0.46666667 }
 0x146   : > { %v1354_v43 = vmax.f32 %v4674_v34, 0.6  ;;  %v1273_v56 = vmul.f32 %v4552_v2, %v1256_v59  ;;  %v1277_v30 = vmul.f32 %v4552_v2, %v1260_v7  ;;  %v1322_v61 = vmul.f32 %v4555_v3, %v1305_v33 }
 0x147   : > { %v1358_v8 = vmax.f32 %v4602_v21, 0.6  ;;  %v1191_v58 = vadd.f32 %v1175_v28, %v1142_v55  ;;  %v1195_v57 = vadd.f32 %v1179_v29, %v1146_v51  ;;  %v1326_v54 = vmul.f32 %v4555_v3, %v1309_v36 }
 0x148   : > { %v1371_v17 = vmul.f32 %v4558_v4, %v1354_v43  ;;  %v1403_v49 = vmax.f32 %v4674_v34, 0.73333335  ;;  %v1407_v41 = vmax.f32 %v4602_v21, 0.73333335  ;;  %v1452_v46 = vmax.f32 %v4674_v34, 0.8666667 }
 0x149   : > { %v1375_v45 = vmul.f32 %v4558_v4, %v1358_v8  ;;  %v1240_v10 = vadd.f32 %v1224_v32, %v1191_v58  ;;  %v1244_v14 = vadd.f32 %v1228_v50, %v1195_v57  ;;  %v1456_v59 = vmax.f32 %v4602_v21, 0.8666667 }
 0x14a   : > { %v1013_v7 = vmax.f32 %v4678_v13, -0.33333334  ;;  %v1420_v28 = vmul.f32 %v4561_v5, %v1403_v49  ;;  %v1424_v29 = vmul.f32 %v4561_v5, %v1407_v41  ;;  %v1469_v33 = vmul.f32 %v4565_v9, %v1452_v46 }
 0x14b   : > { %v1017_v55 = vmax.f32 %v4606_v23, -0.33333334  ;;  %v1289_v51 = vadd.f32 %v1273_v56, %v1240_v10  ;;  %v1293_v36 = vadd.f32 %v1277_v30, %v1244_v14  ;;  %v1473_v43 = vmul.f32 %v4565_v9, %v1456_v59 }
 0x14c   : > { %v1030_v34 = vmul.f32 %v4537_v60, %v1013_v7  ;;  %v1062_v21 = vmax.f32 %v4678_v13, -0.2  ;;  %v1066_v50 = vmax.f32 %v4606_v23, -0.2  ;;  %v1111_v8 = vmax.f32 %v4678_v13, -0.06666667 }
 0x14d   : > { %v1034_v32 = vmul.f32 %v4537_v60, %v1017_v55  ;;  %v1338_v58 = vadd.f32 %v1322_v61, %v1289_v51  ;;  %v1342_v57 = vadd.f32 %v1326_v54, %v1293_v36  ;;  %v1115_v41 = vmax.f32 %v4606_v23, -0.06666667 }
 0x14e   : > { %v1046_v49 = vadd.f32 %v1030_v34, %v4805_v12  ;;  %v1079_v30 = vmul.f32 %v4540_v62, %v1062_v21  ;;  %v1083_v46 = vmul.f32 %v4540_v62, %v1066_v50  ;;  %v1128_v10 = vmul.f32 %v4543_v63, %v1111_v8 }
 0x14f   : > { %v1050_v56 = vadd.f32 %v1034_v32, %v4722_v47  ;;  %v1387_v14 = vadd.f32 %v1371_v17, %v1338_v58  ;;  %v1391_v59 = vadd.f32 %v1375_v45, %v1342_v57  ;;  %v1132_v7 = vmul.f32 %v4543_v63, %v1115_v41 }
 0x150   : > { %v1160_v55 = vmax.f32 %v4678_v13, 0.06666667  ;;  %v1095_v61 = vadd.f32 %v1079_v30, %v1046_v49  ;;  %v1164_v12 = vmax.f32 %v4606_v23, 0.06666667  ;;  %v1209_v51 = vmax.f32 %v4678_v13, 0.2 }
 0x151   : > { %v1099_v54 = vadd.f32 %v1083_v46, %v1050_v56  ;;  %v1436_v36 = vadd.f32 %v1420_v28, %v1387_v14  ;;  %v1440_v47 = vadd.f32 %v1424_v29, %v1391_v59  ;;  %v1213_v32 = vmax.f32 %v4606_v23, 0.2 }
 0x152   : > { %v1177_v34 = vmul.f32 %v4546_v0, %v1160_v55  ;;  %v1144_v21 = vadd.f32 %v1128_v10, %v1095_v61  ;;  %v1181_v17 = vmul.f32 %v4546_v0, %v1164_v12  ;;  %v1226_v45 = vmul.f32 %v4549_v1, %v1209_v51 }
 0x153   : > { %v1148_v50 = vadd.f32 %v1132_v7, %v1099_v54  ;;  %v1485_v8 = vadd.f32 %v1469_v33, %v1436_v36  ;;  %v1489_v58 = vadd.f32 %v1473_v43, %v1440_v47  ;;  %v1230_v57 = vmul.f32 %v4549_v1, %v1213_v32 }
 0x154   : > { %v1258_v49 = vmax.f32 %v4678_v13, 0.33333334  ;;  %v1193_v41 = vadd.f32 %v1177_v34, %v1144_v21  ;;  %v1262_v28 = vmax.f32 %v4606_v23, 0.33333334  ;;  %v1307_v29 = vmax.f32 %v4678_v13, 0.46666667 }
 0x155   : > { %v1197_v56 = vadd.f32 %v1181_v17, %v1148_v50  ;;  %v3978_v30 = vpack.c.bf16 %v1489_v58, %v1485_v8  ;;  %v1311_v10 = vmax.f32 %v4606_v23, 0.46666667  ;;  %v1356_v14 = vmax.f32 %v4678_v13, 0.6 }
 0x156   : > { %v1275_v46 = vmul.f32 %v4552_v2, %v1258_v49  ;;  %v1242_v59 = vadd.f32 %v1226_v45, %v1193_v41  ;;  %v1279_v43 = vmul.f32 %v4552_v2, %v1262_v28  ;;  %v1324_v7 = vmul.f32 %v4555_v3, %v1307_v29 }
 0x157   : > { %v1246_v33 = vadd.f32 %v1230_v57, %v1197_v56  ;;  %3979 = vmatprep.subr.bf16.mxu0 %v3978_v30  ;;  %v1328_v55 = vmul.f32 %v4555_v3, %v1311_v10  ;;  %v1360_v61 = vmax.f32 %v4606_v23, 0.6  ;;  %v1373_v54 = vmul.f32 %v4558_v4, %v1356_v14 }
 0x158   : > { %v1405_v12 = vmax.f32 %v4678_v13, 0.73333335  ;;  %v1291_v51 = vadd.f32 %v1275_v46, %v1242_v59  ;;  %v1409_v47 = vmax.f32 %v4606_v23, 0.73333335  ;;  %v1454_v34 = vmax.f32 %v4678_v13, 0.8666667 }
 0x159   : > { %v1295_v36 = vadd.f32 %v1279_v43, %v1246_v33  ;;  %v1377_v32 = vmul.f32 %v4558_v4, %v1360_v61  ;;  %v1458_v50 = vmax.f32 %v4606_v23, 0.8666667  ;;  %v1010_v17 = vmax.f32 %v4668_v11, -0.33333334 }
 0x15a   : > { %v1422_v21 = vmul.f32 %v4561_v5, %v1405_v12  ;;  %v1340_v45 = vadd.f32 %v1324_v7, %v1291_v51  ;;  %v1426_v58 = vmul.f32 %v4561_v5, %v1409_v47  ;;  %v1471_v57 = vmul.f32 %v4565_v9, %v1454_v34 }
 0x15b   : > { %v1344_v8 = vadd.f32 %v1328_v55, %v1295_v36  ;;  %v1475_v49 = vmul.f32 %v4565_v9, %v1458_v50  ;;  %v1014_v41 = vmax.f32 %v4600_v25, -0.33333334  ;;  %v1027_v13 = vmul.f32 %v4537_v60, %v1010_v17 }
 0x15c   : > { %v1059_v56 = vmax.f32 %v4668_v11, -0.2  ;;  %v1389_v28 = vadd.f32 %v1373_v54, %v1340_v45  ;;  %v1063_v23 = vmax.f32 %v4600_v25, -0.2  ;;  %v1108_v30 = vmax.f32 %v4668_v11, -0.06666667 }
 0x15d   : > { %v1393_v29 = vadd.f32 %v1377_v32, %v1344_v8  ;;  %v1031_v46 = vmul.f32 %v4537_v60, %v1014_v41  ;;  %v1043_v10 = vadd.f32 %v1027_v13, %v4738_v48  ;;  %v1112_v59 = vmax.f32 %v4600_v25, -0.06666667 }
 0x15e   : > { %v1076_v14 = vmul.f32 %v4540_v62, %v1059_v56  ;;  %v1438_v33 = vadd.f32 %v1422_v21, %v1389_v28  ;;  %v1080_v7 = vmul.f32 %v4540_v62, %v1063_v23  ;;  %v1125_v55 = vmul.f32 %v4543_v63, %v1108_v30 }
 0x15f   : > { %v1442_v43 = vadd.f32 %v1426_v58, %v1393_v29  ;;  %v1047_v61 = vadd.f32 %v1031_v46, %v4663_v26  ;;  %v1129_v12 = vmul.f32 %v4543_v63, %v1112_v59  ;;  %v1157_v51 = vmax.f32 %v4668_v11, 0.06666667 }
 0x160   : > { %v1092_v54 = vadd.f32 %v1076_v14, %v1043_v10  ;;  %v1487_v36 = vadd.f32 %v1471_v57, %v1438_v33  ;;  %v1161_v48 = vmax.f32 %v4600_v25, 0.06666667  ;;  %v1206_v34 = vmax.f32 %v4668_v11, 0.2 }
 0x161   : > { %v1491_v47 = vadd.f32 %v1475_v49, %v1442_v43  ;;  %v1096_v32 = vadd.f32 %v1080_v7, %v1047_v61  ;;  %v1174_v50 = vmul.f32 %v4546_v0, %v1157_v51  ;;  %v1210_v17 = vmax.f32 %v4600_v25, 0.2 }
 0x162   : > { %v1141_v21 = vadd.f32 %v1125_v55, %v1092_v54  ;;  %v1178_v26 = vmul.f32 %v4546_v0, %v1161_v48  ;;  %v1223_v8 = vmul.f32 %v4549_v1, %v1206_v34  ;;  %v1255_v58 = vmax.f32 %v4668_v11, 0.33333334 }
 0x163   : > { %v3986_v45 = vpack.c.bf16 %v1491_v47, %v1487_v36  ;;  %v1145_v41 = vadd.f32 %v1129_v12, %v1096_v32  ;;  %v1227_v49 = vmul.f32 %v4549_v1, %v1210_v17  ;;  %v1259_v13 = vmax.f32 %v4600_v25, 0.33333334 }
 0x164   : > { %v1190_v57 = vadd.f32 %v1174_v50, %v1141_v21  ;;  %v1272_v56 = vmul.f32 %v4552_v2, %v1255_v58  ;;  %v1304_v28 = vmax.f32 %v4668_v11, 0.46666667  ;;  %v1308_v29 = vmax.f32 %v4600_v25, 0.46666667 }
 0x165   : > { %3987 = vmatprep.subr.bf16.mxu1 %v3986_v45  ;;  %v1353_v23 = vmax.f32 %v4668_v11, 0.6  ;;  %v1194_v30 = vadd.f32 %v1178_v26, %v1145_v41  ;;  %v1276_v10 = vmul.f32 %v4552_v2, %v1259_v13  ;;  %v1357_v14 = vmax.f32 %v4600_v25, 0.6 }
 0x166   : > { %v1239_v46 = vadd.f32 %v1223_v8, %v1190_v57  ;;  %v1321_v59 = vmul.f32 %v4555_v3, %v1304_v28  ;;  %v1325_v33 = vmul.f32 %v4555_v3, %v1308_v29  ;;  %v1402_v7 = vmax.f32 %v4668_v11, 0.73333335 }
 0x167   : > { %v1370_v43 = vmul.f32 %v4558_v4, %v1353_v23  ;;  %v1243_v55 = vadd.f32 %v1227_v49, %v1194_v30  ;;  %v1374_v54 = vmul.f32 %v4558_v4, %v1357_v14  ;;  %v1406_v12 = vmax.f32 %v4600_v25, 0.73333335  ;;  %v6889_v23 = vld [vmem:[#allocation28_spill] sm:$0xff] }
 0x168   : > { %v1288_v61 = vadd.f32 %v1272_v56, %v1239_v46  ;;  %v1419_v51 = vmul.f32 %v4561_v5, %v1402_v7  ;;  %v1451_v36 = vmax.f32 %v4668_v11, 0.8666667  ;;  %v1455_v47 = vmax.f32 %v4600_v25, 0.8666667 }
 0x169   : > { %v1012_v48 = vmax.f32 %v4676_v27, -0.33333334  ;;  %v1292_v34 = vadd.f32 %v1276_v10, %v1243_v55  ;;  %v1423_v21 = vmul.f32 %v4561_v5, %v1406_v12  ;;  %v1016_v50 = vmax.f32 %v4604_v22, -0.33333334 }
 0x16a   : > { %v1337_v32 = vadd.f32 %v1321_v59, %v1288_v61  ;;  %v1468_v17 = vmul.f32 %v4565_v9, %v1451_v36  ;;  %v1472_v45 = vmul.f32 %v4565_v9, %v1455_v47  ;;  %v1061_v8 = vmax.f32 %v4676_v27, -0.2 }
 0x16b   : > { %v1029_v26 = vmul.f32 %v4537_v60, %v1012_v48  ;;  %v1341_v58 = vadd.f32 %v1325_v33, %v1292_v34  ;;  %v1033_v25 = vmul.f32 %v4537_v60, %v1016_v50  ;;  %v1065_v41 = vmax.f32 %v4604_v22, -0.2 }
 0x16c   : > { %v1386_v11 = vadd.f32 %v1370_v43, %v1337_v32  ;;  %v1078_v49 = vmul.f32 %v4540_v62, %v1061_v8  ;;  %v1110_v13 = vmax.f32 %v4676_v27, -0.06666667  ;;  %v1114_v56 = vmax.f32 %v4604_v22, -0.06666667 }
 0x16d   : > { %v1045_v57 = vadd.f32 %v1029_v26, %v4747_v24  ;;  %v1390_v28 = vadd.f32 %v1374_v54, %v1341_v58  ;;  %v1049_v30 = vadd.f32 %v1033_v25, %v6889_v23  ;;  %v1082_v46 = vmul.f32 %v4540_v62, %v1065_v41 }
 0x16e   : > { %v1435_v29 = vadd.f32 %v1419_v51, %v1386_v11  ;;  %v1127_v14 = vmul.f32 %v4543_v63, %v1110_v13  ;;  %v1131_v60 = vmul.f32 %v4543_v63, %v1114_v56  ;;  %v1159_v59 = vmax.f32 %v4676_v27, 0.06666667 }
 0x16f   : > { %v1094_v10 = vadd.f32 %v1078_v49, %v1045_v57  ;;  %v1439_v24 = vadd.f32 %v1423_v21, %v1390_v28  ;;  %v1098_v43 = vadd.f32 %v1082_v46, %v1049_v30  ;;  %v1163_v7 = vmax.f32 %v4604_v22, 0.06666667 }
 0x170   : > { %v1484_v33 = vadd.f32 %v1468_v17, %v1435_v29  ;;  %v1176_v61 = vmul.f32 %v4546_v0, %v1159_v59  ;;  %v1208_v54 = vmax.f32 %v4676_v27, 0.2  ;;  %v1212_v12 = vmax.f32 %v4604_v22, 0.2 }
 0x171   : > { %v1143_v55 = vadd.f32 %v1127_v14, %v1094_v10  ;;  %v1488_v51 = vadd.f32 %v1472_v45, %v1439_v24  ;;  %v1147_v36 = vadd.f32 %v1131_v60, %v1098_v43  ;;  %v1180_v47 = vmul.f32 %v4546_v0, %v1163_v7 }
 0x172   : > { %v1257_v48 = vmax.f32 %v4676_v27, 0.33333334  ;;  %v1225_v32 = vmul.f32 %v4549_v1, %v1208_v54  ;;  %v1229_v21 = vmul.f32 %v4549_v1, %v1212_v12  ;;  %v1261_v50 = vmax.f32 %v4604_v22, 0.33333334 }
 0x173   : > { %v1192_v34 = vadd.f32 %v1176_v61, %v1143_v55  ;;  %v3980_v17 = vpack.c.bf16 %v1488_v51, %v1484_v33  ;;  %v1196_v26 = vadd.f32 %v1180_v47, %v1147_v36  ;;  %v1306_v58 = vmax.f32 %v4676_v27, 0.46666667 }
 0x174   : > { %v1274_v8 = vmul.f32 %v4552_v2, %v1257_v48  ;;  %v1278_v45 = vmul.f32 %v4552_v2, %v1261_v50  ;;  %v1310_v25 = vmax.f32 %v4604_v22, 0.46666667  ;;  %v1355_v41 = vmax.f32 %v4676_v27, 0.6 }
 0x175   : > { %v1241_v11 = vadd.f32 %v1225_v32, %v1192_v34  ;;  %3981 = vmatpush1.bf16.msra.mxu0 %v3980_v17  ;;  %v1245_v57 = vadd.f32 %v1229_v21, %v1196_v26  ;;  %v1323_v49 = vmul.f32 %v4555_v3, %v1306_v58  ;;  %v1359_v13 = vmax.f32 %v4604_v22, 0.6 }
 0x176   : > { %v1404_v56 = vmax.f32 %v4676_v27, 0.73333335  ;;  %v1327_v29 = vmul.f32 %v4555_v3, %v1310_v25  ;;  %v1372_v23 = vmul.f32 %v4558_v4, %v1355_v41  ;;  %v1408_v30 = vmax.f32 %v4604_v22, 0.73333335 }
 0x177   : > { %v1290_v28 = vadd.f32 %v1274_v8, %v1241_v11  ;;  %v1294_v46 = vadd.f32 %v1278_v45, %v1245_v57  ;;  %v1376_v10 = vmul.f32 %v4558_v4, %v1359_v13  ;;  %v1453_v60 = vmax.f32 %v4676_v27, 0.8666667 }
 0x178   : > { %v1421_v14 = vmul.f32 %v4561_v5, %v1404_v56  ;;  %v1425_v24 = vmul.f32 %v4561_v5, %v1408_v30  ;;  %v1457_v33 = vmax.f32 %v4604_v22, 0.8666667  ;;  %v1068_v43 = vmax.f32 %v4749_v20, -0.2 }
 0x179   : > { %v1339_v59 = vadd.f32 %v1323_v49, %v1290_v28  ;;  %v1343_v7 = vadd.f32 %v1327_v29, %v1294_v46  ;;  %v1470_v55 = vmul.f32 %v4565_v9, %v1453_v60  ;;  %v1072_v61 = vmax.f32 %v4827_v40, -0.2 }
 0x17a   : > { %v1117_v54 = vmax.f32 %v4749_v20, -0.06666667  ;;  %v1474_v51 = vmul.f32 %v4565_v9, %v1457_v33  ;;  %v1085_v36 = vmul.f32 %v4540_v62, %v1068_v43  ;;  %v1121_v27 = vmax.f32 %v4827_v40, -0.06666667 }
 0x17b   : > { %v1388_v12 = vadd.f32 %v1372_v23, %v1339_v59  ;;  %v1392_v47 = vadd.f32 %v1376_v10, %v1343_v7  ;;  %v1089_v48 = vmul.f32 %v4540_v62, %v1072_v61  ;;  %v1166_v34 = vmax.f32 %v4749_v20, 0.06666667 }
 0x17c   : > { %v1134_v22 = vmul.f32 %v4543_v63, %v1117_v54  ;;  %v1101_v21 = vadd.f32 %v1085_v36, %v4834_v19  ;;  %v1138_v50 = vmul.f32 %v4543_v63, %v1121_v27  ;;  %v1170_v17 = vmax.f32 %v4827_v40, 0.06666667 }
 0x17d   : > { %v1437_v32 = vadd.f32 %v1421_v14, %v1388_v12  ;;  %v1441_v26 = vadd.f32 %v1425_v24, %v1392_v47  ;;  %v1105_v8 = vadd.f32 %v1089_v48, %v4889_v53  ;;  %v1183_v58 = vmul.f32 %v4546_v0, %v1166_v34 }
 0x17e   : > { %v1215_v11 = vmax.f32 %v4749_v20, 0.2  ;;  %v1150_v25 = vadd.f32 %v1134_v22, %v1101_v21  ;;  %v1187_v41 = vmul.f32 %v4546_v0, %v1170_v17  ;;  %v1219_v57 = vmax.f32 %v4827_v40, 0.2 }
 0x17f   : > { %v1486_v45 = vadd.f32 %v1470_v55, %v1437_v32  ;;  %v1490_v49 = vadd.f32 %v1474_v51, %v1441_v26  ;;  %v1154_v13 = vadd.f32 %v1138_v50, %v1105_v8  ;;  %v1264_v56 = vmax.f32 %v4749_v20, 0.33333334 }
 0x180   : > { %v1232_v19 = vmul.f32 %v4549_v1, %v1215_v11  ;;  %v1199_v28 = vadd.f32 %v1183_v58, %v1150_v25  ;;  %v1236_v29 = vmul.f32 %v4549_v1, %v1219_v57  ;;  %v1268_v53 = vmax.f32 %v4827_v40, 0.33333334 }
 0x181   : > { %v1313_v23 = vmax.f32 %v4749_v20, 0.46666667  ;;  %v3988_v30 = vpack.c.bf16 %v1490_v49, %v1486_v45  ;;  %v1203_v46 = vadd.f32 %v1187_v41, %v1154_v13  ;;  %v1281_v10 = vmul.f32 %v4552_v2, %v1264_v56 }
 0x182   : > { %v1317_v14 = vmax.f32 %v4827_v40, 0.46666667  ;;  %v1248_v60 = vadd.f32 %v1232_v19, %v1199_v28  ;;  %v1285_v59 = vmul.f32 %v4552_v2, %v1268_v53  ;;  %v1362_v33 = vmax.f32 %v4749_v20, 0.6 }
 0x183   : > { %v1330_v24 = vmul.f32 %v4555_v3, %v1313_v23  ;;  %3989 = vmatpush1.bf16.msra.mxu1 %v3988_v30  ;;  %v1252_v43 = vadd.f32 %v1236_v29, %v1203_v46  ;;  %v1366_v55 = vmax.f32 %v4827_v40, 0.6  ;;  %v1411_v61 = vmax.f32 %v4749_v20, 0.73333335 }
 0x184   : > { %v1334_v7 = vmul.f32 %v4555_v3, %v1317_v14  ;;  %v1297_v54 = vadd.f32 %v1281_v10, %v1248_v60  ;;  %v1379_v12 = vmul.f32 %v4558_v4, %v1362_v33  ;;  %v1415_v51 = vmax.f32 %v4827_v40, 0.73333335 }
 0x185   : > { %v1460_v36 = vmax.f32 %v4749_v20, 0.8666667  ;;  %v1301_v27 = vadd.f32 %v1285_v59, %v1252_v43  ;;  %v1383_v47 = vmul.f32 %v4558_v4, %v1366_v55  ;;  %v1428_v48 = vmul.f32 %v4561_v5, %v1411_v61 }
 0x186   : > { %v1464_v22 = vmax.f32 %v4827_v40, 0.8666667  ;;  %v1346_v34 = vadd.f32 %v1330_v24, %v1297_v54  ;;  %v1432_v32 = vmul.f32 %v4561_v5, %v1415_v51  ;;  %v1070_v50 = vmax.f32 %v4753_v37, -0.2 }
 0x187   : > { %v1477_v21 = vmul.f32 %v4565_v9, %v1460_v36  ;;  %v1350_v17 = vadd.f32 %v1334_v7, %v1301_v27  ;;  %v1074_v8 = vmax.f32 %v4831_v42, -0.2  ;;  %v1119_v20 = vmax.f32 %v4753_v37, -0.06666667 }
 0x188   : > { %v1481_v26 = vmul.f32 %v4565_v9, %v1464_v22  ;;  %v1395_v58 = vadd.f32 %v1379_v12, %v1346_v34  ;;  %v1087_v11 = vmul.f32 %v4540_v62, %v1070_v50  ;;  %v1123_v45 = vmax.f32 %v4831_v42, -0.06666667 }
 0x189   : > { %v1168_v40 = vmax.f32 %v4753_v37, 0.06666667  ;;  %v1399_v25 = vadd.f32 %v1383_v47, %v1350_v17  ;;  %v1091_v41 = vmul.f32 %v4540_v62, %v1074_v8  ;;  %v1136_v57 = vmul.f32 %v4543_v63, %v1119_v20 }
 0x18a   : > { %v1172_v49 = vmax.f32 %v4831_v42, 0.06666667  ;;  %v1444_v13 = vadd.f32 %v1428_v48, %v1395_v58  ;;  %v1103_v19 = vadd.f32 %v1087_v11, %v4825_v31  ;;  %v1140_v56 = vmul.f32 %v4543_v63, %v1123_v45 }
 0x18b   : > { %v1185_v28 = vmul.f32 %v4546_v0, %v1168_v40  ;;  %v1448_v29 = vadd.f32 %v1432_v32, %v1399_v25  ;;  %v1107_v53 = vadd.f32 %v1091_v41, %v4894_v52  ;;  %v1217_v30 = vmax.f32 %v4753_v37, 0.2 }
 0x18c   : > { %v1189_v23 = vmul.f32 %v4546_v0, %v1172_v49  ;;  %v1493_v46 = vadd.f32 %v1477_v21, %v1444_v13  ;;  %v1152_v10 = vadd.f32 %v1136_v57, %v1103_v19  ;;  %v1221_v14 = vmax.f32 %v4831_v42, 0.2 }
 0x18d   : > { %v1266_v60 = vmax.f32 %v4753_v37, 0.33333334  ;;  %v1497_v59 = vadd.f32 %v1481_v26, %v1448_v29  ;;  %v1156_v24 = vadd.f32 %v1140_v56, %v1107_v53  ;;  %v1234_v31 = vmul.f32 %v4549_v1, %v1217_v30 }
 0x18e   : > { %v1270_v33 = vmax.f32 %v4831_v42, 0.33333334  ;;  %v1201_v43 = vadd.f32 %v1185_v28, %v1152_v10  ;;  %v1238_v7 = vmul.f32 %v4549_v1, %v1221_v14  ;;  %v1315_v55 = vmax.f32 %v4753_v37, 0.46666667 }
 0x18f   : > { %v1283_v52 = vmul.f32 %v4552_v2, %v1266_v60  ;;  %v3982_v61 = vpack.c.bf16 %v1497_v59, %v1493_v46  ;;  %v1205_v54 = vadd.f32 %v1189_v23, %v1156_v24  ;;  %v1319_v51 = vmax.f32 %v4831_v42, 0.46666667 }
 0x190   : > { %v1287_v12 = vmul.f32 %v4552_v2, %v1270_v33  ;;  %v1250_v36 = vadd.f32 %v1234_v31, %v1201_v43  ;;  %v1332_v27 = vmul.f32 %v4555_v3, %v1315_v55  ;;  %v1364_v47 = vmax.f32 %v4753_v37, 0.6 }
 0x191   : > { %v1368_v48 = vmax.f32 %v4831_v42, 0.6  ;;  %3983 = vmatprep.subr.bf16.mxu0 %v3982_v61  ;;  %v1254_v22 = vadd.f32 %v1238_v7, %v1205_v54  ;;  %v1336_v34 = vmul.f32 %v4555_v3, %v1319_v51  ;;  %v1413_v32 = vmax.f32 %v4753_v37, 0.73333335 }
 0x192   : > { %v1417_v21 = vmax.f32 %v4831_v42, 0.73333335  ;;  %v1299_v50 = vadd.f32 %v1283_v52, %v1250_v36  ;;  %v1381_v17 = vmul.f32 %v4558_v4, %v1364_v47  ;;  %v1462_v8 = vmax.f32 %v4753_v37, 0.8666667 }
 0x193   : > { %v1385_v26 = vmul.f32 %v4558_v4, %v1368_v48  ;;  %v1303_v20 = vadd.f32 %v1287_v12, %v1254_v22  ;;  %v1430_v58 = vmul.f32 %v4561_v5, %v1413_v32  ;;  %v1466_v45 = vmax.f32 %v4831_v42, 0.8666667 }
 0x194   : > { %v1434_v11 = vmul.f32 %v4561_v5, %v1417_v21  ;;  %v1348_v40 = vadd.f32 %v1332_v27, %v1299_v50  ;;  %v1479_v25 = vmul.f32 %v4565_v9, %v1462_v8  ;;  %v1067_v41 = vmax.f32 %v4743_v35, -0.2 }
 0x195   : > { %v1071_v57 = vmax.f32 %v4823_v39, -0.2  ;;  %v1352_v49 = vadd.f32 %v1336_v34, %v1303_v20  ;;  %v1483_v13 = vmul.f32 %v4565_v9, %v1466_v45  ;;  %v1116_v19 = vmax.f32 %v4743_v35, -0.06666667 }
 0x196   : > { %v1120_v37 = vmax.f32 %v4823_v39, -0.06666667  ;;  %v1397_v56 = vadd.f32 %v1381_v17, %v1348_v40  ;;  %v1084_v28 = vmul.f32 %v4540_v62, %v1067_v41  ;;  %v1165_v42 = vmax.f32 %v4743_v35, 0.06666667 }
 0x197   : > { %v1088_v29 = vmul.f32 %v4540_v62, %v1071_v57  ;;  %v1401_v53 = vadd.f32 %v1385_v26, %v1352_v49  ;;  %v1133_v23 = vmul.f32 %v4543_v63, %v1116_v19  ;;  %v1169_v46 = vmax.f32 %v4823_v39, 0.06666667 }
 0x198   : > { %v1137_v30 = vmul.f32 %v4543_v63, %v1120_v37  ;;  %v1446_v10 = vadd.f32 %v1430_v58, %v1397_v56  ;;  %v1100_v14 = vadd.f32 %v1084_v28, %v4818_v15  ;;  %v1182_v59 = vmul.f32 %v4546_v0, %v1165_v42 }
 0x199   : > { %v1104_v60 = vadd.f32 %v1088_v29, %v4887_v16  ;;  %v1450_v24 = vadd.f32 %v1434_v11, %v1401_v53  ;;  %v1186_v31 = vmul.f32 %v4546_v0, %v1169_v46  ;;  %v1214_v33 = vmax.f32 %v4743_v35, 0.2 }
 0x19a   : > { %v1218_v43 = vmax.f32 %v4823_v39, 0.2  ;;  %v1495_v7 = vadd.f32 %v1479_v25, %v1446_v10  ;;  %v1149_v52 = vadd.f32 %v1133_v23, %v1100_v14  ;;  %v1263_v61 = vmax.f32 %v4743_v35, 0.33333334 }
 0x19b   : > { %v1153_v55 = vadd.f32 %v1137_v30, %v1104_v60  ;;  %v1499_v54 = vadd.f32 %v1483_v13, %v1450_v24  ;;  %v1231_v12 = vmul.f32 %v4549_v1, %v1214_v33  ;;  %v1267_v16 = vmax.f32 %v4823_v39, 0.33333334 }
 0x19c   : > { %v1235_v15 = vmul.f32 %v4549_v1, %v1218_v43  ;;  %v1198_v51 = vadd.f32 %v1182_v59, %v1149_v52  ;;  %v1280_v27 = vmul.f32 %v4552_v2, %v1263_v61  ;;  %v1312_v47 = vmax.f32 %v4743_v35, 0.46666667 }
 0x19d   : > { %v1202_v36 = vadd.f32 %v1186_v31, %v1153_v55  ;;  %v3990_v48 = vpack.c.bf16 %v1499_v54, %v1495_v7  ;;  %v1284_v22 = vmul.f32 %v4552_v2, %v1267_v16  ;;  %v1316_v34 = vmax.f32 %v4823_v39, 0.46666667 }
 0x19e   : > { %v1361_v32 = vmax.f32 %v4743_v35, 0.6  ;;  %v1247_v21 = vadd.f32 %v1231_v12, %v1198_v51  ;;  %v1329_v17 = vmul.f32 %v4555_v3, %v1312_v47  ;;  %v1365_v26 = vmax.f32 %v4823_v39, 0.6 }
 0x19f   : > { %v1251_v50 = vadd.f32 %v1235_v15, %v1202_v36  ;;  %3991 = vmatprep.subr.bf16.mxu1 %v3990_v48  ;;  %v1333_v8 = vmul.f32 %v4555_v3, %v1316_v34  ;;  %v1410_v58 = vmax.f32 %v4743_v35, 0.73333335  ;;  %v1414_v11 = vmax.f32 %v4823_v39, 0.73333335 }
 0x1a0   : > { %v1378_v20 = vmul.f32 %v4558_v4, %v1361_v32  ;;  %v1296_v45 = vadd.f32 %v1280_v27, %v1247_v21  ;;  %v1382_v25 = vmul.f32 %v4558_v4, %v1365_v26  ;;  %v1459_v41 = vmax.f32 %v4743_v35, 0.8666667 }
 0x1a1   : > { %v1300_v40 = vadd.f32 %v1284_v22, %v1251_v50  ;;  %v1427_v57 = vmul.f32 %v4561_v5, %v1410_v58  ;;  %v1431_v49 = vmul.f32 %v4561_v5, %v1414_v11  ;;  %v1463_v13 = vmax.f32 %v4823_v39, 0.8666667  ;;  %v1500_v11 = vld [vmem:[%s6890_s8] sm:$0xff] }
 0x1a2   : > { %v1069_v19 = vmax.f32 %v4751_v6, -0.2  ;;  %v1345_v37 = vadd.f32 %v1329_v17, %v1296_v45  ;;  %v1476_v28 = vmul.f32 %v4565_v9, %v1459_v41  ;;  %v1073_v29 = vmax.f32 %v4829_v18, -0.2 }
 0x1a3   : > { %v1349_v56 = vadd.f32 %v1333_v8, %v1300_v40  ;;  %v1480_v42 = vmul.f32 %v4565_v9, %v1463_v13  ;;  %v1118_v35 = vmax.f32 %v4751_v6, -0.06666667  ;;  %v1122_v23 = vmax.f32 %v4829_v18, -0.06666667 }
 0x1a4   : > { %v1086_v53 = vmul.f32 %v4540_v62, %v1069_v19  ;;  %v1394_v30 = vadd.f32 %v1378_v20, %v1345_v37  ;;  %v1090_v39 = vmul.f32 %v4540_v62, %v1073_v29  ;;  %v1167_v10 = vmax.f32 %v4751_v6, 0.06666667 }
 0x1a5   : > { %v1398_v46 = vadd.f32 %v1382_v25, %v1349_v56  ;;  %v1135_v60 = vmul.f32 %v4543_v63, %v1118_v35  ;;  %v1139_v59 = vmul.f32 %v4543_v63, %v1122_v23  ;;  %v1171_v24 = vmax.f32 %v4829_v18, 0.06666667 }
 0x1a6   : > { %v1102_v14 = vadd.f32 %v1086_v53, %v4820_v38  ;;  %v1443_v31 = vadd.f32 %v1427_v57, %v1394_v30  ;;  %v1106_v43 = vadd.f32 %v1090_v39, %v4891_v44  ;;  %v1184_v7 = vmul.f32 %v4546_v0, %v1167_v10  ;;  %v5291_v30 = vpop.permute.xlu0 %1510 }
 0x1a7   : > { %v1447_v33 = vadd.f32 %v1431_v49, %v1398_v46  ;;  %v1188_v55 = vmul.f32 %v4546_v0, %v1171_v24  ;;  %v1216_v62 = vmax.f32 %v4751_v6, 0.2  ;;  %v1220_v61 = vmax.f32 %v4829_v18, 0.2 }
 0x1a8   : > { %v1151_v52 = vadd.f32 %v1135_v60, %v1102_v14  ;;  %v1492_v38 = vadd.f32 %v1476_v28, %v1443_v31  ;;  %v1155_v12 = vadd.f32 %v1139_v59, %v1106_v43  ;;  %v1265_v63 = vmax.f32 %v4751_v6, 0.33333334 }
 0x1a9   : > { %v1496_v54 = vadd.f32 %v1480_v42, %v1447_v33  ;;  %v1233_v16 = vmul.f32 %v4549_v1, %v1216_v62  ;;  %v1269_v51 = vmax.f32 %v4829_v18, 0.33333334  ;;  %v1237_v27 = vmul.f32 %v4549_v1, %v1220_v61 }
 0x1aa   : > { %v1200_v15 = vadd.f32 %v1184_v7, %v1151_v52  ;;  %v1204_v36 = vadd.f32 %v1188_v55, %v1155_v12  ;;  %v1314_v0 = vmax.f32 %v4751_v6, 0.46666667  ;;  %v1282_v48 = vmul.f32 %v4552_v2, %v1265_v63 }
 0x1ab   : > { %v3984_v44 = vpack.c.bf16 %v1496_v54, %v1492_v38  ;;  %v1318_v22 = vmax.f32 %v4829_v18, 0.46666667  ;;  %v1363_v34 = vmax.f32 %v4751_v6, 0.6  ;;  %v1286_v21 = vmul.f32 %v4552_v2, %v1269_v51 }
 0x1ac   : > { %v1249_v47 = vadd.f32 %v1233_v16, %v1200_v15  ;;  %v1253_v32 = vadd.f32 %v1237_v27, %v1204_v36  ;;  %v1367_v50 = vmax.f32 %v4829_v18, 0.6  ;;  %v1331_v26 = vmul.f32 %v4555_v3, %v1314_v0 }
 0x1ad   : > { %3985 = vmatpush1.bf16.msra.mxu0 %v3984_v44  ;;  %v1412_v1 = vmax.f32 %v4751_v6, 0.73333335  ;;  %v1335_v20 = vmul.f32 %v4555_v3, %v1318_v22  ;;  %v1416_v58 = vmax.f32 %v4829_v18, 0.73333335  ;;  %v1380_v40 = vmul.f32 %v4558_v4, %v1363_v34 }
 0x1ae   : > { %v1298_v17 = vadd.f32 %v1282_v48, %v1249_v47  ;;  %v1302_v8 = vadd.f32 %v1286_v21, %v1253_v32  ;;  %v1461_v2 = vmax.f32 %v4751_v6, 0.8666667  ;;  %v1384_v41 = vmul.f32 %v4558_v4, %v1367_v50  ;;  %v1501_v4 = vld [vmem:[%s6890_s8 + $0x8] sm:$0xff] }
 0x1af   : > { %v1465_v57 = vmax.f32 %v4829_v18, 0.8666667  ;;  %v6823_v49 = vmov 0.0   ;;  %v1429_v13 = vmul.f32 %v4561_v5, %v1412_v1  ;;  %v1433_v37 = vmul.f32 %v4561_v5, %v1416_v58  ;;  %v1502_v5 = vld [vmem:[%s6890_s8 + $0x10] sm:$0xff] }
 0x1b0   : > { %v1347_v45 = vadd.f32 %v1331_v26, %v1298_v17  ;;  %v1351_v25 = vadd.f32 %v1335_v20, %v1302_v8  ;;  %1605 = vmatprep.mubr.f32.mxu0 %v6823_v49  ;;  %1694 = vmatprep.mubr.f32.mxu1 %v6823_v49  ;;  %v1478_v18 = vmul.f32 %v4565_v9, %v1461_v2  ;;  %v5286_v35 = vstv %s5242_s29 }
 0x1b1   : > { %3894 = vmatmul.mubr.msk.f32.vlgmr.msra.gmra.mrb[0].mxu0 %vm1528_vm0, %v1500_v11  ;;  %v1482_v28 = vmul.f32 %v4565_v9, %v1465_v57  ;;  %v1503_v9 = vld [vmem:[%s6890_s8 + $0x18] sm:$0xff]  ;;  %s1788_s8 = ssub.f32 %s1782_s0, %s1787_s10  ;;  %s1815_s0 = smul.f32 7.5, %s1814_s14  ;;  %v5289_v23 = vstv %s5246_s13  ;;  %v5294_v39 = vstv %s5249_s15  ;;  %v5297_v10 = vstv %s5251_s4 }
 0x1b2   : > { %v1396_v3 = vadd.f32 %v1380_v40, %v1347_v45  ;;  %v1400_v19 = vadd.f32 %v1384_v41, %v1351_v25  ;;  %1611 = vmatprep.mubr.f32.mxu0 %v6823_v49  ;;  %v5300_v14 = vstv %s5254_s27  ;;  %v5303_v60 = vstv %s5258_s7  ;;  %s6907_s15 = sld [smem:[#allocation46_spill]]  ;;  %s3944_s14 = sld [smem:[#allocation8 + $0x4]] }
 0x1b3   : > { %s1794_s17 = ssub.f32 %s1788_s8, %s1793_s1  ;;  %s1811_s8 = smul.f32 0.6, %s5279_s19  ;;  %v5309_v31 = vstv %s5261_s9  ;;  %v5312_v33 = vstv %s6892_s20  ;;  %v5316_v52 = vstv %s5267_s2  ;;  %v5319_v55 = vstv %s5270_s18 }
 0x1b4   : > { %v1445_v6 = vadd.f32 %v1429_v13, %v1396_v3  ;;  %v1449_v56 = vadd.f32 %v1433_v37, %v1400_v19  ;;  %s5282_s10 = ssub.f32 %s1815_s0, %s1809_s12  ;;  %v5322_v62 = vstv %s5273_s23  ;;  %v5327_v54 = vstv %s5276_s22  ;;  %s3941_s23 = sld [smem:[#allocation8 + $0x1]] }
 0x1b5   : > { %3895 = vmatmul.mubr.msk.f32.gmra.mrb[2].mxu0 %vm1528_vm0, %v1501_v4  ;;  %s1800_s24 = ssub.f32 %s1794_s17, %s1799_s26  ;;  %v5330_v12 = vstv %s5279_s19  ;;  %s3943_s22 = sld [smem:[#allocation8 + $0x3]] }
 0x1b6   : > { %v1494_v29 = vadd.f32 %v1478_v18, %v1445_v6  ;;  %v1498_v42 = vadd.f32 %v1482_v28, %v1449_v56  ;;  %1617 = vmatprep.mubr.f32.mxu0 %v6823_v49  ;;  %s1817_s17 = smul.f32 0.73333335, %s5282_s10  ;;  %s1822_s1 = ssub.f32 %s1821_s21, %s1815_s0  ;;  %v5335_v51 = vstv %s5282_s10 }
 0x1b7   : > { %s1806_s6 = ssub.f32 %s1800_s24, %s1805_s30  ;;  %s3945_s30 = sld [smem:[#allocation8 + $0x5]] }
 0x1b8   : > { %v3992_v53 = vpack.c.bf16 %v1498_v42, %v1494_v29  ;;  %s1823_s3 = smul.f32 0.8666667, %s1822_s1  ;;  %v5337_v44 = vstv %s1822_s1  ;;  %s3948_s9 = sld [smem:[#allocation8 + $0x8]] }
 0x1b9   : > { %3896 = vmatmul.mubr.msk.f32.gmra.mrb[4].mxu0 %vm1528_vm0, %v1502_v5  ;;  %s1812_s25 = ssub.f32 %s1806_s6, %s1811_s8 }
 0x1ba   : > { %3993 = vmatpush1.bf16.msra.mxu1 %v3992_v53  ;;  %1623 = vmatprep.mubr.f32.mxu0 %v6823_v49  ;;  %s2797_s12 = ssub.f32 %s3941_s23, %s2795_s16 }
 0x1bb   : > { %s1818_s11 = ssub.f32 %s1812_s25, %s1817_s17  ;;  %s3946_s25 = sld [smem:[#allocation8 + $0x6]] }
 0x1bc   : > { %s2802_s24 = ssub.f32 %s3942_s28, %s3941_s23  ;;  %s5983_s19 = smul.f32 7.5, %s2797_s12 }
 0x1bd   : > { %3898 = vmatmul.mubr.msk.f32.vlgmr.msra.gmra.mrb[0].mxu1 %vm1528_vm0, %v1500_v11  ;;  %3897 = vmatmul.mubr.msk.f32.gmra.mrb[6].mxu0 %vm1528_vm0, %v1503_v9  ;;  %s1824_s26 = ssub.f32 %s1818_s11, %s1823_s3 }
 0x1be   : > { %1700 = vmatprep.mubr.f32.mxu1 %v6823_v49  ;;  %2665 = vmatprep.mubr.f32.mxu0 %v6823_v49  ;;  %s2803_s0 = smul.f32 7.5, %s2802_s24  ;;  %s2808_s5 = ssub.f32 %s3943_s22, %s3942_s28 }
 0x1bf   : > { %v5306_v24 = vstv %s1824_s26  ;;  %s2799_s6 = smul.f32 -1.0, %s5983_s19  ;;  %s2814_s8 = ssub.f32 %s3944_s14, %s3943_s22 }
 0x1c0   : > { %s5987_s10 = ssub.f32 %s2803_s0, %s5983_s19  ;;  %s2809_s21 = smul.f32 7.5, %s2808_s5 }
 0x1c1   : > { %3899 = vmatmul.mubr.msk.f32.gmra.mrb[2].mxu1 %vm1528_vm0, %v1501_v4  ;;  %v5366_v4 = vpop.permute.xlu1 %1515  ;;  %s2820_s17 = ssub.f32 %s3945_s30, %s3944_s14  ;;  %s2815_s1 = smul.f32 7.5, %s2814_s8 }
 0x1c2   : > { %1706 = vmatprep.mubr.f32.mxu1 %v6823_v49  ;;  %s2800_s20 = ssub.f32 %s2795_s16, %s2799_s6  ;;  %s2805_s11 = smul.f32 -0.8666667, %s5987_s10 }
 0x1c3   : > { %s5990_s3 = ssub.f32 %s2809_s21, %s2803_s0  ;;  %s3947_s26 = sld [smem:[#allocation8 + $0x7]] }
 0x1c4   : > { %s5992_s29 = ssub.f32 %s2815_s1, %s2809_s21  ;;  %s2821_s13 = smul.f32 7.5, %s2820_s17 }
 0x1c5   : > { %3900 = vmatmul.mubr.msk.f32.gmra.mrb[4].mxu1 %vm1528_vm0, %v1502_v5  ;;  %s2806_s4 = ssub.f32 %s2800_s20, %s2805_s11  ;;  %s2811_s27 = smul.f32 -0.73333335, %s5990_s3 }
 0x1c6   : > { %1712 = vmatprep.mubr.f32.mxu1 %v6823_v49  ;;  %s2826_s7 = ssub.f32 %s3946_s25, %s3945_s30  ;;  %s2817_s23 = smul.f32 -0.6, %s5992_s29 }
 0x1c7   : > { %s5995_s2 = ssub.f32 %s2821_s13, %s2815_s1  ;;  %s3949_s22 = sld [smem:[#allocation8 + $0x9]] }
 0x1c8   : > { %s2812_s18 = ssub.f32 %s2806_s4, %s2811_s27  ;;  %s2827_s16 = smul.f32 7.5, %s2826_s7 }
 0x1c9   : > { %3901 = vmatmul.mubr.msk.f32.gmra.mrb[6].mxu1 %vm1528_vm0, %v1503_v9  ;;  %s2832_s28 = ssub.f32 %s3947_s26, %s3946_s25  ;;  %s2823_s14 = smul.f32 -0.46666667, %s5995_s2 }
 0x1ca   : > { %2754 = vmatprep.mubr.f32.mxu1 %v6823_v49  ;;  %s2818_s12 = ssub.f32 %s2812_s18, %s2817_s23  ;;  %s3950_s6 = sld [smem:[#allocation8 + $0xa]] }
 0x1cb   : > { %s5999_s24 = ssub.f32 %s2827_s16, %s2821_s13  ;;  %s2833_s0 = smul.f32 7.5, %s2832_s28 }
 0x1cc   : > { %s2838_s5 = ssub.f32 %s3948_s9, %s3947_s26  ;;  %s3951_s1 = sld [smem:[#allocation8 + $0xb]] }
 0x1cd   : > { %s2824_s8 = ssub.f32 %s2818_s12, %s2823_s14  ;;  %s2829_s21 = smul.f32 -0.33333334, %s5999_s24 }
 0x1ce   : > { %s6002_s30 = ssub.f32 %s2833_s0, %s2827_s16  ;;  %s2839_s17 = smul.f32 7.5, %s2838_s5 }
 0x1cf   : > { %s2844_s20 = ssub.f32 %s3949_s22, %s3948_s9  ;;  %s3952_s7 = sld [smem:[#allocation8 + $0xc]] }
 0x1d0   : > { %s2830_s11 = ssub.f32 %s2824_s8, %s2829_s21  ;;  %s2835_s4 = smul.f32 -0.2, %s6002_s30 }
 0x1d1   : > { %s6005_s25 = ssub.f32 %s2839_s17, %s2833_s0  ;;  %s2845_s27 = smul.f32 7.5, %s2844_s20 }
 0x1d2   : > { %s2850_s13 = ssub.f32 %s3950_s6, %s3949_s22  ;;  %s3953_s12 = sld [smem:[#allocation8 + $0xd]] }
 0x1d3   : > { %6909 = sst [smem:[#allocation23_spill]] %s6005_s25  ;;  %s2841_s23 = smul.f32 -0.06666667, %s6005_s25 }
 0x1d4   : > { %s2836_s18 = ssub.f32 %s2830_s11, %s2835_s4  ;;  %s2851_s28 = smul.f32 7.5, %s2850_s13 }
 0x1d5   : > { %s6008_s26 = ssub.f32 %s2845_s27, %s2839_s17  ;;  %s3954_s21 = sld [smem:[#allocation8 + $0xe]] }
 0x1d6   : > { %s2856_s16 = ssub.f32 %s3951_s1, %s3950_s6  ;;  %s3955_s4 = sld [smem:[#allocation8 + $0xf]] }
 0x1d7   : > { %6910 = sst [smem:[#allocation24_spill]] %s6008_s26  ;;  %s2847_s5 = smul.f32 0.06666667, %s6008_s26 }
 0x1d8   : > { %s2842_s14 = ssub.f32 %s2836_s18, %s2841_s23  ;;  %s2857_s8 = smul.f32 7.5, %s2856_s16 }
 0x1d9   : > { %s6011_s9 = ssub.f32 %s2851_s28, %s2845_s27 }
 0x1da   : > { %s2862_s0 = ssub.f32 %s3952_s7, %s3951_s1 }
 0x1db   : > { %s2853_s20 = smul.f32 0.2, %s6011_s9  ;;  %s6014_s22 = ssub.f32 %s2857_s8, %s2851_s28 }
 0x1dc   : > { %s2863_s11 = smul.f32 7.5, %s2862_s0  ;;  %s2868_s17 = ssub.f32 %s3953_s12, %s3952_s7 }
 0x1dd   : > { %s2859_s13 = smul.f32 0.33333334, %s6014_s22  ;;  %s2874_s27 = ssub.f32 %s3954_s21, %s3953_s12 }
 0x1de   : > { %s6017_s6 = ssub.f32 %s2863_s11, %s2857_s8  ;;  %s2869_s18 = smul.f32 7.5, %s2868_s17 }
 0x1df   : > { %s2875_s28 = smul.f32 7.5, %s2874_s27  ;;  %s2880_s16 = ssub.f32 %s3955_s4, %s3954_s21 }
 0x1e0   : > { %s2865_s26 = smul.f32 0.46666667, %s6017_s6  ;;  %s6020_s1 = ssub.f32 %s2869_s18, %s2863_s11 }
 0x1e1   : > { %s6941_s4 = sld [smem:[#allocation50_spill]]  ;;  %s4214_s27 = smov [#allocation9]  }
 0x284   : > { %v1607_v46 = vpop.f32.mrb[0].mxu0 }
 0x285   : > { %v1608_v59 = vadd.f32 %v1607_v46, %v5291_v30  ;;  %v1609_v43 = vpop.f32.mrb[1].mxu0 }
 0x286   : > { %v1610_v7 = vadd.f32 %v1609_v43, %v5291_v30 }
 0x287   : > { %v5324_v61 = vmin.f32 %v1608_v59, 1.0  ;;  %v3917_v38 = vclamps-f32 %v1608_v59, 1.0 }
 0x288   : > { %v5332_v63 = vmin.f32 %v1610_v7, 1.0  ;;  %v3918_v15 = vclamps-f32 %v1610_v7, 1.0  ;;  %v1613_v16 = vpop.f32.mrb[2].mxu0 }
 0x289   : > { %v1842_v36 = vmul.f32 %v3917_v38, %v5286_v35  ;;  %v1875_v27 = vmax.f32 %v5324_v61, -0.8666667  ;;  %v1924_v0 = vmax.f32 %v5324_v61, -0.73333335  ;;  %v1973_v47 = vmax.f32 %v5324_v61, -0.6 }
 0x28a   : > { %v2022_v48 = vmax.f32 %v5324_v61, -0.46666667  ;;  %v2071_v22 = vmax.f32 %v5324_v61, -0.33333334  ;;  %v2120_v34 = vmax.f32 %v5324_v61, -0.2  ;;  %v1843_v32 = vmul.f32 %v3918_v15, %v5286_v35 }
 0x28b   : > { %v1859_v21 = vadd.f32 %v5306_v24, %v1842_v36  ;;  %v1892_v50 = vmul.f32 %v5289_v23, %v1875_v27  ;;  %v1941_v17 = vmul.f32 %v5294_v39, %v1924_v0  ;;  %v1990_v26 = vmul.f32 %v5297_v10, %v1973_v47  ;;  %v1615_v1 = vpop.f32.mrb[3].mxu0 }
 0x28c   : > { %v2039_v8 = vmul.f32 %v5300_v14, %v2022_v48  ;;  %v2088_v20 = vmul.f32 %v5303_v60, %v2071_v22  ;;  %v2137_v58 = vmul.f32 %v5309_v31, %v2120_v34  ;;  %v2169_v11 = vmax.f32 %v5324_v61, -0.06666667  ;;  %v5355_v45 = vpop.f32.mrb[4].mxu0 }
 0x28d   : > { %v1908_v40 = vadd.f32 %v1892_v50, %v1859_v21  ;;  %v1860_v2 = vadd.f32 %v5306_v24, %v1843_v32  ;;  %v1876_v25 = vmax.f32 %v5332_v63, -0.8666667  ;;  %v1925_v41 = vmax.f32 %v5332_v63, -0.73333335  ;;  %v5360_v57 = vpop.f32.mrb[5].mxu0 }
 0x28e   : > { %v2186_v3 = vmul.f32 %v5312_v33, %v2169_v11  ;;  %v1974_v13 = vmax.f32 %v5332_v63, -0.6  ;;  %v2023_v19 = vmax.f32 %v5332_v63, -0.46666667  ;;  %v2072_v37 = vmax.f32 %v5332_v63, -0.33333334 }
 0x28f   : > { %v1957_v6 = vadd.f32 %v1941_v17, %v1908_v40  ;;  %v1893_v18 = vmul.f32 %v5289_v23, %v1876_v25  ;;  %v1942_v56 = vmul.f32 %v5294_v39, %v1925_v41  ;;  %v2121_v28 = vmax.f32 %v5332_v63, -0.2 }
 0x290   : > { %v1696_v29 = vpop.f32.mrb[0].mxu1  ;;  %v1991_v42 = vmul.f32 %v5297_v10, %v1974_v13  ;;  %v2040_v5 = vmul.f32 %v5300_v14, %v2023_v19  ;;  %v2089_v53 = vmul.f32 %v5303_v60, %v2072_v37  ;;  %v1614_v9 = vadd.f32 %v1613_v16, %v5366_v4  ;;  %v5375_v46 = vpop.f32.mrb[6].mxu0 }
 0x291   : > { %v2006_v59 = vadd.f32 %v1990_v26, %v1957_v6  ;;  %v1697_v43 = vadd.f32 %v1696_v29, %v5291_v30  ;;  %v1909_v7 = vadd.f32 %v1893_v18, %v1860_v2  ;;  %v2138_v38 = vmul.f32 %v5309_v31, %v2121_v28  ;;  %v1698_v15 = vpop.f32.mrb[1].mxu1  ;;  %v5379_v36 = vpop.f32.mrb[7].mxu0 }
 0x292   : > { %v1699_v27 = vadd.f32 %v1698_v15, %v5291_v30  ;;  %v5382_v0 = vmin.f32 %v1614_v9, 1.0  ;;  %v3921_v47 = vclamps-f32 %v1614_v9, 1.0  ;;  %v5385_v48 = vadd.f32 %v1615_v1, %v5366_v4 }
 0x293   : > { %v2055_v16 = vadd.f32 %v2039_v8, %v2006_v59  ;;  %v5387_v22 = vmin.f32 %v1697_v43, 1.0  ;;  %v3919_v34 = vclamps-f32 %v1697_v43, 1.0  ;;  %v1958_v32 = vadd.f32 %v1942_v56, %v1909_v7 }
 0x294   : > { %v5389_v21 = vmin.f32 %v1699_v27, 1.0  ;;  %v3920_v50 = vclamps-f32 %v1699_v27, 1.0  ;;  %v1846_v17 = vmul.f32 %v3921_v47, %v5286_v35  ;;  %v1879_v26 = vmax.f32 %v5382_v0, -0.8666667  ;;  %v5393_v11 = vpop.f32.mrb[2].mxu1 }
 0x295   : > { %v2104_v30 = vadd.f32 %v2088_v20, %v2055_v16  ;;  %v1844_v40 = vmul.f32 %v3919_v34, %v5286_v35  ;;  %v1877_v1 = vmax.f32 %v5387_v22, -0.8666667  ;;  %v1926_v8 = vmax.f32 %v5387_v22, -0.73333335  ;;  %v5398_v2 = vpop.f32.mrb[3].mxu1 }
 0x296   : > { %v1975_v25 = vmax.f32 %v5387_v22, -0.6  ;;  %v2024_v41 = vmax.f32 %v5387_v22, -0.46666667  ;;  %v2073_v13 = vmax.f32 %v5387_v22, -0.33333334  ;;  %v2007_v19 = vadd.f32 %v1991_v42, %v1958_v32 }
 0x297   : > { %v2153_v37 = vadd.f32 %v2137_v58, %v2104_v30  ;;  %v1861_v6 = vadd.f32 %v5306_v24, %v1844_v40  ;;  %v1894_v20 = vmul.f32 %v5289_v23, %v1877_v1  ;;  %v1943_v18 = vmul.f32 %v5294_v39, %v1926_v8 }
 0x298   : > { %v1992_v56 = vmul.f32 %v5297_v10, %v1975_v25  ;;  %v2041_v28 = vmul.f32 %v5300_v14, %v2024_v41  ;;  %v2090_v29 = vmul.f32 %v5303_v60, %v2073_v13  ;;  %v2122_v9 = vmax.f32 %v5387_v22, -0.2  ;;  %v5410_v59 = vpop.f32.mrb[4].mxu1 }
 0x299   : > { %v5412_v43 = vadd.f32 %v2186_v3, %v2153_v37  ;;  %v1910_v42 = vadd.f32 %v1894_v20, %v1861_v6  ;;  %v2171_v58 = vmax.f32 %v5387_v22, -0.06666667  ;;  %v2056_v7 = vadd.f32 %v2040_v5, %v2007_v19  ;;  %v5415_v15 = vpop.f32.mrb[5].mxu1 }
 0x29a   : > { %v2139_v27 = vmul.f32 %v5309_v31, %v2122_v9  ;;  %v1845_v47 = vmul.f32 %v3920_v50, %v5286_v35  ;;  %v1878_v16 = vmax.f32 %v5389_v21, -0.8666667  ;;  %v1927_v34 = vmax.f32 %v5389_v21, -0.73333335 }
 0x29b   : > { %v1959_v32 = vadd.f32 %v1943_v18, %v1910_v42  ;;  %v2188_v30 = vmul.f32 %v5312_v33, %v2171_v58  ;;  %v2105_v40 = vadd.f32 %v2089_v53, %v2056_v7  ;;  %v1976_v3 = vmax.f32 %v5389_v21, -0.6 }
 0x29c   : > { %v1862_v1 = vadd.f32 %v5306_v24, %v1845_v47  ;;  %v1895_v5 = vmul.f32 %v5289_v23, %v1878_v16  ;;  %v1944_v8 = vmul.f32 %v5294_v39, %v1927_v34  ;;  %v2025_v25 = vmax.f32 %v5389_v21, -0.46666667  ;;  %v5427_v41 = vpop.f32.mrb[6].mxu1 }
 0x29d   : > { %v2008_v50 = vadd.f32 %v1992_v56, %v1959_v32  ;;  %v5429_v13 = vadd.f32 %v2138_v38, %v2105_v40  ;;  %v1993_v19 = vmul.f32 %v5297_v10, %v1976_v3  ;;  %v2074_v37 = vmax.f32 %v5389_v21, -0.33333334  ;;  %v5433_v53 = vpop.f32.mrb[7].mxu1 }
 0x29e   : > { %v1911_v6 = vadd.f32 %v1895_v5, %v1862_v1  ;;  %v2042_v20 = vmul.f32 %v5300_v14, %v2025_v25  ;;  %v2123_v18 = vmax.f32 %v5389_v21, -0.2  ;;  %v1863_v9 = vadd.f32 %v5306_v24, %v1846_v17 }
 0x29f   : > { %v2057_v42 = vadd.f32 %v2041_v28, %v2008_v50  ;;  %v2091_v58 = vmul.f32 %v5303_v60, %v2074_v37  ;;  %v1896_v56 = vmul.f32 %v5289_v23, %v1879_v26  ;;  %v1928_v38 = vmax.f32 %v5382_v0, -0.73333335 }
 0x2a0   : > { %v1960_v7 = vadd.f32 %v1944_v8, %v1911_v6  ;;  %v2140_v47 = vmul.f32 %v5309_v31, %v2123_v18  ;;  %v1977_v16 = vmax.f32 %v5382_v0, -0.6  ;;  %v2026_v34 = vmax.f32 %v5382_v0, -0.46666667 }
 0x2a1   : > { %v2106_v32 = vadd.f32 %v2090_v29, %v2057_v42  ;;  %v1912_v40 = vadd.f32 %v1896_v56, %v1863_v9  ;;  %v1945_v3 = vmul.f32 %v5294_v39, %v1928_v38  ;;  %v2075_v17 = vmax.f32 %v5382_v0, -0.33333334 }
 0x2a2   : > { %v2009_v28 = vadd.f32 %v1993_v19, %v1960_v7  ;;  %v1994_v1 = vmul.f32 %v5297_v10, %v1977_v16  ;;  %v2043_v26 = vmul.f32 %v5300_v14, %v2026_v34  ;;  %v2124_v5 = vmax.f32 %v5382_v0, -0.2 }
 0x2a3   : > { %v2155_v8 = vadd.f32 %v2139_v27, %v2106_v32  ;;  %v1961_v25 = vadd.f32 %v1945_v3, %v1912_v40  ;;  %v2092_v50 = vmul.f32 %v5303_v60, %v2075_v17  ;;  %v2173_v37 = vmax.f32 %v5382_v0, -0.06666667 }
 0x2a4   : > { %v2058_v6 = vadd.f32 %v2042_v20, %v2009_v28  ;;  %v2141_v29 = vmul.f32 %v5309_v31, %v2124_v5  ;;  %v1703_v18 = vadd.f32 %v5393_v11, %v5366_v4  ;;  %v5455_v19 = vmin.f32 %v5385_v48, 1.0 }
 0x2a5   : > { %v5457_v9 = vadd.f32 %v2188_v30, %v2155_v8  ;;  %v2010_v42 = vadd.f32 %v1994_v1, %v1961_v25  ;;  %v2190_v56 = vmul.f32 %v5312_v33, %v2173_v37  ;;  %v3922_v27 = vclamps-f32 %v5385_v48, 1.0 }
 0x2a6   : > { %v2107_v38 = vadd.f32 %v2091_v58, %v2058_v6  ;;  %v5461_v7 = vmin.f32 %v1703_v18, 1.0  ;;  %v3923_v16 = vclamps-f32 %v1703_v18, 1.0  ;;  %v1880_v20 = vmax.f32 %v5455_v19, -0.8666667 }
 0x2a7   : > { %6893 = vst [vmem:[#allocation28_spill] sm:$0xff] %v5457_v9  ;;  %v2059_v34 = vadd.f32 %v2043_v26, %v2010_v42  ;;  %v1847_v32 = vmul.f32 %v3922_v27, %v5286_v35  ;;  %v1929_v11 = vmax.f32 %v5455_v19, -0.73333335  ;;  %v1978_v40 = vmax.f32 %v5455_v19, -0.6 }
 0x2a8   : > { %v5467_v30 = vadd.f32 %v2140_v47, %v2107_v38  ;;  %v1848_v3 = vmul.f32 %v3923_v16, %v5286_v35  ;;  %v1881_v17 = vmax.f32 %v5461_v7, -0.8666667  ;;  %v1930_v48 = vmax.f32 %v5461_v7, -0.73333335 }
 0x2a9   : > { %v2108_v58 = vadd.f32 %v2092_v50, %v2059_v34  ;;  %v1979_v28 = vmax.f32 %v5461_v7, -0.6  ;;  %v2028_v1 = vmax.f32 %v5461_v7, -0.46666667  ;;  %v2077_v26 = vmax.f32 %v5461_v7, -0.33333334 }
 0x2aa   : > { %v1865_v5 = vadd.f32 %v5306_v24, %v1848_v3  ;;  %v1898_v8 = vmul.f32 %v5289_v23, %v1881_v17  ;;  %v1947_v47 = vmul.f32 %v5294_v39, %v1930_v48  ;;  %v2126_v25 = vmax.f32 %v5461_v7, -0.2  ;;  %v5490_v48 = vpop.permute.xlu0 %1520 }
 0x2ab   : > { %v2157_v37 = vadd.f32 %v2141_v29, %v2108_v58  ;;  %v1996_v6 = vmul.f32 %v5297_v10, %v1979_v28  ;;  %v2045_v18 = vmul.f32 %v5300_v14, %v2028_v1  ;;  %v2094_v50 = vmul.f32 %v5303_v60, %v2077_v26 }
 0x2ac   : > { %v1914_v42 = vadd.f32 %v1898_v8, %v1865_v5  ;;  %v2143_v27 = vmul.f32 %v5309_v31, %v2126_v25  ;;  %v2175_v38 = vmax.f32 %v5461_v7, -0.06666667  ;;  %v1864_v16 = vadd.f32 %v5306_v24, %v1847_v32 }
 0x2ad   : > { %v5485_v34 = vadd.f32 %v2190_v56, %v2157_v37  ;;  %v1897_v3 = vmul.f32 %v5289_v23, %v1880_v20  ;;  %v1946_v17 = vmul.f32 %v5294_v39, %v1929_v11  ;;  %v1995_v29 = vmul.f32 %v5297_v10, %v1978_v40 }
 0x2ae   : > { %v1963_v58 = vadd.f32 %v1947_v47, %v1914_v42  ;;  %v2192_v28 = vmul.f32 %v5312_v33, %v2175_v38  ;;  %v2027_v1 = vmax.f32 %v5455_v19, -0.46666667  ;;  %v2076_v26 = vmax.f32 %v5455_v19, -0.33333334 }
 0x2af   : > { %v1913_v5 = vadd.f32 %v1897_v3, %v1864_v16  ;;  %v2125_v32 = vmax.f32 %v5455_v19, -0.2  ;;  %v1705_v56 = vadd.f32 %v5398_v2, %v5366_v4  ;;  %v1620_v20 = vadd.f32 %v5355_v45, %v5490_v48 }
 0x2b0   : > { %v2012_v11 = vadd.f32 %v1996_v6, %v1963_v58  ;;  %v2044_v40 = vmul.f32 %v5300_v14, %v2027_v1  ;;  %v2093_v8 = vmul.f32 %v5303_v60, %v2076_v26  ;;  %v1709_v47 = vadd.f32 %v5410_v59, %v5490_v48 }
 0x2b1   : > { %v1962_v25 = vadd.f32 %v1946_v17, %v1913_v5  ;;  %v2142_v37 = vmul.f32 %v5309_v31, %v2125_v32  ;;  %v5505_v42 = vmin.f32 %v1705_v56, 1.0  ;;  %v3924_v38 = vclamps-f32 %v1705_v56, 1.0 }
 0x2b2   : > { %v2061_v16 = vadd.f32 %v2045_v18, %v2012_v11  ;;  %v5507_v3 = vmin.f32 %v1620_v20, 1.0  ;;  %v3925_v4 = vclamps-f32 %v1620_v20, 1.0  ;;  %v5509_v2 = vmin.f32 %v1709_v47, 1.0 }
 0x2b3   : > { %v2011_v45 = vadd.f32 %v1995_v29, %v1962_v25  ;;  %v1849_v6 = vmul.f32 %v3924_v38, %v5286_v35  ;;  %v1882_v58 = vmax.f32 %v5505_v42, -0.8666667  ;;  %v1931_v1 = vmax.f32 %v5505_v42, -0.73333335 }
 0x2b4   : > { %6894 = vst [vmem:[#allocation29_spill] sm:$0xff] %v5507_v3  ;;  %6895 = vst [vmem:[#allocation30_spill] sm:$0xff] %v5509_v2  ;;  %v2110_v59 = vadd.f32 %v2094_v50, %v2061_v16  ;;  %v1980_v17 = vmax.f32 %v5505_v42, -0.6  ;;  %v2029_v26 = vmax.f32 %v5505_v42, -0.46666667  ;;  %v1850_v9 = vmul.f32 %v3925_v4, %v5286_v35 }
 0x2b5   : > { %v2078_v5 = vmax.f32 %v5505_v42, -0.33333334  ;;  %v2060_v18 = vadd.f32 %v2044_v40, %v2011_v45  ;;  %v1866_v32 = vadd.f32 %v5306_v24, %v1849_v6  ;;  %v1899_v56 = vmul.f32 %v5289_v23, %v1882_v58 }
 0x2b6   : > { %v1948_v29 = vmul.f32 %v5294_v39, %v1931_v1  ;;  %v2159_v20 = vadd.f32 %v2143_v27, %v2110_v59  ;;  %v1997_v11 = vmul.f32 %v5297_v10, %v1980_v17  ;;  %v2046_v25 = vmul.f32 %v5300_v14, %v2029_v26 }
 0x2b7   : > { %v2095_v50 = vmul.f32 %v5303_v60, %v2078_v5  ;;  %v2109_v38 = vadd.f32 %v2093_v8, %v2060_v18  ;;  %v1915_v16 = vadd.f32 %v1899_v56, %v1866_v32  ;;  %v2127_v49 = vmax.f32 %v5505_v42, -0.2 }
 0x2b8   : > { %v5525_v40 = vadd.f32 %v2192_v28, %v2159_v20  ;;  %v1883_v45 = vmax.f32 %v5507_v3, -0.8666667  ;;  %v1932_v6 = vmax.f32 %v5507_v3, -0.73333335  ;;  %v1981_v27 = vmax.f32 %v5507_v3, -0.6 }
 0x2b9   : > { %v5530_v58 = vadd.f32 %v2142_v37, %v2109_v38  ;;  %v1964_v1 = vadd.f32 %v1948_v29, %v1915_v16  ;;  %v2144_v59 = vmul.f32 %v5309_v31, %v2127_v49  ;;  %v1867_v8 = vadd.f32 %v5306_v24, %v1850_v9 }
 0x2ba   : > { %v1900_v17 = vmul.f32 %v5289_v23, %v1883_v45  ;;  %v1949_v26 = vmul.f32 %v5294_v39, %v1932_v6  ;;  %v1998_v28 = vmul.f32 %v5297_v10, %v1981_v27  ;;  %v2030_v4 = vmax.f32 %v5507_v3, -0.46666667 }
 0x2bb   : > { %v2013_v5 = vadd.f32 %v1997_v11, %v1964_v1  ;;  %v2079_v18 = vmax.f32 %v5507_v3, -0.33333334  ;;  %v2128_v32 = vmax.f32 %v5507_v3, -0.2  ;;  %v2177_v37 = vmax.f32 %v5507_v3, -0.06666667 }
 0x2bc   : > { %v1916_v56 = vadd.f32 %v1900_v17, %v1867_v8  ;;  %v2047_v49 = vmul.f32 %v5300_v14, %v2030_v4  ;;  %v3927_v29 = vclamps-f32 %v1709_v47, 1.0  ;;  %v1885_v9 = vmax.f32 %v5509_v2, -0.8666667 }
 0x2bd   : > { %v2062_v20 = vadd.f32 %v2046_v25, %v2013_v5  ;;  %v2096_v38 = vmul.f32 %v5303_v60, %v2079_v18  ;;  %v2145_v16 = vmul.f32 %v5309_v31, %v2128_v32  ;;  %v2194_v45 = vmul.f32 %v5312_v33, %v2177_v37 }
 0x2be   : > { %v1965_v11 = vadd.f32 %v1949_v26, %v1916_v56  ;;  %v1852_v6 = vmul.f32 %v3927_v29, %v5286_v35  ;;  %v1902_v27 = vmul.f32 %v5289_v23, %v1885_v9  ;;  %v1934_v1 = vmax.f32 %v5509_v2, -0.73333335  ;;  %v5560_v29 = vpop.permute.xlu1 %1525 }
 0x2bf   : > { %v2111_v8 = vadd.f32 %v2095_v50, %v2062_v20  ;;  %v1983_v17 = vmax.f32 %v5509_v2, -0.6  ;;  %v2032_v47 = vmax.f32 %v5509_v2, -0.46666667  ;;  %v2081_v25 = vmax.f32 %v5509_v2, -0.33333334 }
 0x2c0   : > { %v2014_v4 = vadd.f32 %v1998_v28, %v1965_v11  ;;  %v1869_v5 = vadd.f32 %v5306_v24, %v1852_v6  ;;  %v1951_v18 = vmul.f32 %v5294_v39, %v1934_v1  ;;  %v2130_v26 = vmax.f32 %v5509_v2, -0.2 }
 0x2c1   : > { %v5555_v32 = vadd.f32 %v2144_v59, %v2111_v8  ;;  %v2000_v37 = vmul.f32 %v5297_v10, %v1983_v17  ;;  %v2049_v56 = vmul.f32 %v5300_v14, %v2032_v47  ;;  %v2098_v50 = vmul.f32 %v5303_v60, %v2081_v25 }
 0x2c2   : > { %v2063_v9 = vadd.f32 %v2047_v49, %v2014_v4  ;;  %v1918_v20 = vadd.f32 %v1902_v27, %v1869_v5  ;;  %v2147_v28 = vmul.f32 %v5309_v31, %v2130_v26  ;;  %v2179_v11 = vmax.f32 %v5509_v2, -0.06666667 }
 0x2c3   : > { %v1622_v6 = vadd.f32 %v5360_v57, %v5490_v48  ;;  %v1711_v59 = vadd.f32 %v5415_v15, %v5490_v48  ;;  %v1626_v1 = vadd.f32 %v5375_v46, %v5560_v29  ;;  %v5572_v8 = vadd.f32 %v5427_v41, %v5560_v29 }
 0x2c4   : > { %v2112_v17 = vadd.f32 %v2096_v38, %v2063_v9  ;;  %v1967_v49 = vadd.f32 %v1951_v18, %v1918_v20  ;;  %v2196_v27 = vmul.f32 %v5312_v33, %v2179_v11  ;;  %v5577_v47 = vadd.f32 %v5379_v36, %v5560_v29 }
 0x2c5   : > { %v5579_v25 = vmin.f32 %v1622_v6, 1.0  ;;  %v3926_v57 = vclamps-f32 %v1622_v6, 1.0  ;;  %v5581_v4 = vmin.f32 %v1711_v59, 1.0  ;;  %v3928_v15 = vclamps-f32 %v1711_v59, 1.0 }
 0x2c6   : > { %v2161_v48 = vadd.f32 %v2145_v16, %v2112_v17  ;;  %v2016_v46 = vadd.f32 %v2000_v37, %v1967_v49  ;;  %v5583_v5 = vmin.f32 %v1626_v1, 1.0  ;;  %v3929_v41 = vclamps-f32 %v1626_v1, 1.0 }
 0x2c7   : > { %v1851_v38 = vmul.f32 %v3926_v57, %v5286_v35  ;;  %v1884_v18 = vmax.f32 %v5579_v25, -0.8666667  ;;  %v1933_v26 = vmax.f32 %v5579_v25, -0.73333335  ;;  %v1982_v36 = vmax.f32 %v5579_v25, -0.6 }
 0x2c8   : > { %6896 = vst [vmem:[#allocation31_spill] sm:$0xff] %v5583_v5  ;;  %v5589_v9 = vadd.f32 %v2194_v45, %v2161_v48  ;;  %v2065_v20 = vadd.f32 %v2049_v56, %v2016_v46  ;;  %v2031_v11 = vmax.f32 %v5579_v25, -0.46666667  ;;  %v2080_v6 = vmax.f32 %v5579_v25, -0.33333334 }
 0x2c9   : > { %v1868_v16 = vadd.f32 %v5306_v24, %v1851_v38  ;;  %v1901_v37 = vmul.f32 %v5289_v23, %v1884_v18  ;;  %v1950_v59 = vmul.f32 %v5294_v39, %v1933_v26  ;;  %v1999_v1 = vmul.f32 %v5297_v10, %v1982_v36 }
 0x2ca   : > { %6897 = vst [vmem:[#allocation32_spill] sm:$0xff] %v5589_v9  ;;  %v2114_v17 = vadd.f32 %v2098_v50, %v2065_v20  ;;  %v2048_v49 = vmul.f32 %v5300_v14, %v2031_v11  ;;  %v2097_v57 = vmul.f32 %v5303_v60, %v2080_v6  ;;  %v2129_v45 = vmax.f32 %v5579_v25, -0.2 }
 0x2cb   : > { %v1917_v56 = vadd.f32 %v1901_v37, %v1868_v16  ;;  %v1853_v48 = vmul.f32 %v3928_v15, %v5286_v35  ;;  %v1886_v46 = vmax.f32 %v5581_v4, -0.8666667  ;;  %v1935_v38 = vmax.f32 %v5581_v4, -0.73333335 }
 0x2cc   : > { %v2163_v2 = vadd.f32 %v2147_v28, %v2114_v17  ;;  %v2146_v18 = vmul.f32 %v5309_v31, %v2129_v45  ;;  %v1984_v26 = vmax.f32 %v5581_v4, -0.6  ;;  %v2033_v50 = vmax.f32 %v5581_v4, -0.46666667 }
 0x2cd   : > { %v1966_v36 = vadd.f32 %v1950_v59, %v1917_v56  ;;  %v1870_v20 = vadd.f32 %v5306_v24, %v1853_v48  ;;  %v1903_v11 = vmul.f32 %v5289_v23, %v1886_v46  ;;  %v1952_v6 = vmul.f32 %v5294_v39, %v1935_v38 }
 0x2ce   : > { %v5609_v16 = vadd.f32 %v2196_v27, %v2163_v2  ;;  %v2001_v15 = vmul.f32 %v5297_v10, %v1984_v26  ;;  %v2050_v37 = vmul.f32 %v5300_v14, %v2033_v50  ;;  %v2082_v28 = vmax.f32 %v5581_v4, -0.33333334 }
 0x2cf   : > { %v2015_v17 = vadd.f32 %v1999_v1, %v1966_v36  ;;  %v1919_v45 = vadd.f32 %v1903_v11, %v1870_v20  ;;  %v2131_v9 = vmax.f32 %v5581_v4, -0.2  ;;  %v1854_v59 = vmul.f32 %v3929_v41, %v5286_v35 }
 0x2d0   : > { %6898 = vst [vmem:[#allocation33_spill] sm:$0xff] %v5609_v16  ;;  %v2099_v56 = vmul.f32 %v5303_v60, %v2082_v28  ;;  %v1887_v48 = vmax.f32 %v5583_v5, -0.8666667  ;;  %v1936_v46 = vmax.f32 %v5583_v5, -0.73333335 }
 0x2d1   : > { %v1985_v2 = vmax.f32 %v5583_v5, -0.6  ;;  %v2064_v27 = vadd.f32 %v2048_v49, %v2015_v17  ;;  %v1968_v38 = vadd.f32 %v1952_v6, %v1919_v45  ;;  %v2148_v26 = vmul.f32 %v5309_v31, %v2131_v9 }
 0x2d2   : > { %v1871_v50 = vadd.f32 %v5306_v24, %v1854_v59  ;;  %v1904_v1 = vmul.f32 %v5289_v23, %v1887_v48  ;;  %v1953_v36 = vmul.f32 %v5294_v39, %v1936_v46  ;;  %v2034_v20 = vmax.f32 %v5583_v5, -0.46666667 }
 0x2d3   : > { %v2002_v41 = vmul.f32 %v5297_v10, %v1985_v2  ;;  %v2113_v11 = vadd.f32 %v2097_v57, %v2064_v27  ;;  %v2017_v28 = vadd.f32 %v2001_v15, %v1968_v38  ;;  %v2083_v16 = vmax.f32 %v5583_v5, -0.33333334 }
 0x2d4   : > { %v2132_v3 = vmax.f32 %v5583_v5, -0.2  ;;  %v1920_v49 = vadd.f32 %v1904_v1, %v1871_v50  ;;  %v2051_v6 = vmul.f32 %v5300_v14, %v2034_v20  ;;  %v2181_v9 = vmax.f32 %v5583_v5, -0.06666667 }
 0x2d5   : > { %v5631_v17 = vmin.f32 %v5572_v8, 1.0  ;;  %v5633_v45 = vadd.f32 %v2146_v18, %v2113_v11  ;;  %v2066_v59 = vadd.f32 %v2050_v37, %v2017_v28  ;;  %v2100_v48 = vmul.f32 %v5303_v60, %v2083_v16 }
 0x2d6   : > { %v2149_v57 = vmul.f32 %v5309_v31, %v2132_v3  ;;  %v1969_v15 = vadd.f32 %v1953_v36, %v1920_v49  ;;  %v2198_v46 = vmul.f32 %v5312_v33, %v2181_v9  ;;  %v3931_v2 = vclamps-f32 %v5572_v8, 1.0 }
 0x2d7   : > { %6899 = vst [vmem:[#allocation34_spill] sm:$0xff] %v5631_v17  ;;  %v1889_v27 = vmax.f32 %v5631_v17, -0.8666667  ;;  %v2115_v38 = vadd.f32 %v2099_v56, %v2066_v59  ;;  %v1938_v50 = vmax.f32 %v5631_v17, -0.73333335 }
 0x2d8   : > { %v1987_v1 = vmax.f32 %v5631_v17, -0.6  ;;  %v2036_v18 = vmax.f32 %v5631_v17, -0.46666667  ;;  %v2018_v20 = vadd.f32 %v2002_v41, %v1969_v15  ;;  %v1856_v37 = vmul.f32 %v3931_v2, %v5286_v35 }
 0x2d9   : > { %v1906_v16 = vmul.f32 %v5289_v23, %v1889_v27  ;;  %v2085_v3 = vmax.f32 %v5631_v17, -0.33333334  ;;  %v5646_v36 = vadd.f32 %v2148_v26, %v2115_v38  ;;  %v1955_v8 = vmul.f32 %v5294_v39, %v1938_v50 }
 0x2da   : > { %v2004_v11 = vmul.f32 %v5297_v10, %v1987_v1  ;;  %v2053_v56 = vmul.f32 %v5300_v14, %v2036_v18  ;;  %v2067_v28 = vadd.f32 %v2051_v6, %v2018_v20  ;;  %v1873_v49 = vadd.f32 %v5306_v24, %v1856_v37 }
 0x2db   : > { %v2102_v9 = vmul.f32 %v5303_v60, %v2085_v3  ;;  %v2134_v41 = vmax.f32 %v5631_v17, -0.2  ;;  %v2183_v59 = vmax.f32 %v5631_v17, -0.06666667  ;;  %v5656_v15 = vmin.f32 %v5577_v47, 1.0 }
 0x2dc   : > { %v3930_v26 = vclamps-f32 %v5577_v47, 1.0  ;;  %v1717_v2 = vadd.f32 %v5433_v53, %v5560_v29  ;;  %v2116_v27 = vadd.f32 %v2100_v48, %v2067_v28  ;;  %v1922_v38 = vadd.f32 %v1906_v16, %v1873_v49 }
 0x2dd   : > { %v2151_v6 = vmul.f32 %v5309_v31, %v2134_v41  ;;  %v2170_v50 = vmax.f32 %v5332_v63, -0.06666667  ;;  %v2200_v1 = vmul.f32 %v5312_v33, %v2183_v59  ;;  %v1888_v20 = vmax.f32 %v5656_v15, -0.8666667 }
 0x2de   : > { %v1855_v18 = vmul.f32 %v3930_v26, %v5286_v35  ;;  %v1937_v37 = vmax.f32 %v5656_v15, -0.73333335  ;;  %v2165_v3 = vadd.f32 %v2149_v57, %v2116_v27  ;;  %v1971_v17 = vadd.f32 %v1955_v8, %v1922_v38 }
 0x2df   : > { %v1986_v47 = vmax.f32 %v5656_v15, -0.6  ;;  %v2035_v53 = vmax.f32 %v5656_v15, -0.46666667  ;;  %v1905_v48 = vmul.f32 %v5289_v23, %v1888_v20  ;;  %v2084_v28 = vmax.f32 %v5656_v15, -0.33333334 }
 0x2e0   : > { %v1872_v29 = vadd.f32 %v5306_v24, %v1855_v18  ;;  %v1954_v16 = vmul.f32 %v5294_v39, %v1937_v37  ;;  %v5673_v49 = vadd.f32 %v2198_v46, %v2165_v3  ;;  %v2020_v41 = vadd.f32 %v2004_v11, %v1971_v17 }
 0x2e1   : > { %v2003_v59 = vmul.f32 %v5297_v10, %v1986_v47  ;;  %v2052_v57 = vmul.f32 %v5300_v14, %v2035_v53  ;;  %v2101_v26 = vmul.f32 %v5303_v60, %v2084_v28  ;;  %v2133_v27 = vmax.f32 %v5656_v15, -0.2 }
 0x2e2   : > { %v1921_v8 = vadd.f32 %v1905_v48, %v1872_v29  ;;  %v5679_v38 = vmin.f32 %v1717_v2, 1.0  ;;  %v2069_v18 = vadd.f32 %v2053_v56, %v2020_v41  ;;  %v3932_v20 = vclamps-f32 %v1717_v2, 1.0 }
 0x2e3   : > { %v2174_v37 = vmax.f32 %v5455_v19, -0.06666667  ;;  %v2187_v5 = vmul.f32 %v5312_v33, %v2170_v50  ;;  %v2150_v17 = vmul.f32 %v5309_v31, %v2133_v27 }
 0x2e4   : > { %v1970_v46 = vadd.f32 %v1954_v16, %v1921_v8  ;;  %v1890_v11 = vmax.f32 %v5679_v38, -0.8666667  ;;  %v1939_v3 = vmax.f32 %v5679_v38, -0.73333335  ;;  %v2118_v47 = vadd.f32 %v2102_v9, %v2069_v18 }
 0x2e5   : > { %v1857_v53 = vmul.f32 %v3932_v20, %v5286_v35  ;;  %v1988_v29 = vmax.f32 %v5679_v38, -0.6  ;;  %v2037_v48 = vmax.f32 %v5679_v38, -0.46666667  ;;  %v2086_v50 = vmax.f32 %v5679_v38, -0.33333334 }
 0x2e6   : > { %v2019_v56 = vadd.f32 %v2003_v59, %v1970_v46  ;;  %v1907_v2 = vmul.f32 %v5289_v23, %v1890_v11  ;;  %v1956_v28 = vmul.f32 %v5294_v39, %v1939_v3  ;;  %v2167_v16 = vadd.f32 %v2151_v6, %v2118_v47 }
 0x2e7   : > { %v1874_v41 = vadd.f32 %v5306_v24, %v1857_v53  ;;  %v2005_v8 = vmul.f32 %v5297_v10, %v1988_v29  ;;  %v2054_v9 = vmul.f32 %v5300_v14, %v2037_v48  ;;  %v2103_v35 = vmul.f32 %v5303_v60, %v2086_v50 }
 0x2e8   : > { %v2068_v27 = vadd.f32 %v2052_v57, %v2019_v56  ;;  %v2135_v18 = vmax.f32 %v5679_v38, -0.2  ;;  %v2191_v59 = vmul.f32 %v5312_v33, %v2174_v37  ;;  %v5698_v20 = vadd.f32 %v2200_v1, %v2167_v16 }
 0x2e9   : > { %v1923_v23 = vadd.f32 %v1907_v2, %v1874_v41  ;;  %v2203_v39 = vadd.f32 %v2187_v5, %v5429_v13  ;;  %v2219_v6 = vmax.f32 %v5332_v63, 0.06666667  ;;  %v2223_v14 = vmax.f32 %v5455_v19, 0.06666667 }
 0x2ea   : > { %v2117_v46 = vadd.f32 %v2101_v26, %v2068_v27  ;;  %v2152_v24 = vmul.f32 %v5309_v31, %v2135_v18  ;;  %v2207_v10 = vadd.f32 %v2191_v59, %v5530_v58  ;;  %v2268_v11 = vmax.f32 %v5332_v63, 0.2 }
 0x2eb   : > { %v1972_v57 = vadd.f32 %v1956_v28, %v1923_v23  ;;  %v2236_v60 = vmul.f32 %v5316_v52, %v2219_v6  ;;  %v2272_v1 = vmax.f32 %v5455_v19, 0.2  ;;  %v2240_v13 = vmul.f32 %v5316_v52, %v2223_v14 }
 0x2ec   : > { %v5708_v37 = vadd.f32 %v2150_v17, %v2117_v46  ;;  %v2317_v5 = vmax.f32 %v5332_v63, 0.33333334  ;;  %v2321_v26 = vmax.f32 %v5455_v19, 0.33333334  ;;  %v2285_v58 = vmul.f32 %v5319_v55, %v2268_v11 }
 0x2ed   : > { %v2021_v31 = vadd.f32 %v2005_v8, %v1972_v57  ;;  %v2252_v3 = vadd.f32 %v2236_v60, %v2203_v39  ;;  %v2289_v47 = vmul.f32 %v5319_v55, %v2272_v1  ;;  %v2256_v53 = vadd.f32 %v2240_v13, %v2207_v10 }
 0x2ee   : > { %v2334_v29 = vmul.f32 %v5322_v62, %v2317_v5  ;;  %v2338_v48 = vmul.f32 %v5322_v62, %v2321_v26  ;;  %v2366_v17 = vmax.f32 %v5332_v63, 0.46666667  ;;  %v2370_v28 = vmax.f32 %v5455_v19, 0.46666667 }
 0x2ef   : > { %v2070_v56 = vadd.f32 %v2054_v9, %v2021_v31  ;;  %v2301_v2 = vadd.f32 %v2285_v58, %v2252_v3  ;;  %v2415_v50 = vmax.f32 %v5332_v63, 0.6  ;;  %v2305_v16 = vadd.f32 %v2289_v47, %v2256_v53 }
 0x2f0   : > { %v2383_v41 = vmul.f32 %v5327_v54, %v2366_v17  ;;  %v2419_v8 = vmax.f32 %v5455_v19, 0.6  ;;  %v2464_v27 = vmax.f32 %v5332_v63, 0.73333335  ;;  %v2387_v23 = vmul.f32 %v5327_v54, %v2370_v28 }
 0x2f1   : > { %v2119_v18 = vadd.f32 %v2103_v35, %v2070_v56  ;;  %v2350_v59 = vadd.f32 %v2334_v29, %v2301_v2  ;;  %v2432_v39 = vmul.f32 %v5330_v12, %v2415_v50  ;;  %v2354_v6 = vadd.f32 %v2338_v48, %v2305_v16 }
 0x2f2   : > { %v2436_v9 = vmul.f32 %v5330_v12, %v2419_v8  ;;  %v2468_v46 = vmax.f32 %v5455_v19, 0.73333335  ;;  %v2481_v10 = vmul.f32 %v5335_v51, %v2464_v27  ;;  %v2513_v60 = vmax.f32 %v5332_v63, 0.8666667 }
 0x2f3   : > { %v5728_v14 = vadd.f32 %v2152_v24, %v2119_v18  ;;  %v2399_v57 = vadd.f32 %v2383_v41, %v2350_v59  ;;  %v2517_v11 = vmax.f32 %v5455_v19, 0.8666667  ;;  %v2403_v35 = vadd.f32 %v2387_v23, %v2354_v6 }
 0x2f4   : > { %v2485_v1 = vmul.f32 %v5335_v51, %v2468_v46  ;;  %v2172_v13 = vmax.f32 %v5389_v21, -0.06666667  ;;  %v2176_v5 = vmax.f32 %v5505_v42, -0.06666667  ;;  %v2530_v31 = vmul.f32 %v5337_v44, %v2513_v60 }
 0x2f5   : > { %v2448_v26 = vadd.f32 %v2432_v39, %v2399_v57  ;;  %v2534_v3 = vmul.f32 %v5337_v44, %v2517_v11  ;;  %v2221_v24 = vmax.f32 %v5389_v21, 0.06666667  ;;  %v2452_v58 = vadd.f32 %v2436_v9, %v2403_v35 }
 0x2f6   : > { %v2189_v47 = vmul.f32 %v5312_v33, %v2172_v13  ;;  %v2193_v63 = vmul.f32 %v5312_v33, %v2176_v5  ;;  %v2225_v19 = vmax.f32 %v5505_v42, 0.06666667  ;;  %v2270_v48 = vmax.f32 %v5389_v21, 0.2 }
 0x2f7   : > { %v2497_v53 = vadd.f32 %v2481_v10, %v2448_v26  ;;  %v2238_v29 = vmul.f32 %v5316_v52, %v2221_v24  ;;  %v2274_v17 = vmax.f32 %v5505_v42, 0.2  ;;  %v2501_v56 = vadd.f32 %v2485_v1, %v2452_v58 }
 0x2f8   : > { %v2205_v2 = vadd.f32 %v2189_v47, %v5467_v30  ;;  %v2209_v28 = vadd.f32 %v2193_v63, %v5555_v32  ;;  %v2242_v50 = vmul.f32 %v5316_v52, %v2225_v19  ;;  %v2287_v41 = vmul.f32 %v5319_v55, %v2270_v48 }
 0x2f9   : > { %v2546_v16 = vadd.f32 %v2530_v31, %v2497_v53  ;;  %v2291_v8 = vmul.f32 %v5319_v55, %v2274_v17  ;;  %v2319_v27 = vmax.f32 %v5389_v21, 0.33333334  ;;  %v2550_v18 = vadd.f32 %v2534_v3, %v2501_v56 }
 0x2fa   : > { %v2254_v59 = vadd.f32 %v2238_v29, %v2205_v2  ;;  %v2258_v23 = vadd.f32 %v2242_v50, %v2209_v28  ;;  %v2323_v39 = vmax.f32 %v5505_v42, 0.33333334  ;;  %v2368_v30 = vmax.f32 %v5389_v21, 0.46666667 }
 0x2fb   : > { %v2336_v6 = vmul.f32 %v5322_v62, %v2319_v27  ;;  %v2372_v32 = vmax.f32 %v5505_v42, 0.46666667  ;;  %v2417_v9 = vmax.f32 %v5389_v21, 0.6  ;;  %v3994_v46 = vpack.c.bf16 %v2550_v18, %v2546_v16 }
 0x2fc   : > { %v2303_v10 = vadd.f32 %v2287_v41, %v2254_v59  ;;  %v2307_v57 = vadd.f32 %v2291_v8, %v2258_v23  ;;  %v2340_v60 = vmul.f32 %v5322_v62, %v2323_v39  ;;  %v2385_v11 = vmul.f32 %v5327_v54, %v2368_v30 }
 0x2fd   : > { %v2389_v35 = vmul.f32 %v5327_v54, %v2372_v32  ;;  %v2421_v1 = vmax.f32 %v5505_v42, 0.6  ;;  %v2434_v13 = vmul.f32 %v5330_v12, %v2417_v9  ;;  %3995 = vmatprep.subr.bf16.mxu0 %v3994_v46  ;;  %v2466_v31 = vmax.f32 %v5389_v21, 0.73333335 }
 0x2fe   : > { %v2352_v5 = vadd.f32 %v2336_v6, %v2303_v10  ;;  %v2356_v26 = vadd.f32 %v2340_v60, %v2307_v57  ;;  %v2470_v3 = vmax.f32 %v5505_v42, 0.73333335  ;;  %v2515_v58 = vmax.f32 %v5389_v21, 0.8666667 }
 0x2ff   : > { %v2438_v24 = vmul.f32 %v5330_v12, %v2421_v1  ;;  %v2519_v47 = vmax.f32 %v5505_v42, 0.8666667  ;;  %v2218_v63 = vmax.f32 %v5324_v61, 0.06666667  ;;  %v2483_v29 = vmul.f32 %v5335_v51, %v2466_v31 }
 0x300   : > { %v2401_v19 = vadd.f32 %v2385_v11, %v2352_v5  ;;  %v2405_v53 = vadd.f32 %v2389_v35, %v2356_v26  ;;  %v2487_v48 = vmul.f32 %v5335_v51, %v2470_v3  ;;  %v2532_v17 = vmul.f32 %v5337_v44, %v2515_v58 }
 0x301   : > { %v2536_v56 = vmul.f32 %v5337_v44, %v2519_v47  ;;  %v2222_v2 = vmax.f32 %v5382_v0, 0.06666667  ;;  %v2235_v28 = vmul.f32 %v5316_v52, %v2218_v63  ;;  %v2267_v42 = vmax.f32 %v5324_v61, 0.2 }
 0x302   : > { %v2450_v50 = vadd.f32 %v2434_v13, %v2401_v19  ;;  %v2454_v21 = vadd.f32 %v2438_v24, %v2405_v53  ;;  %v2271_v16 = vmax.f32 %v5382_v0, 0.2  ;;  %v2316_v27 = vmax.f32 %v5324_v61, 0.33333334 }
 0x303   : > { %v2239_v41 = vmul.f32 %v5316_v52, %v2222_v2  ;;  %v2251_v8 = vadd.f32 %v2235_v28, %v5412_v43  ;;  %v2320_v18 = vmax.f32 %v5382_v0, 0.33333334  ;;  %v2284_v39 = vmul.f32 %v5319_v55, %v2267_v42 }
 0x304   : > { %v2499_v59 = vadd.f32 %v2483_v29, %v2450_v50  ;;  %v2503_v23 = vadd.f32 %v2487_v48, %v2454_v21  ;;  %v2288_v6 = vmul.f32 %v5319_v55, %v2271_v16  ;;  %v2333_v32 = vmul.f32 %v5322_v62, %v2316_v27 }
 0x305   : > { %v2255_v30 = vadd.f32 %v2239_v41, %v5485_v34  ;;  %v2337_v9 = vmul.f32 %v5322_v62, %v2320_v18  ;;  %v2365_v46 = vmax.f32 %v5324_v61, 0.46666667  ;;  %v2300_v57 = vadd.f32 %v2284_v39, %v2251_v8  ;;  %v6900_v39 = vld [vmem:[#allocation28_spill] sm:$0xff] }
 0x306   : > { %v2548_v10 = vadd.f32 %v2532_v17, %v2499_v59  ;;  %v2552_v43 = vadd.f32 %v2536_v56, %v2503_v23  ;;  %v2369_v60 = vmax.f32 %v5382_v0, 0.46666667  ;;  %v2414_v1 = vmax.f32 %v5324_v61, 0.6 }
 0x307   : > { %v2304_v11 = vadd.f32 %v2288_v6, %v2255_v30  ;;  %v2382_v35 = vmul.f32 %v5327_v54, %v2365_v46  ;;  %v2418_v13 = vmax.f32 %v5382_v0, 0.6  ;;  %v2349_v34 = vadd.f32 %v2333_v32, %v2300_v57 }
 0x308   : > { %v4002_v5 = vpack.c.bf16 %v2552_v43, %v2548_v10  ;;  %v2386_v26 = vmul.f32 %v5327_v54, %v2369_v60  ;;  %v2463_v31 = vmax.f32 %v5324_v61, 0.73333335  ;;  %v2431_v24 = vmul.f32 %v5330_v12, %v2414_v1 }
 0x309   : > { %v2353_v3 = vadd.f32 %v2337_v9, %v2304_v11  ;;  %v2435_v58 = vmul.f32 %v5330_v12, %v2418_v13  ;;  %v2467_v47 = vmax.f32 %v5382_v0, 0.73333335  ;;  %v2398_v63 = vadd.f32 %v2382_v35, %v2349_v34 }
 0x30a   : > { %4003 = vmatprep.subr.bf16.mxu1 %v4002_v5  ;;  %v2480_v19 = vmul.f32 %v5335_v51, %v2463_v31  ;;  %v2512_v53 = vmax.f32 %v5324_v61, 0.8666667  ;;  %v2516_v29 = vmax.f32 %v5382_v0, 0.8666667  ;;  %v2220_v56 = vmax.f32 %v5387_v22, 0.06666667 }
 0x30b   : > { %v2402_v48 = vadd.f32 %v2386_v26, %v2353_v3  ;;  %v2484_v17 = vmul.f32 %v5335_v51, %v2467_v47  ;;  %v2224_v2 = vmax.f32 %v5461_v7, 0.06666667  ;;  %v2447_v28 = vadd.f32 %v2431_v24, %v2398_v63 }
 0x30c   : > { %v2529_v50 = vmul.f32 %v5337_v44, %v2512_v53  ;;  %v2533_v21 = vmul.f32 %v5337_v44, %v2516_v29  ;;  %v2269_v42 = vmax.f32 %v5387_v22, 0.2  ;;  %v2237_v41 = vmul.f32 %v5316_v52, %v2220_v56 }
 0x30d   : > { %v2451_v16 = vadd.f32 %v2435_v58, %v2402_v48  ;;  %v2241_v61 = vmul.f32 %v5316_v52, %v2224_v2  ;;  %v2273_v0 = vmax.f32 %v5461_v7, 0.2  ;;  %v2496_v8 = vadd.f32 %v2480_v19, %v2447_v28 }
 0x30e   : > { %v2286_v27 = vmul.f32 %v5319_v55, %v2269_v42  ;;  %v2318_v18 = vmax.f32 %v5387_v22, 0.33333334  ;;  %v2322_v59 = vmax.f32 %v5461_v7, 0.33333334  ;;  %v2253_v6 = vadd.f32 %v2237_v41, %v6900_v39 }
 0x30f   : > { %v2500_v23 = vadd.f32 %v2484_v17, %v2451_v16  ;;  %v2257_v30 = vadd.f32 %v2241_v61, %v5525_v40  ;;  %v2290_v32 = vmul.f32 %v5319_v55, %v2273_v0  ;;  %v2545_v9 = vadd.f32 %v2529_v50, %v2496_v8 }
 0x310   : > { %v2335_v46 = vmul.f32 %v5322_v62, %v2318_v18  ;;  %v2339_v10 = vmul.f32 %v5322_v62, %v2322_v59  ;;  %v2367_v43 = vmax.f32 %v5387_v22, 0.46666667  ;;  %v2302_v60 = vadd.f32 %v2286_v27, %v2253_v6 }
 0x311   : > { %v2549_v57 = vadd.f32 %v2533_v21, %v2500_v23  ;;  %v2306_v11 = vadd.f32 %v2290_v32, %v2257_v30  ;;  %v2371_v35 = vmax.f32 %v5461_v7, 0.46666667  ;;  %v2416_v13 = vmax.f32 %v5387_v22, 0.6 }
 0x312   : > { %v2384_v1 = vmul.f32 %v5327_v54, %v2367_v43  ;;  %v2420_v40 = vmax.f32 %v5461_v7, 0.6  ;;  %v2465_v5 = vmax.f32 %v5387_v22, 0.73333335  ;;  %v2351_v26 = vadd.f32 %v2335_v46, %v2302_v60 }
 0x313   : > { %v3996_v34 = vpack.c.bf16 %v2549_v57, %v2545_v9  ;;  %v2355_v31 = vadd.f32 %v2339_v10, %v2306_v11  ;;  %v2388_v3 = vmul.f32 %v5327_v54, %v2371_v35  ;;  %v2433_v24 = vmul.f32 %v5330_v12, %v2416_v13 }
 0x314   : > { %v2437_v58 = vmul.f32 %v5330_v12, %v2420_v40  ;;  %v2469_v47 = vmax.f32 %v5461_v7, 0.73333335  ;;  %v2482_v63 = vmul.f32 %v5335_v51, %v2465_v5  ;;  %v2400_v19 = vadd.f32 %v2384_v1, %v2351_v26 }
 0x315   : > { %3997 = vmatpush1.bf16.msra.mxu0 %v3996_v34  ;;  %v2404_v53 = vadd.f32 %v2388_v3, %v2355_v31  ;;  %v2514_v29 = vmax.f32 %v5387_v22, 0.8666667  ;;  %v2518_v48 = vmax.f32 %v5461_v7, 0.8666667  ;;  %v2178_v56 = vmax.f32 %v5579_v25, -0.06666667 }
 0x316   : > { %v2486_v17 = vmul.f32 %v5335_v51, %v2469_v47  ;;  %v2182_v2 = vmax.f32 %v5656_v15, -0.06666667  ;;  %v2227_v28 = vmax.f32 %v5579_v25, 0.06666667  ;;  %v2449_v50 = vadd.f32 %v2433_v24, %v2400_v19 }
 0x317   : > { %v2453_v21 = vadd.f32 %v2437_v58, %v2404_v53  ;;  %v2531_v42 = vmul.f32 %v5337_v44, %v2514_v29  ;;  %v2535_v16 = vmul.f32 %v5337_v44, %v2518_v48  ;;  %v2195_v41 = vmul.f32 %v5312_v33, %v2178_v56 }
 0x318   : > { %v2199_v22 = vmul.f32 %v5312_v33, %v2182_v2  ;;  %v2231_v7 = vmax.f32 %v5656_v15, 0.06666667  ;;  %v2244_v61 = vmul.f32 %v5316_v52, %v2227_v28  ;;  %v2498_v0 = vadd.f32 %v2482_v63, %v2449_v50 }
 0x319   : > { %v2502_v8 = vadd.f32 %v2486_v17, %v2453_v21  ;;  %v2276_v27 = vmax.f32 %v5579_v25, 0.2  ;;  %v2280_v18 = vmax.f32 %v5656_v15, 0.2  ;;  %v2211_v59 = vadd.f32 %v2195_v41, %v5633_v45 }
 0x31a   : > { %v2215_v23 = vadd.f32 %v2199_v22, %v5708_v37  ;;  %v2248_v39 = vmul.f32 %v5316_v52, %v2231_v7  ;;  %v2325_v6 = vmax.f32 %v5579_v25, 0.33333334  ;;  %v2547_v30 = vadd.f32 %v2531_v42, %v2498_v0 }
 0x31b   : > { %v2551_v32 = vadd.f32 %v2535_v16, %v2502_v8  ;;  %v2293_v9 = vmul.f32 %v5319_v55, %v2276_v27  ;;  %v2297_v46 = vmul.f32 %v5319_v55, %v2280_v18  ;;  %v2260_v10 = vadd.f32 %v2244_v61, %v2211_v59 }
 0x31c   : > { %v2264_v43 = vadd.f32 %v2248_v39, %v2215_v23  ;;  %v2329_v57 = vmax.f32 %v5656_v15, 0.33333334  ;;  %v2342_v60 = vmul.f32 %v5322_v62, %v2325_v6  ;;  %v2374_v45 = vmax.f32 %v5579_v25, 0.46666667 }
 0x31d   : > { %v4004_v11 = vpack.c.bf16 %v2551_v32, %v2547_v30  ;;  %v2378_v37 = vmax.f32 %v5656_v15, 0.46666667  ;;  %v2423_v35 = vmax.f32 %v5579_v25, 0.6  ;;  %v2309_v1 = vadd.f32 %v2293_v9, %v2260_v10 }
 0x31e   : > { %v2313_v13 = vadd.f32 %v2297_v46, %v2264_v43  ;;  %v2346_v40 = vmul.f32 %v5322_v62, %v2329_v57  ;;  %v2427_v5 = vmax.f32 %v5656_v15, 0.6  ;;  %v2391_v34 = vmul.f32 %v5327_v54, %v2374_v45 }
 0x31f   : > { %4005 = vmatpush1.bf16.msra.mxu1 %v4004_v11  ;;  %v2395_v26 = vmul.f32 %v5327_v54, %v2378_v37  ;;  %v2440_v31 = vmul.f32 %v5330_v12, %v2423_v35  ;;  %v2472_v3 = vmax.f32 %v5579_v25, 0.73333335  ;;  %v2358_v24 = vadd.f32 %v2342_v60, %v2309_v1 }
 0x320   : > { %v2362_v58 = vadd.f32 %v2346_v40, %v2313_v13  ;;  %v2444_v47 = vmul.f32 %v5330_v12, %v2427_v5  ;;  %v2476_v63 = vmax.f32 %v5656_v15, 0.73333335  ;;  %v2521_v53 = vmax.f32 %v5579_v25, 0.8666667 }
 0x321   : > { %v2489_v19 = vmul.f32 %v5335_v51, %v2472_v3  ;;  %v2525_v29 = vmax.f32 %v5656_v15, 0.8666667  ;;  %v2180_v48 = vmax.f32 %v5581_v4, -0.06666667  ;;  %v2407_v17 = vadd.f32 %v2391_v34, %v2358_v24 }
 0x322   : > { %v2411_v56 = vadd.f32 %v2395_v26, %v2362_v58  ;;  %v2493_v2 = vmul.f32 %v5335_v51, %v2476_v63  ;;  %v2184_v28 = vmax.f32 %v5679_v38, -0.06666667  ;;  %v2538_v50 = vmul.f32 %v5337_v44, %v2521_v53 }
 0x323   : > { %v2542_v21 = vmul.f32 %v5337_v44, %v2525_v29  ;;  %v2197_v42 = vmul.f32 %v5312_v33, %v2180_v48  ;;  %v2229_v16 = vmax.f32 %v5581_v4, 0.06666667  ;;  %v2456_v41 = vadd.f32 %v2440_v31, %v2407_v17  ;;  %v6901_v29 = vld [vmem:[#allocation29_spill] sm:$0xff] }
 0x324   : > { %v2460_v25 = vadd.f32 %v2444_v47, %v2411_v56  ;;  %v2201_v15 = vmul.f32 %v5312_v33, %v2184_v28  ;;  %v2233_v22 = vmax.f32 %v5679_v38, 0.06666667  ;;  %v2278_v0 = vmax.f32 %v5581_v4, 0.2  ;;  %v6902_v28 = vld [vmem:[#allocation31_spill] sm:$0xff] }
 0x325   : > { %v2213_v7 = vadd.f32 %v2197_v42, %v5646_v36  ;;  %v2246_v61 = vmul.f32 %v5316_v52, %v2229_v16  ;;  %v2282_v8 = vmax.f32 %v5679_v38, 0.2  ;;  %v2505_v27 = vadd.f32 %v2489_v19, %v2456_v41 }
 0x326   : > { %v2509_v18 = vadd.f32 %v2493_v2, %v2460_v25  ;;  %v2217_v59 = vadd.f32 %v2201_v15, %v5728_v14  ;;  %v2250_v23 = vmul.f32 %v5316_v52, %v2233_v22  ;;  %v2295_v6 = vmul.f32 %v5319_v55, %v2278_v0 }
 0x327   : > { %v2262_v39 = vadd.f32 %v2246_v61, %v2213_v7  ;;  %v2299_v33 = vmul.f32 %v5319_v55, %v2282_v8  ;;  %v2327_v30 = vmax.f32 %v5581_v4, 0.33333334  ;;  %v2554_v36 = vadd.f32 %v2538_v50, %v2505_v27  ;;  %v6903_v7 = vld [vmem:[#allocation32_spill] sm:$0xff] }
 0x328   : > { %v2558_v32 = vadd.f32 %v2542_v21, %v2509_v18  ;;  %v2266_v9 = vadd.f32 %v2250_v23, %v2217_v59  ;;  %v2331_v46 = vmax.f32 %v5679_v38, 0.33333334  ;;  %v2376_v57 = vmax.f32 %v5581_v4, 0.46666667 }
 0x329   : > { %v2311_v10 = vadd.f32 %v2295_v6, %v2262_v39  ;;  %v2344_v43 = vmul.f32 %v5322_v62, %v2327_v30  ;;  %v2380_v14 = vmax.f32 %v5679_v38, 0.46666667  ;;  %v2425_v37 = vmax.f32 %v5581_v4, 0.6 }
 0x32a   : > { %v3998_v60 = vpack.c.bf16 %v2558_v32, %v2554_v36  ;;  %v2315_v11 = vadd.f32 %v2299_v33, %v2266_v9  ;;  %v2348_v45 = vmul.f32 %v5322_v62, %v2331_v46  ;;  %v2393_v1 = vmul.f32 %v5327_v54, %v2376_v57 }
 0x32b   : > { %v2360_v35 = vadd.f32 %v2344_v43, %v2311_v10  ;;  %v2397_v13 = vmul.f32 %v5327_v54, %v2380_v14  ;;  %v2429_v40 = vmax.f32 %v5679_v38, 0.6  ;;  %v2442_v34 = vmul.f32 %v5330_v12, %v2425_v37 }
 0x32c   : > { %3999 = vmatprep.subr.bf16.mxu0 %v3998_v60  ;;  %v2364_v5 = vadd.f32 %v2348_v45, %v2315_v11  ;;  %v2474_v26 = vmax.f32 %v5581_v4, 0.73333335  ;;  %v2478_v31 = vmax.f32 %v5679_v38, 0.73333335  ;;  %v2523_v58 = vmax.f32 %v5581_v4, 0.8666667 }
 0x32d   : > { %v2409_v3 = vadd.f32 %v2393_v1, %v2360_v35  ;;  %v2446_v24 = vmul.f32 %v5330_v12, %v2429_v40  ;;  %v2527_v47 = vmax.f32 %v5679_v38, 0.8666667  ;;  %v2226_v48 = vmax.f32 %v6901_v29, 0.06666667 }
 0x32e   : > { %v2413_v63 = vadd.f32 %v2397_v13, %v2364_v5  ;;  %v2491_v19 = vmul.f32 %v5335_v51, %v2474_v26  ;;  %v2495_v53 = vmul.f32 %v5335_v51, %v2478_v31  ;;  %v2540_v56 = vmul.f32 %v5337_v44, %v2523_v58  ;;  %v6905_v31 = vld [vmem:[#allocation34_spill] sm:$0xff] }
 0x32f   : > { %v2458_v17 = vadd.f32 %v2442_v34, %v2409_v3  ;;  %v2544_v2 = vmul.f32 %v5337_v44, %v2527_v47  ;;  %v2230_v50 = vmax.f32 %v6902_v28, 0.06666667  ;;  %v2243_v42 = vmul.f32 %v5316_v52, %v2226_v48  ;;  %v6904_v34 = vld [vmem:[#allocation30_spill] sm:$0xff] }
 0x330   : > { %v2462_v21 = vadd.f32 %v2446_v24, %v2413_v63  ;;  %v2275_v4 = vmax.f32 %v6901_v29, 0.2  ;;  %v2279_v38 = vmax.f32 %v6902_v28, 0.2  ;;  %v2324_v25 = vmax.f32 %v6901_v29, 0.33333334 }
 0x331   : > { %v2507_v16 = vadd.f32 %v2491_v19, %v2458_v17  ;;  %v2247_v41 = vmul.f32 %v5316_v52, %v2230_v50  ;;  %v2328_v15 = vmax.f32 %v6902_v28, 0.33333334  ;;  %v2259_v61 = vadd.f32 %v2243_v42, %v6903_v7 }
 0x332   : > { %v2511_v22 = vadd.f32 %v2495_v53, %v2462_v21  ;;  %v2292_v0 = vmul.f32 %v5319_v55, %v2275_v4  ;;  %v2296_v8 = vmul.f32 %v5319_v55, %v2279_v38  ;;  %v2341_v59 = vmul.f32 %v5322_v62, %v2324_v25  ;;  %v6906_v21 = vld [vmem:[#allocation33_spill] sm:$0xff] }
 0x333   : > { %v2556_v27 = vadd.f32 %v2540_v56, %v2507_v16  ;;  %v2263_v18 = vadd.f32 %v2247_v41, %v5673_v49  ;;  %v2345_v23 = vmul.f32 %v5322_v62, %v2328_v15  ;;  %v2373_v33 = vmax.f32 %v6901_v29, 0.46666667 }
 0x334   : > { %v2560_v39 = vadd.f32 %v2544_v2, %v2511_v22  ;;  %v2308_v6 = vadd.f32 %v2292_v0, %v2259_v61  ;;  %v2377_v30 = vmax.f32 %v6902_v28, 0.46666667  ;;  %v2422_v32 = vmax.f32 %v6901_v29, 0.6 }
 0x335   : > { %v2312_v36 = vadd.f32 %v2296_v8, %v2263_v18  ;;  %v2426_v9 = vmax.f32 %v6902_v28, 0.6  ;;  %v2471_v46 = vmax.f32 %v6901_v29, 0.73333335  ;;  %v2390_v49 = vmul.f32 %v5327_v54, %v2373_v33 }
 0x336   : > { %v4006_v10 = vpack.c.bf16 %v2560_v39, %v2556_v27  ;;  %v2357_v43 = vadd.f32 %v2341_v59, %v2308_v6  ;;  %v2394_v57 = vmul.f32 %v5327_v54, %v2377_v30  ;;  %v2439_v60 = vmul.f32 %v5330_v12, %v2422_v32 }
 0x337   : > { %v2361_v14 = vadd.f32 %v2345_v23, %v2312_v36  ;;  %v2443_v11 = vmul.f32 %v5330_v12, %v2426_v9  ;;  %v2475_v45 = vmax.f32 %v6902_v28, 0.73333335  ;;  %v2488_v35 = vmul.f32 %v5335_v51, %v2471_v46  ;;  %v2561_v9 = vld [vmem:[%s6907_s15] sm:$0xff] }
 0x338   : > { %4007 = vmatprep.subr.bf16.mxu1 %v4006_v10  ;;  %v2406_v37 = vadd.f32 %v2390_v49, %v2357_v43  ;;  %v2520_v1 = vmax.f32 %v6901_v29, 0.8666667  ;;  %v2524_v13 = vmax.f32 %v6902_v28, 0.8666667  ;;  %v2228_v26 = vmax.f32 %v6904_v34, 0.06666667 }
 0x339   : > { %v2410_v40 = vadd.f32 %v2394_v57, %v2361_v14  ;;  %v2492_v5 = vmul.f32 %v5335_v51, %v2475_v45  ;;  %v2232_v3 = vmax.f32 %v6905_v31, 0.06666667  ;;  %v2277_v63 = vmax.f32 %v6904_v34, 0.2 }
 0x33a   : > { %v2455_v24 = vadd.f32 %v2439_v60, %v2406_v37  ;;  %v2537_v58 = vmul.f32 %v5337_v44, %v2520_v1  ;;  %v2541_v47 = vmul.f32 %v5337_v44, %v2524_v13  ;;  %v2245_v53 = vmul.f32 %v5316_v52, %v2228_v26  ;;  %v6026_v1 = vpop.permute.xlu0 %2571 }
 0x33b   : > { %v2459_v19 = vadd.f32 %v2443_v11, %v2410_v40  ;;  %v2249_v29 = vmul.f32 %v5316_v52, %v2232_v3  ;;  %v2281_v48 = vmax.f32 %v6905_v31, 0.2  ;;  %v2294_v56 = vmul.f32 %v5319_v55, %v2277_v63  ;;  %v2562_v11 = vld [vmem:[%s6907_s15 + $0x8] sm:$0xff] }
 0x33c   : > { %v2504_v17 = vadd.f32 %v2488_v35, %v2455_v24  ;;  %v2326_v2 = vmax.f32 %v6904_v34, 0.33333334  ;;  %v2330_v28 = vmax.f32 %v6905_v31, 0.33333334  ;;  %v2261_v42 = vadd.f32 %v2245_v53, %v6906_v21 }
 0x33d   : > { %v2508_v50 = vadd.f32 %v2492_v5, %v2459_v19  ;;  %v2265_v4 = vadd.f32 %v2249_v29, %v5698_v20  ;;  %v2298_v38 = vmul.f32 %v5319_v55, %v2281_v48  ;;  %v2375_v25 = vmax.f32 %v6904_v34, 0.46666667 }
 0x33e   : > { %v2553_v16 = vadd.f32 %v2537_v58, %v2504_v17  ;;  %v2343_v41 = vmul.f32 %v5322_v62, %v2326_v2  ;;  %v2347_v52 = vmul.f32 %v5322_v62, %v2330_v28  ;;  %v2310_v22 = vadd.f32 %v2294_v56, %v2261_v42 }
 0x33f   : > { %v2557_v15 = vadd.f32 %v2541_v47, %v2508_v50  ;;  %v2314_v7 = vadd.f32 %v2298_v38, %v2265_v4  ;;  %v2379_v61 = vmax.f32 %v6905_v31, 0.46666667  ;;  %v2392_v0 = vmul.f32 %v5327_v54, %v2375_v25 }
 0x340   : > { %v2424_v8 = vmax.f32 %v6904_v34, 0.6  ;;  %v2428_v20 = vmax.f32 %v6905_v31, 0.6  ;;  %v2473_v55 = vmax.f32 %v6904_v34, 0.73333335  ;;  %v2359_v18 = vadd.f32 %v2343_v41, %v2310_v22 }
 0x341   : > { %v4000_v27 = vpack.c.bf16 %v2557_v15, %v2553_v16  ;;  %v2363_v59 = vadd.f32 %v2347_v52, %v2314_v7  ;;  %v2396_v62 = vmul.f32 %v5327_v54, %v2379_v61  ;;  %v2477_v6 = vmax.f32 %v6905_v31, 0.73333335 }
 0x342   : > { %v2441_v23 = vmul.f32 %v5330_v12, %v2424_v8  ;;  %v2445_v39 = vmul.f32 %v5330_v12, %v2428_v20  ;;  %v2408_v33 = vadd.f32 %v2392_v0, %v2359_v18  ;;  %v2522_v36 = vmax.f32 %v6904_v34, 0.8666667 }
 0x343   : > { %4001 = vmatpush1.bf16.msra.mxu0 %v4000_v27  ;;  %v2412_v30 = vadd.f32 %v2396_v62, %v2363_v59  ;;  %v2526_v32 = vmax.f32 %v6905_v31, 0.8666667  ;;  %v2490_v54 = vmul.f32 %v5335_v51, %v2473_v55  ;;  %v2494_v43 = vmul.f32 %v5335_v51, %v2477_v6  ;;  %v2563_v51 = vld [vmem:[%s6907_s15 + $0x10] sm:$0xff] }
 0x344   : > { %v2457_v46 = vadd.f32 %v2441_v23, %v2408_v33  ;;  %v2539_v57 = vmul.f32 %v5337_v44, %v2522_v36  ;;  %v6908_v60 = vmov 0.0   ;;  %v6029_v40 = vstv %s5983_s19  ;;  %s6935_s19 = sld [smem:[#allocation14_spill]] }
 0x345   : > { %v2461_v10 = vadd.f32 %v2445_v39, %v2412_v30  ;;  %v2543_v14 = vmul.f32 %v5337_v44, %v2526_v32  ;;  %v2564_v44 = vld [vmem:[%s6907_s15 + $0x18] sm:$0xff]  ;;  %s2848_s15 = ssub.f32 %s2842_s14, %s2847_s5  ;;  %s2871_s14 = smul.f32 0.6, %s6020_s1  ;;  %v6032_v5 = vstv %s5987_s10  ;;  %v6035_v34 = vstv %s5990_s3 }
 0x346   : > { %3933 = vmatmul.mubr.msk.f32.vlgmr.msra.gmra.mrb[8].mxu0 %vm1528_vm0, %v2561_v9  ;;  %v2506_v12 = vadd.f32 %v2490_v54, %v2457_v46  ;;  %s2881_s5 = smul.f32 7.5, %s2880_s16  ;;  %v6038_v26 = vstv %s5992_s29  ;;  %v6042_v3 = vstv %s5995_s2  ;;  %v6045_v24 = vstv %s5999_s24  ;;  %s6937_s3 = sld [smem:[#allocation17_spill]] }
 0x347   : > { %v2510_v49 = vadd.f32 %v2494_v43, %v2461_v10  ;;  %2671 = vmatprep.mubr.f32.mxu0 %v6908_v60  ;;  %s2854_s25 = ssub.f32 %s2848_s15, %s2853_s20  ;;  %s6912_s20 = sld [smem:[#allocation24_spill]]  ;;  %v6048_v58 = vstv %s6002_s30  ;;  %v6057_v53 = vstv %s6011_s9  ;;  %v6063_v56 = vstv %s6014_s22 }
 0x348   : > { %v2555_v45 = vadd.f32 %v2539_v57, %v2506_v12  ;;  %s2876_s15 = ssub.f32 %s2875_s28, %s2869_s18  ;;  %v6066_v2 = vstv %s6017_s6  ;;  %v6071_v50 = vstv %s6020_s1  ;;  %s6939_s2 = sld [smem:[#allocation20_spill]] }
 0x349   : > { %v2559_v37 = vadd.f32 %v2543_v14, %v2510_v49  ;;  %s2860_s23 = ssub.f32 %s2854_s25, %s2859_s13  ;;  %s6911_s25 = sld [smem:[#allocation23_spill]] }
 0x34a   : > { %3934 = vmatmul.mubr.msk.f32.gmra.mrb[10].mxu0 %vm1528_vm0, %v2562_v11  ;;  %s2877_s12 = smul.f32 0.73333335, %s2876_s15  ;;  %s6023_s0 = ssub.f32 %s2881_s5, %s2875_s28  ;;  %v6073_v21 = vstv %s2876_s15 }
 0x34b   : > { %v4008_v35 = vpack.c.bf16 %v2559_v37, %v2555_v45  ;;  %2677 = vmatprep.mubr.f32.mxu0 %v6908_v60  ;;  %s2866_s7 = ssub.f32 %s2860_s23, %s2865_s26  ;;  %s446_s10 = sand.u32 1, %s6935_s19  }
 0x34c   : > { %s2883_s17 = smul.f32 0.8666667, %s6023_s0  ;;  %v6084_v22 = vstv %s6023_s0  ;;  %s3860_s29 = sshll.u32 %s446_s10, 2 }
 0x34d   : > { %4009 = vmatpush1.bf16.msra.mxu1 %v4008_v35  ;;  %s2872_s8 = ssub.f32 %s2866_s7, %s2871_s14  ;;  %v6054_v19 = vstv %s6912_s20  ;;  %6914 = vst [vmem:[#allocation29_spill] sm:$0xff] %v6084_v22  ;;  %s3977_s24 = sshll.u32 %s6937_s3, 6 }
 0x34e   : > { %3935 = vmatmul.mubr.msk.f32.gmra.mrb[12].mxu0 %vm1528_vm0, %v2563_v51  ;;  %s448_s30 = scalar_lea.vmem [#allocation9], %s3860_s29  ;;  %s6743_s13 = scalar_lea.hbm %s6941_s4, %s3977_s24 }
 0x34f   : > { %2683 = vmatprep.mubr.f32.mxu0 %v6908_v60  ;;  %s2878_s11 = ssub.f32 %s2872_s8, %s2877_s12  ;;  %v6051_v63 = vstv %s6911_s25  ;;  %s3760_s9 = sshll.u32 %s448_s30, 4  ;;  %s6745_s9 = int_to_ptr.vmem [resolvable:$true] %s3760_s9 }
 0x350   : > { %3937 = vmatmul.mubr.msk.f32.vlgmr.msra.gmra.mrb[8].mxu1 %vm1528_vm0, %v2561_v9  ;;  %s3746_s6 = scalar_lea.sflag [#allocation4], %s446_s10  ;;  %s4135_s18 = scalar_lea.vmem %s6745_s9, 64 }
 0x351   : > { %2760 = vmatprep.mubr.f32.mxu1 %v6908_v60  ;;  %s2884_s26 = ssub.f32 %s2878_s11, %s2883_s17  ;;  %p4136_p1 = scmp.ne.s32.totalorder %s6745_s9, %s4135_s18 }
 0x352   : > { %3936 = vmatmul.mubr.msk.f32.gmra.mrb[14].mxu0 %vm1528_vm0, %v2564_v44  ;;  %p6942_p2 = scmp.ne.s32.totalorder %s6939_s2, 0  ;;  %s4139_s23 = sshll.u32 %s4214_s27, 4  ;;  %s4140_s23 = int_to_ptr.vmem [resolvable:$false] %s4139_s23 }
 0x353   : > { %v6068_v28 = vstv %s2884_s26  ;;  %s4141_s1 = scalar_lea.vmem %s4140_s23, 128  ;;  %p4142_p9 = scmp.lt.s32.totalorder %s6745_s9, %s4140_s23 }
 0x354   : > { %3938 = vmatmul.mubr.msk.f32.gmra.mrb[10].mxu1 %vm1528_vm0, %v2562_v11  ;;  %p4137_p3 = pnand %p4136_p1, %p6942_p2  ;;  %p4143_p7 = scmp.lt.s32.totalorder %s4141_s1, %s4135_s18 }
 0x355   : > { %2766 = vmatprep.mubr.f32.mxu1 %v6908_v60 }
 0x356   : > { %p4138_p4 = pneg %p4137_p3  ;;  %p4144_p5 = por %p4143_p7, %p4142_p9 }
 0x358   : > { %3939 = vmatmul.mubr.msk.f32.gmra.mrb[12].mxu1 %vm1528_vm0, %v2563_v51  ;;  %p4145_p6 = pnand %p4144_p5, %p4138_p4 }
 0x359   : > { %2772 = vmatprep.mubr.f32.mxu1 %v6908_v60 }
 0x35c   : > { %3940 = vmatmul.mubr.msk.f32.gmra.mrb[14].mxu1 %vm1528_vm0, %v2564_v44 }
 0x419   : > { %v2667_v13 = vpop.f32.mrb[8].mxu0 }
 0x41a   : > { %v2668_v31 = vadd.f32 %v2667_v13, %v6026_v1  ;;  %v2669_v47 = vpop.f32.mrb[9].mxu0 }
 0x41b   : > { %v2670_v29 = vadd.f32 %v2669_v47, %v6026_v1 }
 0x41c   : > { %v6060_v48 = vmin.f32 %v2668_v31, 1.0  ;;  %v3956_v17 = vclamps-f32 %v2668_v31, 1.0 }
 0x41d   : > { %v3957_v42 = vclamps-f32 %v2670_v29, 1.0  ;;  %v6075_v4 = vpop.f32.mrb[10].mxu0  ;;  %v6086_v7 = vmin.f32 %v2670_v29, 1.0 }
 0x41e   : > { %6913 = vst [vmem:[#allocation28_spill] sm:$0xff] %v6060_v48  ;;  %v2902_v38 = vmul.f32 %v3956_v17, %v6029_v40  ;;  %v2935_v16 = vmax.f32 %v6060_v48, -0.8666667  ;;  %v2984_v41 = vmax.f32 %v6060_v48, -0.73333335  ;;  %v6092_v55 = vpop.f32.mrb[11].mxu0 }
 0x41f   : > { %v3033_v52 = vmax.f32 %v6060_v48, -0.6  ;;  %v3082_v25 = vmax.f32 %v6060_v48, -0.46666667  ;;  %v3131_v15 = vmax.f32 %v6060_v48, -0.33333334  ;;  %v2903_v20 = vmul.f32 %v3957_v42, %v6029_v40 }
 0x420   : > { %v2919_v61 = vadd.f32 %v6068_v28, %v2902_v38  ;;  %v2952_v0 = vmul.f32 %v6032_v5, %v2935_v16  ;;  %v3180_v8 = vmax.f32 %v6060_v48, -0.2  ;;  %v3001_v27 = vmul.f32 %v6035_v34, %v2984_v41 }
 0x421   : > { %v3050_v18 = vmul.f32 %v6038_v26, %v3033_v52  ;;  %v3099_v59 = vmul.f32 %v6042_v3, %v3082_v25  ;;  %v3229_v62 = vmax.f32 %v6060_v48, -0.06666667  ;;  %v6098_v23 = vpop.f32.mrb[12].mxu0  ;;  %v3278_v6 = vmax.f32 %v6060_v48, 0.06666667 }
 0x422   : > { %v2968_v39 = vadd.f32 %v2952_v0, %v2919_v61  ;;  %v3327_v33 = vmax.f32 %v6060_v48, 0.2  ;;  %v3376_v30 = vmax.f32 %v6060_v48, 0.33333334  ;;  %v3148_v36 = vmul.f32 %v6045_v24, %v3131_v15  ;;  %v6110_v57 = vpop.f32.mrb[13].mxu0 }
 0x423   : > { %v3425_v32 = vmax.f32 %v6060_v48, 0.46666667  ;;  %v3474_v9 = vmax.f32 %v6060_v48, 0.6  ;;  %v3523_v46 = vmax.f32 %v6060_v48, 0.73333335  ;;  %v3197_v54 = vmul.f32 %v6048_v58, %v3180_v8 }
 0x424   : > { %v3017_v10 = vadd.f32 %v3001_v27, %v2968_v39  ;;  %v3246_v43 = vmul.f32 %v6051_v63, %v3229_v62  ;;  %v3295_v12 = vmul.f32 %v6054_v19, %v3278_v6  ;;  %v2756_v49 = vpop.f32.mrb[8].mxu1  ;;  %v3344_v14 = vmul.f32 %v6057_v53, %v3327_v33 }
 0x425   : > { %v6114_v60 = vmul.f32 %v6063_v56, %v3376_v30  ;;  %v6117_v11 = vmul.f32 %v6066_v2, %v3425_v32  ;;  %v2757_v45 = vadd.f32 %v2756_v49, %v6026_v1  ;;  %v6120_v37 = vpop.f32.mrb[9].mxu1  ;;  %v6122_v35 = vpop.f32.mrb[14].mxu0  ;;  %v6125_v44 = vmul.f32 %v6071_v50, %v3474_v9 }
 0x426   : > { %v3066_v51 = vadd.f32 %v3050_v18, %v3017_v10  ;;  %v2936_v13 = vmax.f32 %v6086_v7, -0.8666667  ;;  %v2985_v31 = vmax.f32 %v6086_v7, -0.73333335  ;;  %v6130_v47 = vmul.f32 %v6073_v21, %v3523_v46  ;;  %v6153_v32 = vpop.f32.mrb[15].mxu0 }
 0x427   : > { %v6132_v29 = vmin.f32 %v2757_v45, 1.0  ;;  %v3958_v17 = vclamps-f32 %v2757_v45, 1.0  ;;  %v2920_v42 = vadd.f32 %v6068_v28, %v2903_v20  ;;  %v3034_v41 = vmax.f32 %v6086_v7, -0.6  ;;  %v6138_v25 = vpop.f32.mrb[10].mxu1 }
 0x428   : > { %v3115_v38 = vadd.f32 %v3099_v59, %v3066_v51  ;;  %v2953_v16 = vmul.f32 %v6032_v5, %v2936_v13  ;;  %v3083_v52 = vmax.f32 %v6086_v7, -0.46666667  ;;  %v3002_v18 = vmul.f32 %v6035_v34, %v2985_v31  ;;  %v6151_v30 = vpop.f32.mrb[11].mxu1 }
 0x429   : > { %v2904_v15 = vmul.f32 %v3958_v17, %v6029_v40  ;;  %v2937_v61 = vmax.f32 %v6132_v29, -0.8666667  ;;  %v2986_v0 = vmax.f32 %v6132_v29, -0.73333335  ;;  %v3035_v8 = vmax.f32 %v6132_v29, -0.6 }
 0x42a   : > { %v3164_v27 = vadd.f32 %v3148_v36, %v3115_v38  ;;  %v3084_v20 = vmax.f32 %v6132_v29, -0.46666667  ;;  %v3132_v59 = vmax.f32 %v6086_v7, -0.33333334  ;;  %v3133_v6 = vmax.f32 %v6132_v29, -0.33333334 }
 0x42b   : > { %v2921_v62 = vadd.f32 %v6068_v28, %v2904_v15  ;;  %v2954_v39 = vmul.f32 %v6032_v5, %v2937_v61  ;;  %v3182_v33 = vmax.f32 %v6132_v29, -0.2  ;;  %v3003_v36 = vmul.f32 %v6035_v34, %v2986_v0  ;;  %v6158_v49 = vpop.f32.mrb[12].mxu1 }
 0x42c   : > { %v3213_v9 = vadd.f32 %v3197_v54, %v3164_v27  ;;  %v3052_v46 = vmul.f32 %v6038_v26, %v3035_v8  ;;  %v3101_v10 = vmul.f32 %v6042_v3, %v3084_v20  ;;  %v3231_v51 = vmax.f32 %v6132_v29, -0.06666667  ;;  %v6169_v20 = vpop.f32.mrb[13].mxu1 }
 0x42d   : > { %v2970_v45 = vadd.f32 %v2954_v39, %v2921_v62  ;;  %v3280_v13 = vmax.f32 %v6132_v29, 0.06666667  ;;  %v3329_v31 = vmax.f32 %v6132_v29, 0.2  ;;  %v3378_v38 = vmax.f32 %v6132_v29, 0.33333334 }
 0x42e   : > { %v3262_v17 = vadd.f32 %v3246_v43, %v3213_v9  ;;  %v3427_v54 = vmax.f32 %v6132_v29, 0.46666667  ;;  %v3476_v15 = vmax.f32 %v6132_v29, 0.6  ;;  %v3150_v0 = vmul.f32 %v6045_v24, %v3133_v6 }
 0x42f   : > { %v3019_v61 = vadd.f32 %v3003_v36, %v2970_v45  ;;  %v3199_v8 = vmul.f32 %v6048_v58, %v3182_v33  ;;  %v3248_v27 = vmul.f32 %v6051_v63, %v3231_v51  ;;  %v3297_v39 = vmul.f32 %v6054_v19, %v3280_v13  ;;  %v6174_v22 = vpop.f32.mrb[14].mxu1 }
 0x430   : > { %v3311_v62 = vadd.f32 %v3295_v12, %v3262_v17  ;;  %v3346_v43 = vmul.f32 %v6057_v53, %v3329_v31  ;;  %v3395_v9 = vmul.f32 %v6063_v56, %v3378_v38  ;;  %v6177_v36 = vmul.f32 %v6066_v2, %v3427_v54  ;;  %v6185_v31 = vpop.f32.mrb[15].mxu1 }
 0x431   : > { %v3068_v48 = vadd.f32 %v3052_v46, %v3019_v61  ;;  %v3525_v6 = vmax.f32 %v6132_v29, 0.73333335  ;;  %v2969_v33 = vadd.f32 %v2953_v16, %v2920_v42  ;;  %v6181_v51 = vmul.f32 %v6071_v50, %v3476_v15 }
 0x432   : > { %v3360_v45 = vadd.f32 %v3344_v14, %v3311_v62  ;;  %v3051_v12 = vmul.f32 %v6038_v26, %v3034_v41  ;;  %v3181_v13 = vmax.f32 %v6086_v7, -0.2  ;;  %v3100_v46 = vmul.f32 %v6042_v3, %v3083_v52 }
 0x433   : > { %v3117_v17 = vadd.f32 %v3101_v10, %v3068_v48  ;;  %v3018_v38 = vadd.f32 %v3002_v18, %v2969_v33  ;;  %v3230_v54 = vmax.f32 %v6086_v7, -0.06666667  ;;  %v3149_v42 = vmul.f32 %v6045_v24, %v3132_v59 }
 0x434   : > { %v3409_v61 = vadd.f32 %v6114_v60, %v3360_v45  ;;  %v3279_v14 = vmax.f32 %v6086_v7, 0.06666667  ;;  %v3328_v16 = vmax.f32 %v6086_v7, 0.2  ;;  %v6194_v41 = vmul.f32 %v6073_v21, %v3525_v6 }
 0x435   : > { %v3166_v15 = vadd.f32 %v3150_v0, %v3117_v17  ;;  %v3067_v62 = vadd.f32 %v3051_v12, %v3018_v38  ;;  %v3377_v48 = vmax.f32 %v6086_v7, 0.33333334  ;;  %v3198_v52 = vmul.f32 %v6048_v58, %v3181_v13  ;;  %v6203_v17 = vpop.permute.xlu1 %2576 }
 0x436   : > { %v3458_v18 = vadd.f32 %v6117_v11, %v3409_v61  ;;  %v3247_v10 = vmul.f32 %v6051_v63, %v3230_v54  ;;  %v3426_v60 = vmax.f32 %v6086_v7, 0.46666667  ;;  %v3296_v45 = vmul.f32 %v6054_v19, %v3279_v14 }
 0x437   : > { %v3215_v59 = vadd.f32 %v3199_v8, %v3166_v15  ;;  %v3116_v33 = vadd.f32 %v3100_v46, %v3067_v62  ;;  %v3475_v0 = vmax.f32 %v6086_v7, 0.6  ;;  %v3345_v12 = vmul.f32 %v6057_v53, %v3328_v16 }
 0x438   : > { %v3507_v6 = vadd.f32 %v6125_v44, %v3458_v18  ;;  %v3524_v11 = vmax.f32 %v6086_v7, 0.73333335  ;;  %v2759_v13 = vadd.f32 %v6120_v37, %v6026_v1  ;;  %v3394_v8 = vmul.f32 %v6063_v56, %v3377_v48 }
 0x439   : > { %v3264_v38 = vadd.f32 %v3248_v27, %v3215_v59  ;;  %v3165_v54 = vadd.f32 %v3149_v42, %v3116_v33  ;;  %v2674_v46 = vadd.f32 %v6075_v4, %v6203_v17  ;;  %v3443_v61 = vmul.f32 %v6066_v2, %v3426_v60 }
 0x43a   : > { %v3492_v14 = vmul.f32 %v6071_v50, %v3475_v0  ;;  %v6215_v15 = vmin.f32 %v2759_v13, 1.0  ;;  %v3959_v44 = vclamps-f32 %v2759_v13, 1.0  ;;  %v6218_v16 = vadd.f32 %v6130_v47, %v3507_v6 }
 0x43b   : > { %v3313_v62 = vadd.f32 %v3297_v39, %v3264_v38  ;;  %v3214_v18 = vadd.f32 %v3198_v52, %v3165_v54  ;;  %v3541_v1 = vmul.f32 %v6073_v21, %v3524_v11  ;;  %v6225_v59 = vmin.f32 %v2674_v46, 1.0 }
 0x43c   : > { %6915 = vst [vmem:[#allocation31_spill] sm:$0xff] %v6218_v16  ;;  %v2905_v37 = vmul.f32 %v3959_v44, %v6029_v40  ;;  %v2938_v27 = vmax.f32 %v6215_v15, -0.8666667  ;;  %v2987_v4 = vmax.f32 %v6215_v15, -0.73333335  ;;  %v3960_v33 = vclamps-f32 %v2674_v46, 1.0 }
 0x43d   : > { %v3036_v42 = vmax.f32 %v6215_v15, -0.6  ;;  %v3362_v48 = vadd.f32 %v3346_v43, %v3313_v62  ;;  %v3263_v60 = vadd.f32 %v3247_v10, %v3214_v18  ;;  %v3085_v52 = vmax.f32 %v6215_v15, -0.46666667 }
 0x43e   : > { %v2922_v47 = vadd.f32 %v6068_v28, %v2905_v37  ;;  %v2955_v39 = vmul.f32 %v6032_v5, %v2938_v27  ;;  %v3134_v0 = vmax.f32 %v6215_v15, -0.33333334  ;;  %v3004_v13 = vmul.f32 %v6035_v34, %v2987_v4 }
 0x43f   : > { %v3411_v6 = vadd.f32 %v3395_v9, %v3362_v48  ;;  %v3312_v11 = vadd.f32 %v3296_v45, %v3263_v60  ;;  %v3053_v38 = vmul.f32 %v6038_v26, %v3036_v42  ;;  %v3183_v43 = vmax.f32 %v6215_v15, -0.2 }
 0x440   : > { %v2971_v54 = vadd.f32 %v2955_v39, %v2922_v47  ;;  %v3232_v10 = vmax.f32 %v6215_v15, -0.06666667  ;;  %v3281_v46 = vmax.f32 %v6215_v15, 0.06666667  ;;  %v3330_v18 = vmax.f32 %v6215_v15, 0.2 }
 0x441   : > { %v3460_v44 = vadd.f32 %v6177_v36, %v3411_v6  ;;  %v3361_v62 = vadd.f32 %v3345_v12, %v3312_v11  ;;  %v3379_v37 = vmax.f32 %v6215_v15, 0.33333334  ;;  %v3102_v45 = vmul.f32 %v6042_v3, %v3085_v52 }
 0x442   : > { %v3020_v9 = vadd.f32 %v3004_v13, %v2971_v54  ;;  %v3151_v27 = vmul.f32 %v6045_v24, %v3134_v0  ;;  %v3200_v4 = vmul.f32 %v6048_v58, %v3183_v43  ;;  %v3249_v60 = vmul.f32 %v6051_v63, %v3232_v10 }
 0x443   : > { %v3509_v42 = vadd.f32 %v6181_v51, %v3460_v44  ;;  %v3410_v48 = vadd.f32 %v3394_v8, %v3361_v62  ;;  %v3298_v47 = vmul.f32 %v6054_v19, %v3281_v46  ;;  %v3347_v12 = vmul.f32 %v6057_v53, %v3330_v18 }
 0x444   : > { %v3069_v36 = vadd.f32 %v3053_v38, %v3020_v9  ;;  %v3428_v39 = vmax.f32 %v6215_v15, 0.46666667  ;;  %v3477_v6 = vmax.f32 %v6215_v15, 0.6  ;;  %v3396_v52 = vmul.f32 %v6063_v56, %v3379_v37 }
 0x445   : > { %v3459_v11 = vadd.f32 %v3443_v61, %v3410_v48  ;;  %v2906_v0 = vmul.f32 %v3960_v33, %v6029_v40  ;;  %v2939_v13 = vmax.f32 %v6225_v59, -0.8666667  ;;  %v6252_v51 = vadd.f32 %v6194_v41, %v3509_v42 }
 0x446   : > { %v3118_v8 = vadd.f32 %v3102_v45, %v3069_v36  ;;  %v3445_v54 = vmul.f32 %v6066_v2, %v3428_v39  ;;  %v3526_v38 = vmax.f32 %v6215_v15, 0.73333335  ;;  %v2988_v61 = vmax.f32 %v6225_v59, -0.73333335 }
 0x447   : > { %6916 = vst [vmem:[#allocation32_spill] sm:$0xff] %v6252_v51  ;;  %v3508_v43 = vadd.f32 %v3492_v14, %v3459_v11  ;;  %v2923_v10 = vadd.f32 %v6068_v28, %v2906_v0  ;;  %v2956_v46 = vmul.f32 %v6032_v5, %v2939_v13  ;;  %v3494_v33 = vmul.f32 %v6071_v50, %v3477_v6 }
 0x448   : > { %v3167_v44 = vadd.f32 %v3151_v27, %v3118_v8  ;;  %v3037_v62 = vmax.f32 %v6225_v59, -0.6  ;;  %v3086_v41 = vmax.f32 %v6225_v59, -0.46666667  ;;  %v3005_v37 = vmul.f32 %v6035_v34, %v2988_v61 }
 0x449   : > { %v2972_v18 = vadd.f32 %v2956_v46, %v2923_v10  ;;  %v3135_v9 = vmax.f32 %v6225_v59, -0.33333334  ;;  %v3184_v14 = vmax.f32 %v6225_v59, -0.2  ;;  %v6265_v45 = vadd.f32 %v3541_v1, %v3508_v43 }
 0x44a   : > { %v3216_v42 = vadd.f32 %v3200_v4, %v3167_v44  ;;  %v3543_v48 = vmul.f32 %v6073_v21, %v3526_v38  ;;  %v3054_v27 = vmul.f32 %v6038_v26, %v3037_v62  ;;  %v3103_v39 = vmul.f32 %v6042_v3, %v3086_v41 }
 0x44b   : > { %6917 = vst [vmem:[#allocation30_spill] sm:$0xff] %v6265_v45  ;;  %v3021_v36 = vadd.f32 %v3005_v37, %v2972_v18  ;;  %v3233_v6 = vmax.f32 %v6225_v59, -0.06666667  ;;  %v3282_v11 = vmax.f32 %v6225_v59, 0.06666667  ;;  %v3152_v4 = vmul.f32 %v6045_v24, %v3135_v9 }
 0x44c   : > { %v3265_v0 = vadd.f32 %v3249_v60, %v3216_v42  ;;  %v3331_v13 = vmax.f32 %v6225_v59, 0.2  ;;  %v3380_v8 = vmax.f32 %v6225_v59, 0.33333334  ;;  %v3429_v1 = vmax.f32 %v6225_v59, 0.46666667 }
 0x44d   : > { %v3070_v43 = vadd.f32 %v3054_v27, %v3021_v36  ;;  %v3201_v38 = vmul.f32 %v6048_v58, %v3184_v14  ;;  %v3478_v10 = vmax.f32 %v6225_v59, 0.6  ;;  %v3250_v61 = vmul.f32 %v6051_v63, %v3233_v6  ;;  %v6289_v27 = vpop.permute.xlu0 %2581 }
 0x44e   : > { %v3314_v46 = vadd.f32 %v3298_v47, %v3265_v0  ;;  %v3299_v44 = vmul.f32 %v6054_v19, %v3282_v11  ;;  %v3348_v60 = vmul.f32 %v6057_v53, %v3331_v13  ;;  %v3397_v41 = vmul.f32 %v6063_v56, %v3380_v8 }
 0x44f   : > { %v3119_v62 = vadd.f32 %v3103_v39, %v3070_v43  ;;  %v3527_v18 = vmax.f32 %v6225_v59, 0.73333335  ;;  %v2763_v37 = vadd.f32 %v6138_v25, %v6203_v17  ;;  %v3446_v14 = vmul.f32 %v6066_v2, %v3429_v1 }
 0x450   : > { %v3363_v9 = vadd.f32 %v3347_v12, %v3314_v46  ;;  %v3495_v42 = vmul.f32 %v6071_v50, %v3478_v10  ;;  %v2676_v47 = vadd.f32 %v6092_v55, %v6203_v17  ;;  %v6295_v11 = vadd.f32 %v6151_v30, %v6203_v17 }
 0x451   : > { %v3168_v36 = vadd.f32 %v3152_v4, %v3119_v62  ;;  %v6291_v6 = vmin.f32 %v2763_v37, 1.0  ;;  %v3962_v39 = vclamps-f32 %v2763_v37, 1.0  ;;  %v3544_v25 = vmul.f32 %v6073_v21, %v3527_v18 }
 0x452   : > { %v3412_v0 = vadd.f32 %v3396_v52, %v3363_v9  ;;  %v6298_v12 = vmin.f32 %v2676_v47, 1.0  ;;  %v6302_v13 = vadd.f32 %v6098_v23, %v6289_v27  ;;  %v3961_v52 = vclamps-f32 %v2676_v47, 1.0 }
 0x453   : > { %v3217_v55 = vadd.f32 %v3201_v38, %v3168_v36  ;;  %v2908_v8 = vmul.f32 %v3962_v39, %v6029_v40  ;;  %v2941_v1 = vmax.f32 %v6291_v6, -0.8666667  ;;  %v2990_v43 = vmax.f32 %v6291_v6, -0.73333335 }
 0x454   : > { %v3461_v4 = vadd.f32 %v3445_v54, %v3412_v0  ;;  %v3039_v30 = vmax.f32 %v6291_v6, -0.6  ;;  %v3088_v17 = vmax.f32 %v6291_v6, -0.46666667  ;;  %v3137_v23 = vmax.f32 %v6291_v6, -0.33333334 }
 0x455   : > { %v3266_v10 = vadd.f32 %v3250_v61, %v3217_v55  ;;  %v2925_v46 = vadd.f32 %v6068_v28, %v2908_v8  ;;  %v2958_v62 = vmul.f32 %v6032_v5, %v2941_v1  ;;  %v3007_v18 = vmul.f32 %v6035_v34, %v2990_v43 }
 0x456   : > { %v3510_v38 = vadd.f32 %v3494_v33, %v3461_v4  ;;  %v3056_v37 = vmul.f32 %v6038_v26, %v3039_v30  ;;  %v6315_v9 = vmin.f32 %v6295_v11, 1.0  ;;  %v3186_v39 = vmax.f32 %v6291_v6, -0.2 }
 0x457   : > { %v3315_v54 = vadd.f32 %v3299_v44, %v3266_v10  ;;  %v2974_v36 = vadd.f32 %v2958_v62, %v2925_v46  ;;  %v3235_v61 = vmax.f32 %v6291_v6, -0.06666667  ;;  %v3105_v47 = vmul.f32 %v6042_v3, %v3088_v17 }
 0x458   : > { %6918 = vst [vmem:[#allocation34_spill] sm:$0xff] %v6315_v9  ;;  %v3284_v0 = vmax.f32 %v6291_v6, 0.06666667  ;;  %v3333_v55 = vmax.f32 %v6291_v6, 0.2  ;;  %v6323_v8 = vadd.f32 %v3543_v48, %v3510_v38  ;;  %v3154_v4 = vmul.f32 %v6045_v24, %v3137_v23 }
 0x459   : > { %v3382_v33 = vmax.f32 %v6291_v6, 0.33333334  ;;  %v3364_v1 = vadd.f32 %v3348_v60, %v3315_v54  ;;  %v3023_v43 = vadd.f32 %v3007_v18, %v2974_v36  ;;  %v3203_v44 = vmul.f32 %v6048_v58, %v3186_v39 }
 0x45a   : > { %6919 = vst [vmem:[#allocation33_spill] sm:$0xff] %v6323_v8  ;;  %v3252_v30 = vmul.f32 %v6051_v63, %v3235_v61  ;;  %v3301_v10 = vmul.f32 %v6054_v19, %v3284_v0  ;;  %v3431_v17 = vmax.f32 %v6291_v6, 0.46666667  ;;  %v3350_v51 = vmul.f32 %v6057_v53, %v3333_v55 }
 0x45b   : > { %v3413_v46 = vadd.f32 %v3397_v41, %v3364_v1  ;;  %v3072_v62 = vadd.f32 %v3056_v37, %v3023_v43  ;;  %v3480_v45 = vmax.f32 %v6291_v6, 0.6  ;;  %v3399_v48 = vmul.f32 %v6063_v56, %v3382_v33 }
 0x45c   : > { %v2907_v60 = vmul.f32 %v3961_v52, %v6029_v40  ;;  %v2940_v23 = vmax.f32 %v6298_v12, -0.8666667  ;;  %v2989_v38 = vmax.f32 %v6298_v12, -0.73333335  ;;  %v3448_v36 = vmul.f32 %v6066_v2, %v3431_v17 }
 0x45d   : > { %v3462_v18 = vadd.f32 %v3446_v14, %v3413_v46  ;;  %v3121_v54 = vadd.f32 %v3105_v47, %v3072_v62  ;;  %v3529_v39 = vmax.f32 %v6291_v6, 0.73333335  ;;  %v3497_v41 = vmul.f32 %v6071_v50, %v3480_v45 }
 0x45e   : > { %v2924_v37 = vadd.f32 %v6068_v28, %v2907_v60  ;;  %v2957_v61 = vmul.f32 %v6032_v5, %v2940_v23  ;;  %v3038_v0 = vmax.f32 %v6298_v12, -0.6  ;;  %v3087_v33 = vmax.f32 %v6298_v12, -0.46666667 }
 0x45f   : > { %v3511_v55 = vadd.f32 %v3495_v42, %v3462_v18  ;;  %v3170_v52 = vadd.f32 %v3154_v4, %v3121_v54  ;;  %v3136_v1 = vmax.f32 %v6298_v12, -0.33333334  ;;  %v3006_v47 = vmul.f32 %v6035_v34, %v2989_v38 }
 0x460   : > { %v2973_v14 = vadd.f32 %v2957_v61, %v2924_v37  ;;  %v3185_v43 = vmax.f32 %v6298_v12, -0.2  ;;  %v3234_v17 = vmax.f32 %v6298_v12, -0.06666667  ;;  %v3546_v62 = vmul.f32 %v6073_v21, %v3529_v39 }
 0x461   : > { %v6347_v45 = vadd.f32 %v3544_v25, %v3511_v55  ;;  %v3219_v46 = vadd.f32 %v3203_v44, %v3170_v52  ;;  %v3055_v60 = vmul.f32 %v6038_v26, %v3038_v0  ;;  %v3104_v4 = vmul.f32 %v6042_v3, %v3087_v33 }
 0x462   : > { %v3022_v42 = vadd.f32 %v3006_v47, %v2973_v14  ;;  %v3153_v23 = vmul.f32 %v6045_v24, %v3136_v1  ;;  %v3283_v18 = vmax.f32 %v6298_v12, 0.06666667  ;;  %v3332_v38 = vmax.f32 %v6298_v12, 0.2 }
 0x463   : > { %6920 = vst [vmem:[#allocation35_spill] sm:$0xff] %v6347_v45  ;;  %v3268_v54 = vadd.f32 %v3252_v30, %v3219_v46  ;;  %v3381_v37 = vmax.f32 %v6298_v12, 0.33333334  ;;  %v3430_v25 = vmax.f32 %v6298_v12, 0.46666667  ;;  %v3202_v44 = vmul.f32 %v6048_v58, %v3185_v43 }
 0x464   : > { %v3071_v61 = vadd.f32 %v3055_v60, %v3022_v42  ;;  %v3251_v39 = vmul.f32 %v6051_v63, %v3234_v17  ;;  %v3479_v0 = vmax.f32 %v6298_v12, 0.6  ;;  %v3300_v52 = vmul.f32 %v6054_v19, %v3283_v18 }
 0x465   : > { %v3317_v55 = vadd.f32 %v3301_v10, %v3268_v54  ;;  %v3349_v33 = vmul.f32 %v6057_v53, %v3332_v38  ;;  %v3528_v30 = vmax.f32 %v6298_v12, 0.73333335  ;;  %v3398_v14 = vmul.f32 %v6063_v56, %v3381_v37 }
 0x466   : > { %v3120_v1 = vadd.f32 %v3104_v4, %v3071_v61  ;;  %v3447_v47 = vmul.f32 %v6066_v2, %v3430_v25  ;;  %v3963_v46 = vclamps-f32 %v6295_v11, 1.0  ;;  %v2942_v43 = vmax.f32 %v6315_v9, -0.8666667 }
 0x467   : > { %v3366_v60 = vadd.f32 %v3350_v51, %v3317_v55  ;;  %v2991_v17 = vmax.f32 %v6315_v9, -0.73333335  ;;  %v3040_v10 = vmax.f32 %v6315_v9, -0.6  ;;  %v3496_v18 = vmul.f32 %v6071_v50, %v3479_v0 }
 0x468   : > { %v3169_v42 = vadd.f32 %v3153_v23, %v3120_v1  ;;  %v2909_v54 = vmul.f32 %v3963_v46, %v6029_v40  ;;  %v3089_v4 = vmax.f32 %v6315_v9, -0.46666667  ;;  %v6373_v37 = vmul.f32 %v6073_v21, %v3528_v30 }
 0x469   : > { %v3415_v38 = vadd.f32 %v3399_v48, %v3366_v60  ;;  %v2959_v11 = vmul.f32 %v6032_v5, %v2942_v43  ;;  %v3138_v51 = vmax.f32 %v6315_v9, -0.33333334  ;;  %v3008_v55 = vmul.f32 %v6035_v34, %v2991_v17 }
 0x46a   : > { %v3218_v25 = vadd.f32 %v3202_v44, %v3169_v42  ;;  %v2926_v61 = vadd.f32 %v6068_v28, %v2909_v54  ;;  %v3057_v23 = vmul.f32 %v6038_v26, %v3040_v10  ;;  %v3187_v1 = vmax.f32 %v6315_v9, -0.2 }
 0x46b   : > { %v3464_v0 = vadd.f32 %v3448_v36, %v3415_v38  ;;  %v3236_v46 = vmax.f32 %v6315_v9, -0.06666667  ;;  %v3285_v48 = vmax.f32 %v6315_v9, 0.06666667  ;;  %v3106_v43 = vmul.f32 %v6042_v3, %v3089_v4 }
 0x46c   : > { %v3267_v30 = vadd.f32 %v3251_v39, %v3218_v25  ;;  %v2975_v60 = vadd.f32 %v2959_v11, %v2926_v61  ;;  %v3334_v8 = vmax.f32 %v6315_v9, 0.2  ;;  %v3155_v42 = vmul.f32 %v6045_v24, %v3138_v51 }
 0x46d   : > { %v3513_v44 = vadd.f32 %v3497_v41, %v3464_v0  ;;  %v3204_v17 = vmul.f32 %v6048_v58, %v3187_v1  ;;  %v3383_v10 = vmax.f32 %v6315_v9, 0.33333334  ;;  %v3253_v38 = vmul.f32 %v6051_v63, %v3236_v46 }
 0x46e   : > { %v3316_v36 = vadd.f32 %v3300_v52, %v3267_v30  ;;  %v3024_v54 = vadd.f32 %v3008_v55, %v2975_v60  ;;  %v3302_v45 = vmul.f32 %v6054_v19, %v3285_v48  ;;  %v3351_v39 = vmul.f32 %v6057_v53, %v3334_v8 }
 0x46f   : > { %v3432_v11 = vmax.f32 %v6315_v9, 0.46666667  ;;  %v3481_v4 = vmax.f32 %v6315_v9, 0.6  ;;  %v3530_v41 = vmax.f32 %v6315_v9, 0.73333335  ;;  %v6398_v55 = vadd.f32 %v3546_v62, %v3513_v44 }
 0x470   : > { %v3365_v25 = vadd.f32 %v3349_v33, %v3316_v36  ;;  %v3073_v51 = vadd.f32 %v3057_v23, %v3024_v54  ;;  %v6395_v61 = vmin.f32 %v6302_v13, 1.0  ;;  %v3964_v52 = vclamps-f32 %v6302_v13, 1.0 }
 0x471   : > { %6921 = vst [vmem:[#allocation36_spill] sm:$0xff] %v6398_v55  ;;  %v3400_v0 = vmul.f32 %v6063_v56, %v3383_v10  ;;  %v3449_v1 = vmul.f32 %v6066_v2, %v3432_v11  ;;  %v6403_v8 = vmul.f32 %v6071_v50, %v3481_v4  ;;  %v6408_v23 = vmul.f32 %v6073_v21, %v3530_v41 }
 0x472   : > { %v3414_v46 = vadd.f32 %v3398_v14, %v3365_v25  ;;  %v3122_v48 = vadd.f32 %v3106_v43, %v3073_v51  ;;  %v2910_v30 = vmul.f32 %v3964_v52, %v6029_v40  ;;  %v2943_v33 = vmax.f32 %v6395_v61, -0.8666667 }
 0x473   : > { %v2992_v13 = vmax.f32 %v6395_v61, -0.73333335  ;;  %v3041_v62 = vmax.f32 %v6395_v61, -0.6  ;;  %v3090_v60 = vmax.f32 %v6395_v61, -0.46666667  ;;  %v2769_v11 = vadd.f32 %v6158_v49, %v6289_v27 }
 0x474   : > { %v3463_v44 = vadd.f32 %v3447_v47, %v3414_v46  ;;  %v3171_v10 = vadd.f32 %v3155_v42, %v3122_v48  ;;  %v2927_v36 = vadd.f32 %v6068_v28, %v2910_v30  ;;  %v2960_v14 = vmul.f32 %v6032_v5, %v2943_v33 }
 0x475   : > { %v3009_v43 = vmul.f32 %v6035_v34, %v2992_v13  ;;  %v3139_v54 = vmax.f32 %v6395_v61, -0.33333334  ;;  %v6421_v4 = vadd.f32 %v6110_v57, %v6289_v27  ;;  %v3188_v47 = vmax.f32 %v6395_v61, -0.2 }
 0x476   : > { %v3512_v41 = vadd.f32 %v3496_v18, %v3463_v44  ;;  %v3220_v25 = vadd.f32 %v3204_v17, %v3171_v10  ;;  %v2976_v51 = vadd.f32 %v2960_v14, %v2927_v36  ;;  %v3058_v42 = vmul.f32 %v6038_v26, %v3041_v62 }
 0x477   : > { %v3237_v52 = vmax.f32 %v6395_v61, -0.06666667  ;;  %v3286_v46 = vmax.f32 %v6395_v61, 0.06666667  ;;  %v3335_v48 = vmax.f32 %v6395_v61, 0.2  ;;  %v3107_v49 = vmul.f32 %v6042_v3, %v3090_v60 }
 0x478   : > { %v3269_v30 = vadd.f32 %v3253_v38, %v3220_v25  ;;  %v3025_v33 = vadd.f32 %v3009_v43, %v2976_v51  ;;  %v3156_v57 = vmul.f32 %v6045_v24, %v3139_v54  ;;  %v6431_v18 = vadd.f32 %v6373_v37, %v3512_v41 }
 0x479   : > { %v3205_v17 = vmul.f32 %v6048_v58, %v3188_v47  ;;  %v3254_v13 = vmul.f32 %v6051_v63, %v3237_v52  ;;  %v3384_v62 = vmax.f32 %v6395_v61, 0.33333334  ;;  %v3303_v36 = vmul.f32 %v6054_v19, %v3286_v46 }
 0x47a   : > { %6922 = vst [vmem:[#allocation37_spill] sm:$0xff] %v6431_v18  ;;  %v3318_v44 = vadd.f32 %v3302_v45, %v3269_v30  ;;  %v3074_v10 = vadd.f32 %v3058_v42, %v3025_v33  ;;  %v3433_v38 = vmax.f32 %v6395_v61, 0.46666667  ;;  %v3352_v14 = vmul.f32 %v6057_v53, %v3335_v48 }
 0x47b   : > { %v3482_v60 = vmax.f32 %v6395_v61, 0.6  ;;  %v6440_v43 = vmin.f32 %v2769_v11, 1.0  ;;  %v3966_v37 = vclamps-f32 %v2769_v11, 1.0  ;;  %v3401_v25 = vmul.f32 %v6063_v56, %v3384_v62 }
 0x47c   : > { %v3367_v54 = vadd.f32 %v3351_v39, %v3318_v44  ;;  %v3123_v41 = vadd.f32 %v3107_v49, %v3074_v10  ;;  %v6444_v51 = vmin.f32 %v6421_v4, 1.0  ;;  %v3450_v30 = vmul.f32 %v6066_v2, %v3433_v38 }
 0x47d   : > { %v2912_v45 = vmul.f32 %v3966_v37, %v6029_v40  ;;  %v2945_v47 = vmax.f32 %v6440_v43, -0.8666667  ;;  %v2994_v42 = vmax.f32 %v6440_v43, -0.73333335  ;;  %v3043_v52 = vmax.f32 %v6440_v43, -0.6 }
 0x47e   : > { %v3416_v46 = vadd.f32 %v3400_v0, %v3367_v54  ;;  %v3172_v48 = vadd.f32 %v3156_v57, %v3123_v41  ;;  %v3092_v39 = vmax.f32 %v6440_v43, -0.46666667  ;;  %v3499_v11 = vmul.f32 %v6071_v50, %v3482_v60 }
 0x47f   : > { %v2929_v33 = vadd.f32 %v6068_v28, %v2912_v45  ;;  %v2962_v49 = vmul.f32 %v6032_v5, %v2945_v47  ;;  %v3141_v62 = vmax.f32 %v6440_v43, -0.33333334  ;;  %v3011_v37 = vmul.f32 %v6035_v34, %v2994_v42 }
 0x480   : > { %v3465_v44 = vadd.f32 %v3449_v1, %v3416_v46  ;;  %v3221_v10 = vadd.f32 %v3205_v17, %v3172_v48  ;;  %v3060_v55 = vmul.f32 %v6038_v26, %v3043_v52  ;;  %v3190_v57 = vmax.f32 %v6440_v43, -0.2 }
 0x481   : > { %v2978_v0 = vadd.f32 %v2962_v49, %v2929_v33  ;;  %v3239_v38 = vmax.f32 %v6440_v43, -0.06666667  ;;  %v3288_v54 = vmax.f32 %v6440_v43, 0.06666667  ;;  %v3109_v45 = vmul.f32 %v6042_v3, %v3092_v39 }
 0x482   : > { %v3514_v60 = vadd.f32 %v6403_v8, %v3465_v44  ;;  %v3270_v41 = vadd.f32 %v3254_v13, %v3221_v10  ;;  %v3337_v47 = vmax.f32 %v6440_v43, 0.2  ;;  %v3158_v17 = vmul.f32 %v6045_v24, %v3141_v62 }
 0x483   : > { %v3027_v1 = vadd.f32 %v3011_v37, %v2978_v0  ;;  %v3207_v42 = vmul.f32 %v6048_v58, %v3190_v57  ;;  %v3386_v52 = vmax.f32 %v6440_v43, 0.33333334  ;;  %v3256_v33 = vmul.f32 %v6051_v63, %v3239_v38 }
 0x484   : > { %v6468_v46 = vadd.f32 %v6408_v23, %v3514_v60  ;;  %v3319_v48 = vadd.f32 %v3303_v36, %v3270_v41  ;;  %v3305_v8 = vmul.f32 %v6054_v19, %v3288_v54  ;;  %v3435_v39 = vmax.f32 %v6440_v43, 0.46666667 }
 0x485   : > { %v3076_v13 = vadd.f32 %v3060_v55, %v3027_v1  ;;  %v3484_v49 = vmax.f32 %v6440_v43, 0.6  ;;  %v3965_v44 = vclamps-f32 %v6421_v4, 1.0  ;;  %v3354_v10 = vmul.f32 %v6057_v53, %v3337_v47 }
 0x486   : > { %6923 = vst [vmem:[#allocation38_spill] sm:$0xff] %v6468_v46  ;;  %v3368_v62 = vadd.f32 %v3352_v14, %v3319_v48  ;;  %v2944_v37 = vmax.f32 %v6444_v51, -0.8666667  ;;  %v2993_v23 = vmax.f32 %v6444_v51, -0.73333335  ;;  %v3403_v36 = vmul.f32 %v6063_v56, %v3386_v52 }
 0x487   : > { %v3125_v0 = vadd.f32 %v3109_v45, %v3076_v13  ;;  %v2911_v57 = vmul.f32 %v3965_v44, %v6029_v40  ;;  %v3042_v55 = vmax.f32 %v6444_v51, -0.6  ;;  %v3452_v54 = vmul.f32 %v6066_v2, %v3435_v39 }
 0x488   : > { %v3417_v38 = vadd.f32 %v3401_v25, %v3368_v62  ;;  %v6483_v60 = vmul.f32 %v6071_v50, %v3484_v49  ;;  %v2961_v4 = vmul.f32 %v6032_v5, %v2944_v37  ;;  %v3091_v47 = vmax.f32 %v6444_v51, -0.46666667 }
 0x489   : > { %v3174_v14 = vadd.f32 %v3158_v17, %v3125_v0  ;;  %v2928_v41 = vadd.f32 %v6068_v28, %v2911_v57  ;;  %v3140_v45 = vmax.f32 %v6444_v51, -0.33333334  ;;  %v3010_v52 = vmul.f32 %v6035_v34, %v2993_v23 }
 0x48a   : > { %v3466_v1 = vadd.f32 %v3450_v30, %v3417_v38  ;;  %v3189_v48 = vmax.f32 %v6444_v51, -0.2  ;;  %v3238_v25 = vmax.f32 %v6444_v51, -0.06666667  ;;  %v3059_v49 = vmul.f32 %v6038_v26, %v3042_v55 }
 0x48b   : > { %v3223_v13 = vadd.f32 %v3207_v42, %v3174_v14  ;;  %v2977_v39 = vadd.f32 %v2961_v4, %v2928_v41  ;;  %v3287_v44 = vmax.f32 %v6444_v51, 0.06666667  ;;  %v3108_v62 = vmul.f32 %v6042_v3, %v3091_v47  ;;  %v6501_v42 = vpop.permute.xlu1 %2586 }
 0x48c   : > { %v6494_v17 = vadd.f32 %v3499_v11, %v3466_v1  ;;  %v3157_v37 = vmul.f32 %v6045_v24, %v3140_v45  ;;  %v3206_v30 = vmul.f32 %v6048_v58, %v3189_v48  ;;  %v3336_v57 = vmax.f32 %v6444_v51, 0.2 }
 0x48d   : > { %v3272_v0 = vadd.f32 %v3256_v33, %v3223_v13  ;;  %v3026_v23 = vadd.f32 %v3010_v52, %v2977_v39  ;;  %v3385_v38 = vmax.f32 %v6444_v51, 0.33333334  ;;  %v3255_v55 = vmul.f32 %v6051_v63, %v3238_v25 }
 0x48e   : > { %v3434_v4 = vmax.f32 %v6444_v51, 0.46666667  ;;  %v3483_v11 = vmax.f32 %v6444_v51, 0.6  ;;  %v2771_v14 = vadd.f32 %v6169_v20, %v6289_v27  ;;  %v3304_v33 = vmul.f32 %v6054_v19, %v3287_v44 }
 0x48f   : > { %v3321_v41 = vadd.f32 %v3305_v8, %v3272_v0  ;;  %v3075_v47 = vadd.f32 %v3059_v49, %v3026_v23  ;;  %v2686_v45 = vadd.f32 %v6122_v35, %v6501_v42  ;;  %v3353_v1 = vmul.f32 %v6057_v53, %v3336_v57 }
 0x490   : > { %v3402_v52 = vmul.f32 %v6063_v56, %v3385_v38  ;;  %v6513_v48 = vmin.f32 %v2771_v14, 1.0  ;;  %v3967_v25 = vclamps-f32 %v2771_v14, 1.0  ;;  %v3451_v46 = vmul.f32 %v6066_v2, %v3434_v4 }
 0x491   : > { %v3370_v13 = vadd.f32 %v3354_v10, %v3321_v41  ;;  %v3124_v39 = vadd.f32 %v3108_v62, %v3075_v47  ;;  %v3500_v20 = vmul.f32 %v6071_v50, %v3483_v11  ;;  %v6525_v38 = vmin.f32 %v2686_v45, 1.0 }
 0x492   : > { %v2913_v27 = vmul.f32 %v3967_v25, %v6029_v40  ;;  %v2946_v8 = vmax.f32 %v6513_v48, -0.8666667  ;;  %v2995_v49 = vmax.f32 %v6513_v48, -0.73333335  ;;  %v3044_v35 = vmax.f32 %v6513_v48, -0.6 }
 0x493   : > { %v3419_v44 = vadd.f32 %v3403_v36, %v3370_v13  ;;  %v3173_v0 = vadd.f32 %v3157_v37, %v3124_v39  ;;  %v3093_v23 = vmax.f32 %v6513_v48, -0.46666667  ;;  %v3142_v57 = vmax.f32 %v6513_v48, -0.33333334 }
 0x494   : > { %v2930_v10 = vadd.f32 %v6068_v28, %v2913_v27  ;;  %v2963_v62 = vmul.f32 %v6032_v5, %v2946_v8  ;;  %v3968_v4 = vclamps-f32 %v2686_v45, 1.0  ;;  %v3012_v41 = vmul.f32 %v6035_v34, %v2995_v49 }
 0x495   : > { %v3468_v11 = vadd.f32 %v3452_v54, %v3419_v44  ;;  %v3222_v14 = vadd.f32 %v3206_v30, %v3173_v0  ;;  %v3061_v47 = vmul.f32 %v6038_v26, %v3044_v35  ;;  %v3191_v36 = vmax.f32 %v6513_v48, -0.2 }
 0x496   : > { %v2979_v25 = vadd.f32 %v2963_v62, %v2930_v10  ;;  %v3240_v37 = vmax.f32 %v6513_v48, -0.06666667  ;;  %v3289_v13 = vmax.f32 %v6513_v48, 0.06666667  ;;  %v3110_v27 = vmul.f32 %v6042_v3, %v3093_v23 }
 0x497   : > { %v3271_v39 = vadd.f32 %v3255_v55, %v3222_v14  ;;  %v3159_v8 = vmul.f32 %v6045_v24, %v3142_v57  ;;  %v3338_v45 = vmax.f32 %v6513_v48, 0.2  ;;  %v6536_v54 = vadd.f32 %v6483_v60, %v3468_v11 }
 0x498   : > { %v3028_v30 = vadd.f32 %v3012_v41, %v2979_v25  ;;  %v3208_v49 = vmul.f32 %v6048_v58, %v3191_v36  ;;  %v3387_v35 = vmax.f32 %v6513_v48, 0.33333334  ;;  %v3257_v0 = vmul.f32 %v6051_v63, %v3240_v37 }
 0x499   : > { %v3320_v44 = vadd.f32 %v3304_v33, %v3271_v39  ;;  %v3306_v10 = vmul.f32 %v6054_v19, %v3289_v13  ;;  %v3436_v55 = vmax.f32 %v6513_v48, 0.46666667  ;;  %v3355_v57 = vmul.f32 %v6057_v53, %v3338_v45 }
 0x49a   : > { %v3077_v23 = vadd.f32 %v3061_v47, %v3028_v30  ;;  %v2914_v62 = vmul.f32 %v3968_v4, %v6029_v40  ;;  %v2947_v60 = vmax.f32 %v6525_v38, -0.8666667  ;;  %v3485_v14 = vmax.f32 %v6513_v48, 0.6 }
 0x49b   : > { %v3369_v11 = vadd.f32 %v3353_v1, %v3320_v44  ;;  %v2996_v41 = vmax.f32 %v6525_v38, -0.73333335  ;;  %v3045_v33 = vmax.f32 %v6525_v38, -0.6  ;;  %v3404_v36 = vmul.f32 %v6063_v56, %v3387_v35 }
 0x49c   : > { %v3126_v25 = vadd.f32 %v3110_v27, %v3077_v23  ;;  %v2931_v37 = vadd.f32 %v6068_v28, %v2914_v62  ;;  %v2964_v47 = vmul.f32 %v6032_v5, %v2947_v60  ;;  %v3453_v39 = vmul.f32 %v6066_v2, %v3436_v55 }
 0x49d   : > { %v3418_v13 = vadd.f32 %v3402_v52, %v3369_v11  ;;  %v3013_v4 = vmul.f32 %v6035_v34, %v2996_v41  ;;  %v3094_v1 = vmax.f32 %v6525_v38, -0.46666667  ;;  %v3143_v44 = vmax.f32 %v6525_v38, -0.33333334 }
 0x49e   : > { %v3175_v45 = vadd.f32 %v3159_v8, %v3126_v25  ;;  %v2980_v30 = vadd.f32 %v2964_v47, %v2931_v37  ;;  %v3192_v18 = vmax.f32 %v6525_v38, -0.2  ;;  %v3502_v35 = vmul.f32 %v6071_v50, %v3485_v14 }
 0x49f   : > { %v3467_v27 = vadd.f32 %v3451_v46, %v3418_v13  ;;  %v3062_v23 = vmul.f32 %v6038_v26, %v3045_v33  ;;  %v3241_v62 = vmax.f32 %v6525_v38, -0.06666667  ;;  %v3111_v55 = vmul.f32 %v6042_v3, %v3094_v1 }
 0x4a0   : > { %v3224_v52 = vadd.f32 %v3208_v49, %v3175_v45  ;;  %v3029_v60 = vadd.f32 %v3013_v4, %v2980_v30  ;;  %v3290_v11 = vmax.f32 %v6525_v38, 0.06666667  ;;  %v3160_v8 = vmul.f32 %v6045_v24, %v3143_v44 }
 0x4a1   : > { %v6562_v41 = vadd.f32 %v3500_v20, %v3467_v27  ;;  %v3209_v25 = vmul.f32 %v6048_v58, %v3192_v18  ;;  %v3339_v46 = vmax.f32 %v6525_v38, 0.2  ;;  %v3388_v33 = vmax.f32 %v6525_v38, 0.33333334 }
 0x4a2   : > { %v3273_v37 = vadd.f32 %v3257_v0, %v3224_v52  ;;  %v3078_v14 = vadd.f32 %v3062_v23, %v3029_v60  ;;  %v3437_v47 = vmax.f32 %v6525_v38, 0.46666667  ;;  %v3258_v49 = vmul.f32 %v6051_v63, %v3241_v62 }
 0x4a3   : > { %v3486_v13 = vmax.f32 %v6525_v38, 0.6  ;;  %v2775_v20 = vadd.f32 %v6174_v22, %v6501_v42  ;;  %v2688_v4 = vadd.f32 %v6153_v32, %v6501_v42  ;;  %v3307_v45 = vmul.f32 %v6054_v19, %v3290_v11 }
 0x4a4   : > { %v3322_v1 = vadd.f32 %v3306_v10, %v3273_v37  ;;  %v3127_v18 = vadd.f32 %v3111_v55, %v3078_v14  ;;  %v3356_v0 = vmul.f32 %v6057_v53, %v3339_v46  ;;  %v3405_v30 = vmul.f32 %v6063_v56, %v3388_v33 }
 0x4a5   : > { %v3454_v44 = vmul.f32 %v6066_v2, %v3437_v47  ;;  %v6579_v27 = vmin.f32 %v2775_v20, 1.0  ;;  %v3970_v23 = vclamps-f32 %v2775_v20, 1.0  ;;  %v3503_v22 = vmul.f32 %v6071_v50, %v3486_v13 }
 0x4a6   : > { %v3371_v62 = vadd.f32 %v3355_v57, %v3322_v1  ;;  %v3176_v52 = vadd.f32 %v3160_v8, %v3127_v18  ;;  %v6582_v60 = vmin.f32 %v2688_v4, 1.0  ;;  %v3969_v47 = vclamps-f32 %v2688_v4, 1.0 }
 0x4a7   : > { %v2916_v32 = vmul.f32 %v3970_v23, %v6029_v40  ;;  %v2949_v10 = vmax.f32 %v6579_v27, -0.8666667  ;;  %v2998_v55 = vmax.f32 %v6579_v27, -0.73333335  ;;  %v3047_v11 = vmax.f32 %v6579_v27, -0.6 }
 0x4a8   : > { %v3420_v46 = vadd.f32 %v3404_v36, %v3371_v62  ;;  %v3225_v37 = vadd.f32 %v3209_v25, %v3176_v52  ;;  %v3096_v14 = vmax.f32 %v6579_v27, -0.46666667  ;;  %v3145_v33 = vmax.f32 %v6579_v27, -0.33333334 }
 0x4a9   : > { %v2933_v57 = vadd.f32 %v6068_v28, %v2916_v32  ;;  %v2966_v8 = vmul.f32 %v6032_v5, %v2949_v10  ;;  %v6594_v13 = vadd.f32 %v6185_v31, %v6501_v42  ;;  %v3015_v18 = vmul.f32 %v6035_v34, %v2998_v55 }
 0x4aa   : > { %v3469_v20 = vadd.f32 %v3453_v39, %v3420_v46  ;;  %v3274_v1 = vadd.f32 %v3258_v49, %v3225_v37  ;;  %v3064_v36 = vmul.f32 %v6038_v26, %v3047_v11  ;;  %v3194_v23 = vmax.f32 %v6579_v27, -0.2 }
 0x4ab   : > { %v2982_v25 = vadd.f32 %v2966_v8, %v2933_v57  ;;  %v3243_v62 = vmax.f32 %v6579_v27, -0.06666667  ;;  %v3292_v52 = vmax.f32 %v6579_v27, 0.06666667  ;;  %v3113_v4 = vmul.f32 %v6042_v3, %v3096_v14 }
 0x4ac   : > { %v3323_v32 = vadd.f32 %v3307_v45, %v3274_v1  ;;  %v3162_v10 = vmul.f32 %v6045_v24, %v3145_v33  ;;  %v3341_v31 = vmax.f32 %v6579_v27, 0.2  ;;  %v6604_v42 = vadd.f32 %v3502_v35, %v3469_v20 }
 0x4ad   : > { %v3031_v39 = vadd.f32 %v3015_v18, %v2982_v25  ;;  %v3211_v49 = vmul.f32 %v6048_v58, %v3194_v23  ;;  %v3390_v55 = vmax.f32 %v6579_v27, 0.33333334  ;;  %v3260_v46 = vmul.f32 %v6051_v63, %v3243_v62 }
 0x4ae   : > { %v3372_v11 = vadd.f32 %v3356_v0, %v3323_v32  ;;  %v3309_v37 = vmul.f32 %v6054_v19, %v3292_v52  ;;  %v3439_v45 = vmax.f32 %v6579_v27, 0.46666667  ;;  %v3358_v14 = vmul.f32 %v6057_v53, %v3341_v31 }
 0x4af   : > { %v3080_v57 = vadd.f32 %v3064_v36, %v3031_v39  ;;  %v2915_v33 = vmul.f32 %v3969_v47, %v6029_v40  ;;  %v2948_v35 = vmax.f32 %v6582_v60, -0.8666667  ;;  %v3488_v20 = vmax.f32 %v6579_v27, 0.6 }
 0x4b0   : > { %v3421_v8 = vadd.f32 %v3405_v30, %v3372_v11  ;;  %v2997_v1 = vmax.f32 %v6582_v60, -0.73333335  ;;  %v3046_v0 = vmax.f32 %v6582_v60, -0.6  ;;  %v3407_v25 = vmul.f32 %v6063_v56, %v3390_v55 }
 0x4b1   : > { %v3129_v18 = vadd.f32 %v3113_v4, %v3080_v57  ;;  %v2932_v23 = vadd.f32 %v6068_v28, %v2915_v33  ;;  %v2965_v36 = vmul.f32 %v6032_v5, %v2948_v35  ;;  %v3456_v52 = vmul.f32 %v6066_v2, %v3439_v45 }
 0x4b2   : > { %v3470_v62 = vadd.f32 %v3454_v44, %v3421_v8  ;;  %v3014_v47 = vmul.f32 %v6035_v34, %v2997_v1  ;;  %v3095_v30 = vmax.f32 %v6582_v60, -0.46666667  ;;  %v3144_v39 = vmax.f32 %v6582_v60, -0.33333334 }
 0x4b3   : > { %v3178_v32 = vadd.f32 %v3162_v10, %v3129_v18  ;;  %v2981_v31 = vadd.f32 %v2965_v36, %v2932_v23  ;;  %v3193_v11 = vmax.f32 %v6582_v60, -0.2  ;;  %v3505_v4 = vmul.f32 %v6071_v50, %v3488_v20 }
 0x4b4   : > { %v3063_v55 = vmul.f32 %v6038_v26, %v3046_v0  ;;  %v3242_v57 = vmax.f32 %v6582_v60, -0.06666667  ;;  %v3291_v44 = vmax.f32 %v6582_v60, 0.06666667  ;;  %v6629_v33 = vadd.f32 %v3503_v22, %v3470_v62 }
 0x4b5   : > { %v3227_v45 = vadd.f32 %v3211_v49, %v3178_v32  ;;  %v3030_v35 = vadd.f32 %v3014_v47, %v2981_v31  ;;  %v3112_v8 = vmul.f32 %v6042_v3, %v3095_v30  ;;  %v3161_v10 = vmul.f32 %v6045_v24, %v3144_v39 }
 0x4b6   : > { %v3210_v1 = vmul.f32 %v6048_v58, %v3193_v11  ;;  %v3340_v18 = vmax.f32 %v6582_v60, 0.2  ;;  %v3389_v20 = vmax.f32 %v6582_v60, 0.33333334  ;;  %v3259_v36 = vmul.f32 %v6051_v63, %v3242_v57 }
 0x4b7   : > { %v3276_v23 = vadd.f32 %v3260_v46, %v3227_v45  ;;  %v3079_v0 = vadd.f32 %v3063_v55, %v3030_v35  ;;  %v3308_v16 = vmul.f32 %v6054_v19, %v3291_v44  ;;  %v3438_v22 = vmax.f32 %v6582_v60, 0.46666667 }
 0x4b8   : > { %v3487_v49 = vmax.f32 %v6582_v60, 0.6  ;;  %v6641_v62 = vmin.f32 %v6594_v13, 1.0  ;;  %v3971_v47 = vclamps-f32 %v6594_v13, 1.0  ;;  %v3357_v31 = vmul.f32 %v6057_v53, %v3340_v18 }
 0x4b9   : > { %v3325_v30 = vadd.f32 %v3309_v37, %v3276_v23  ;;  %v3128_v32 = vadd.f32 %v3112_v8, %v3079_v0  ;;  %v3406_v46 = vmul.f32 %v6063_v56, %v3389_v20  ;;  %v3455_v37 = vmul.f32 %v6066_v2, %v3438_v22 }
 0x4ba   : > { %v2917_v39 = vmul.f32 %v3971_v47, %v6029_v40  ;;  %v2950_v11 = vmax.f32 %v6641_v62, -0.8666667  ;;  %v2999_v55 = vmax.f32 %v6641_v62, -0.73333335  ;;  %v3048_v57 = vmax.f32 %v6641_v62, -0.6 }
 0x4bb   : > { %v3374_v44 = vadd.f32 %v3358_v14, %v3325_v30  ;;  %v3177_v45 = vadd.f32 %v3161_v10, %v3128_v32  ;;  %v3097_v35 = vmax.f32 %v6641_v62, -0.46666667  ;;  %v3146_v13 = vmax.f32 %v6641_v62, -0.33333334 }
 0x4bc   : > { %v3504_v8 = vmul.f32 %v6071_v50, %v3487_v49  ;;  %v2934_v18 = vadd.f32 %v6068_v28, %v2917_v39  ;;  %v2967_v40 = vmul.f32 %v6032_v5, %v2950_v11  ;;  %v3016_v0 = vmul.f32 %v6035_v34, %v2999_v55 }
 0x4bd   : > { %v3423_v20 = vadd.f32 %v3407_v25, %v3374_v44  ;;  %v3226_v23 = vadd.f32 %v3210_v1, %v3177_v45  ;;  %v3065_v47 = vmul.f32 %v6038_v26, %v3048_v57  ;;  %v3195_v10 = vmax.f32 %v6641_v62, -0.2 }
 0x4be   : > { %v2983_v14 = vadd.f32 %v2967_v40, %v2934_v18  ;;  %v3244_v30 = vmax.f32 %v6641_v62, -0.06666667  ;;  %v3293_v32 = vmax.f32 %v6641_v62, 0.06666667  ;;  %v3114_v49 = vmul.f32 %v6042_v3, %v3097_v35 }
 0x4bf   : > { %v3472_v22 = vadd.f32 %v3456_v52, %v3423_v20  ;;  %v3275_v9 = vadd.f32 %v3259_v36, %v3226_v23  ;;  %v3163_v28 = vmul.f32 %v6045_v24, %v3146_v13  ;;  %v3212_v25 = vmul.f32 %v6048_v58, %v3195_v10 }
 0x4c0   : > { %v3032_v5 = vadd.f32 %v3016_v0, %v2983_v14  ;;  %v3342_v34 = vmax.f32 %v6641_v62, 0.2  ;;  %v3391_v26 = vmax.f32 %v6641_v62, 0.33333334  ;;  %v3261_v11 = vmul.f32 %v6051_v63, %v3244_v30 }
 0x4c1   : > { %v3521_v1 = vadd.f32 %v3505_v4, %v3472_v22  ;;  %v3324_v39 = vadd.f32 %v3308_v16, %v3275_v9  ;;  %v3310_v55 = vmul.f32 %v6054_v19, %v3293_v32  ;;  %v3440_v52 = vmax.f32 %v6641_v62, 0.46666667 }
 0x4c2   : > { %v3081_v57 = vadd.f32 %v3065_v47, %v3032_v5  ;;  %v3489_v3 = vmax.f32 %v6641_v62, 0.6  ;;  %v3531_v24 = vmax.f32 %v6395_v61, 0.73333335  ;;  %v3532_v58 = vmax.f32 %v6444_v51, 0.73333335 }
 0x4c3   : > { %v3373_v36 = vadd.f32 %v3357_v31, %v3324_v39  ;;  %v3533_v44 = vmax.f32 %v6440_v43, 0.73333335  ;;  %v3534_v45 = vmax.f32 %v6513_v48, 0.73333335  ;;  %v3359_v16 = vmul.f32 %v6057_v53, %v3342_v34  ;;  %v6924_v34 = vld [vmem:[#allocation28_spill] sm:$0xff] }
 0x4c4   : > { %v3130_v4 = vadd.f32 %v3114_v49, %v3081_v57  ;;  %v3408_v63 = vmul.f32 %v6063_v56, %v3391_v26  ;;  %v3535_v19 = vmax.f32 %v6525_v38, 0.73333335  ;;  %v3536_v35 = vmax.f32 %v6582_v60, 0.73333335 }
 0x4c5   : > { %v3422_v9 = vadd.f32 %v3406_v46, %v3373_v36  ;;  %v3537_v13 = vmax.f32 %v6579_v27, 0.73333335  ;;  %v3538_v31 = vmax.f32 %v6641_v62, 0.73333335  ;;  %v3457_v40 = vmul.f32 %v6066_v2, %v3440_v52 }
 0x4c6   : > { %v3179_v18 = vadd.f32 %v3163_v28, %v3130_v4  ;;  %v3506_v20 = vmul.f32 %v6071_v50, %v3489_v3  ;;  %v3548_v23 = vmul.f32 %v6073_v21, %v3531_v24  ;;  %v3549_v53 = vmul.f32 %v6073_v21, %v3532_v58 }
 0x4c7   : > { %v3471_v0 = vadd.f32 %v3455_v37, %v3422_v9  ;;  %v3550_v56 = vmul.f32 %v6073_v21, %v3533_v44  ;;  %v3551_v46 = vmul.f32 %v6073_v21, %v3534_v45  ;;  %v3552_v14 = vmul.f32 %v6073_v21, %v3535_v19 }
 0x4c8   : > { %v3228_v47 = vadd.f32 %v3212_v25, %v3179_v18  ;;  %v3553_v10 = vmul.f32 %v6073_v21, %v3536_v35  ;;  %v3554_v30 = vmul.f32 %v6073_v21, %v3537_v13  ;;  %v3555_v2 = vmul.f32 %v6073_v21, %v3538_v31  ;;  %v6927_v31 = vld [vmem:[#allocation31_spill] sm:$0xff] }
 0x4c9   : > { %v3520_v32 = vadd.f32 %v3504_v8, %v3471_v0  ;;  %v3564_v50 = vadd.f32 %v3548_v23, %v6494_v17  ;;  %v3565_v37 = vadd.f32 %v3549_v53, %v6562_v41  ;;  %v3566_v49 = vadd.f32 %v3550_v56, %v6536_v54  ;;  %v6928_v23 = vld [vmem:[#allocation30_spill] sm:$0xff]  ;;  %v6929_v53 = vld [vmem:[#allocation35_spill] sm:$0xff] }
 0x4ca   : > { %v3277_v22 = vadd.f32 %v3261_v11, %v3228_v47  ;;  %v3567_v28 = vadd.f32 %v3551_v46, %v6604_v42  ;;  %v3568_v5 = vadd.f32 %v3552_v14, %v6629_v33  ;;  %v3570_v25 = vadd.f32 %v3554_v30, %v3521_v1  ;;  %v6925_v42 = vld [vmem:[#allocation34_spill] sm:$0xff]  ;;  %v6930_v46 = vld [vmem:[#allocation37_spill] sm:$0xff]  ;;  %v6931_v14 = vld [vmem:[#allocation36_spill] sm:$0xff] }
 0x4cb   : > { %v3572_v26 = vmax.f32 %v6924_v34, 0.8666667  ;;  %v3573_v39 = vmax.f32 %v6086_v7, 0.8666667  ;;  %v3574_v8 = vmax.f32 %v6132_v29, 0.8666667  ;;  %v3569_v11 = vadd.f32 %v3553_v10, %v3520_v32 }
 0x4cc   : > { %v3326_v57 = vadd.f32 %v3310_v55, %v3277_v22  ;;  %v3575_v21 = vmax.f32 %v6215_v15, 0.8666667  ;;  %v3576_v17 = vmax.f32 %v6225_v59, 0.8666667  ;;  %v3577_v41 = vmax.f32 %v6298_v12, 0.8666667 }
 0x4cd   : > { %v3578_v54 = vmax.f32 %v6291_v6, 0.8666667  ;;  %v3579_v52 = vmax.f32 %v6925_v42, 0.8666667  ;;  %v3580_v33 = vmax.f32 %v6395_v61, 0.8666667 }
 0x4ce   : > { %v3375_v1 = vadd.f32 %v3359_v16, %v3326_v57  ;;  %v3581_v3 = vmax.f32 %v6444_v51, 0.8666667  ;;  %v3582_v7 = vmax.f32 %v6440_v43, 0.8666667  ;;  %v3583_v29 = vmax.f32 %v6513_v48, 0.8666667 }
 0x4cf   : > { %v3584_v15 = vmax.f32 %v6525_v38, 0.8666667  ;;  %v3585_v59 = vmax.f32 %v6582_v60, 0.8666667  ;;  %v3586_v12 = vmax.f32 %v6579_v27, 0.8666667 }
 0x4d0   : > { %v6926_v55 = vld [vmem:[#allocation29_spill] sm:$0xff]  ;;  %v3424_v6 = vadd.f32 %v3408_v63, %v3375_v1  ;;  %v3587_v36 = vmax.f32 %v6641_v62, 0.8666667  ;;  %v3628_v62 = vpop.permute.xlu0 %3627  ;;  %v6932_v32 = vld [vmem:[#allocation38_spill] sm:$0xff] }
 0x4d1   : > { %v3589_v24 = vmul.f32 %v6926_v55, %v3572_v26  ;;  %v3590_v61 = vmul.f32 %v6926_v55, %v3573_v39  ;;  %v3591_v58 = vmul.f32 %v6926_v55, %v3574_v8  ;;  %v3592_v51 = vmul.f32 %v6926_v55, %v3575_v21  ;;  %v6933_v26 = vld [vmem:[#allocation32_spill] sm:$0xff]  ;;  %v6934_v8 = vld [vmem:[#allocation33_spill] sm:$0xff] }
 0x4d2   : > { %v3593_v43 = vmul.f32 %v6926_v55, %v3576_v17  ;;  %v3594_v48 = vmul.f32 %v6926_v55, %v3577_v41  ;;  %v3595_v38 = vmul.f32 %v6926_v55, %v3578_v54  ;;  %v3473_v60 = vadd.f32 %v3457_v40, %v3424_v6  ;;  %v3633_v40 = vpop.permute.xlu1 %3632 }
 0x4d3   : > { %v3596_v27 = vmul.f32 %v6926_v55, %v3579_v52  ;;  %v3597_v44 = vmul.f32 %v6926_v55, %v3580_v33  ;;  %v3598_v45 = vmul.f32 %v6926_v55, %v3581_v3  ;;  %v3599_v4 = vmul.f32 %v6926_v55, %v3582_v7 }
 0x4d4   : > { %v3600_v16 = vmul.f32 %v6926_v55, %v3583_v29  ;;  %v3601_v63 = vmul.f32 %v6926_v55, %v3584_v15  ;;  %v3602_v19 = vmul.f32 %v6926_v55, %v3585_v59  ;;  %v3522_v9 = vadd.f32 %v3506_v20, %v3473_v60  ;;  %v3638_v33 = vpop.permute.xlu0 %3637 }
 0x4d5   : > { %v3603_v35 = vmul.f32 %v6926_v55, %v3586_v12  ;;  %v3604_v13 = vmul.f32 %v6926_v55, %v3587_v36  ;;  %v3605_v18 = vadd.f32 %v3589_v24, %v6927_v31  ;;  %v3606_v0 = vadd.f32 %v3590_v61, %v6928_v23 }
 0x4d6   : > { %v3609_v56 = vadd.f32 %v3593_v43, %v6929_v53  ;;  %v3610_v47 = vadd.f32 %v3594_v48, %v6930_v46  ;;  %v3611_v10 = vadd.f32 %v3595_v38, %v6931_v14  ;;  %v3571_v30 = vadd.f32 %v3555_v2, %v3522_v9 }
 0x4d7   : > { %v3612_v22 = vadd.f32 %v3596_v27, %v6932_v32  ;;  %v3613_v34 = vadd.f32 %v3597_v44, %v3564_v50  ;;  %v3614_v20 = vadd.f32 %v3598_v45, %v3565_v37  ;;  %v3607_v39 = vadd.f32 %v3591_v58, %v6933_v26  ;;  %v3643_v37 = vpop.permute.xlu1 %3642  ;;  %v6936_v26 = vld [vmem:[#allocation27_spill] sm:$0xff] }
 0x4d8   : > { %v3608_v57 = vadd.f32 %v3592_v51, %v6934_v8  ;;  %v3615_v21 = vadd.f32 %v3599_v4, %v3566_v49  ;;  %v3616_v17 = vadd.f32 %v3600_v16, %v3567_v28  ;;  %v3617_v41 = vadd.f32 %v3601_v63, %v3568_v5 }
 0x4d9   : > { %v3618_v54 = vadd.f32 %v3602_v19, %v3569_v11  ;;  %v3619_v42 = vadd.f32 %v3603_v35, %v3570_v25  ;;  %v3620_v52 = vadd.f32 %v3604_v13, %v3571_v30  ;;  %v3645_v1 = vmul.f32 %v3628_v62, %v3605_v18 }
 0x4da   : > { %v3646_v3 = vmul.f32 %v3628_v62, %v3606_v0  ;;  %v3649_v7 = vmul.f32 %v3633_v40, %v3609_v56  ;;  %v3650_v29 = vmul.f32 %v3633_v40, %v3610_v47  ;;  %v3651_v2 = vmul.f32 %v3633_v40, %v3611_v10  ;;  %v3701_v47 = vpop.permute.xlu0 %3700 }
 0x4db   : > { %v3652_v15 = vmul.f32 %v3633_v40, %v3612_v22  ;;  %v3653_v59 = vmul.f32 %v3638_v33, %v3613_v34  ;;  %v3654_v50 = vmul.f32 %v3638_v33, %v3614_v20  ;;  %v3647_v12 = vmul.f32 %v3628_v62, %v3607_v39 }
 0x4dc   : > { %v3648_v55 = vmul.f32 %v3628_v62, %v3608_v57  ;;  %v3655_v24 = vmul.f32 %v3638_v33, %v3615_v21  ;;  %v3656_v6 = vmul.f32 %v3638_v33, %v3616_v17  ;;  %v3657_v49 = vmul.f32 %v3643_v37, %v3617_v41 }
 0x4dd   : > { %v3658_v28 = vmul.f32 %v3643_v37, %v3618_v54  ;;  %v3661_v5 = vadd.f32 %v3649_v7, %v3645_v1  ;;  %v3670_v11 = vadd.f32 %v3650_v29, %v3646_v3  ;;  %v3659_v25 = vmul.f32 %v3643_v37, %v3619_v42  ;;  %v6938_v42 = vld [vmem:[#allocation26_spill] sm:$0xff] }
 0x4de   : > { %v3660_v36 = vmul.f32 %v3643_v37, %v3620_v52  ;;  %v3679_v61 = vadd.f32 %v3651_v2, %v3647_v12  ;;  %v3688_v58 = vadd.f32 %v3652_v15, %v3648_v55  ;;  %v4213_v40 = vmov 1966171168  }
 0x4df   : > { %v3662_v51 = vadd.f32 %v3661_v5, %v3653_v59  ;;  %v3671_v43 = vadd.f32 %v3670_v11, %v3654_v50  ;;  %v3718_v23 = vunpack.c.l.s4 %v4213_v40  ;;  %v3706_v39 = vrot.slane %v3701_v47, %v6936_v26 }
 0x4e0   : > { %v3680_v48 = vadd.f32 %v3679_v61, %v3655_v24  ;;  %v3689_v38 = vadd.f32 %v3688_v58, %v3656_v6  ;;  %v6940_v59 = vlaneseq }
 0x4e1   : > { %v3663_v60 = vadd.f32 %v3662_v51, %v3657_v49  ;;  %v3672_v27 = vadd.f32 %v3671_v43, %v3658_v28  ;;  %v3719_v22 = vunpack.c.0.s8 %v3718_v23 }
 0x4e2   : > { %v3681_v44 = vadd.f32 %v3680_v48, %v3659_v25  ;;  %v3690_v45 = vadd.f32 %v3689_v38, %v3660_v36  ;;  %vm3742_vm1 = vcmp.lt.s32.totalorder %v6940_v59, 512 }
 0x4e3   : > { %v3664_v4 = vrot.slane %v3663_v60, 4  ;;  %v3673_v62 = vrot.slane %v3672_v27, 4  ;;  %v3722_v52 = vsub.s32 %v3719_v22, %v6938_v42 }
 0x4e4   : > { %v3682_v16 = vrot.slane %v3681_v44, 4  ;;  %v3691_v63 = vrot.slane %v3690_v45, 4 }
 0x4e5   : > { %v3665_v19 = vadd.f32 %v3664_v4, %v3663_v60  ;;  %v3674_v9 = vadd.f32 %v3673_v62, %v3672_v27 }
 0x4e6   : > { %v3683_v35 = vadd.f32 %v3682_v16, %v3681_v44  ;;  %v3692_v13 = vadd.f32 %v3691_v63, %v3690_v45 }
 0x4e7   : > { %v3666_v31 = vrot.slane %v3665_v19, 2  ;;  %v3675_v18 = vrot.slane %v3674_v9, 2 }
 0x4e8   : > { %v3684_v0 = vrot.slane %v3683_v35, 2  ;;  %v3693_v53 = vrot.slane %v3692_v13, 2 }
 0x4e9   : > { %v3667_v56 = vadd.f32 %v3666_v31, %v3665_v19  ;;  %v3676_v46 = vadd.f32 %v3675_v18, %v3674_v9 }
 0x4ea   : > { %v3685_v14 = vadd.f32 %v3684_v0, %v3683_v35  ;;  %v3694_v10 = vadd.f32 %v3693_v53, %v3692_v13 }
 0x4eb   : > { %v3668_v30 = vrot.slane %v3667_v56, 1  ;;  %v3677_v32 = vrot.slane %v3676_v46, 1 }
 0x4ec   : > { %v3686_v34 = vrot.slane %v3685_v14, 1  ;;  %v3695_v20 = vrot.slane %v3694_v10, 1 }
 0x4ed   : > { %v3669_v8 = vadd.f32 %v3668_v30, %v3667_v56  ;;  %v3678_v57 = vadd.f32 %v3677_v32, %v3676_v46 }
 0x4ee   : > { %v3687_v21 = vadd.f32 %v3686_v34, %v3685_v14  ;;  %v3696_v17 = vadd.f32 %v3695_v20, %v3694_v10 }
 0x4ef   : > { %v3707_v41 = vadd.f32 %v3706_v39, %v3669_v8  ;;  %v3708_v54 = vadd.f32 %v3706_v39, %v3678_v57 }
 0x4f0   : > { %v3709_v33 = vadd.f32 %v3706_v39, %v3687_v21  ;;  %v3710_v1 = vadd.f32 %v3706_v39, %v3696_v17 }
 0x4f1   : > { %v3715_v3 = vcombine.low %v3707_v41, %v3708_v54 }
 0x4f2   : > { %v3716_v7 = vcombine.low %v3709_v33, %v3710_v1 }
 0x4f3   : > { %v3723_v29 = vrot.slane %v3715_v3, %v3722_v52 }
 0x4f4   : > { %v3730_v2 = vrot.slane %v3716_v7, %v3722_v52 }
 0x4f6   : > { %v3731_v15 = vcombine.low %v3723_v29, %v3730_v2 }
 0x4f8   : > { %v3738_v50 = vrot.slane %v3731_v15, %v3722_v52 }
 0x4fa   : > { %3744 = vst.msk [vmem:[%s448_s30] sm:$0xf] %vm3742_vm1, %v3738_v50 }
 0x4fb   : > { %4148 = shalt.err (!%p4145_p6)
}
 0x4fc   : > { %s4149_s28 = scalar_lea.hbm %s6743_s13, 64  ;;  %s4153_s14 = scalar_lea.hbm %s6941_s4, 128 }
 0x4fd   : > { %p4150_p10 = scmp.ne.s32.totalorder %s6743_s13, %s4149_s28  ;;  %p4154_p11 = scmp.lt.u32.totalorder %s6743_s13, %s6941_s4 }
 0x4fe   : > { %p4155_p13 = scmp.lt.u32.totalorder %s4153_s14, %s4149_s28  ;;  %p4157_p1 = scmp.lt.u32.totalorder %s4149_s28, %s6743_s13 }
 0x4ff   : > { %p4151_p8 = pnand %p4150_p10, %p6942_p2 }
 0x500   : > { %p4156_p12 = por %p4155_p13, %p4154_p11 }
 0x501   : > { %p4152_p0 = pneg %p4151_p8 }
 0x502   : > { %p4158_p3 = por %p4157_p1, %p4156_p12 }
 0x504   : > { %p4159_p4 = pnand %p4158_p3, %p4152_p0 }
 0x506   : > { %4162 = shalt.err (!%p4159_p4)
}
 0x507   : > { %4022 = dma.vmem_to_hbm [thread:$0]  (%p6942_p2), %s6745_s9, 64, %s6743_s13, %s3746_s6  }
 0x508 PF: > { %s6943_s8 = sld [smem:[#allocation16_spill]]  ;;  %s6944_s12 = sld [smem:[#allocation13_spill]] }
 0x509   : > { %s6945_s25 = sld [smem:[#allocation21_spill]] }
 0x50e   : > { %p4044_p9 = scmp.ge.s32.totalorder %s6943_s8, 2  ;;  %s3772_s0 = sand.u32 1, %s6944_s12  }
 0x50f   : > { %p6946_p7 = scmp.ne.s32.totalorder %s6945_s25, 0  ;;  %s3773_s20 = scalar_lea.sflag [#allocation4], %s3772_s0 }
 0x511   : > { %p4035_p5 = pnand %p4044_p9, %p6946_p7 }
 0x513   : > { %4188 = dma.done.wait (!%p4035_p5), %s3773_s20, 64  }
 0x514   : > { %4190 = vsyncadd (!%p4035_p5), %s3773_s20, 4294967232  ;;  %s6947_s26 = sld [smem:[#allocation18_spill]]  ;;  %s6948_s23 = sld [smem:[#allocation14_spill]] }
 0x515   : > { %s6949_s24 = sld [smem:[#allocation15_spill]]  ;;  %s6950_s25 = sld [smem:[#allocation19_spill]] }
 0x51a   : > { %p26_p6 = scmp.ge.s32.totalorder %s6947_s26, 4  }
 0x51c   :  { %28 = sbr.rel (!%p26_p6) target bundleno = 18 (0x12), region = 116 }
 0x523   :  { %3778 = vsyncpa [#allocation4], 1 }
 0x524   :  { %3780 = vsyncpa [#allocation4 + $0x1], 1 }
 0x525   :  { %3781 = vsyncpa [#allocation5], 1 }
 0x526   :  { %3783 = vsyncpa [#allocation5 + $0x1], 1 }
 0x527   :  { %3784 = vsyncpa [#allocation7], 1 }

</bundles_post_ra>
